<compile_context>
chip_gen: v6e
topology: v6e:2x2x1
jax: 0.10.0
libtpu: 0.0.40
codegen_flags: <defaults>
</compile_context>

<pallas_src>
import math
import functools

import jax
import jax.numpy as jnp
from jax import lax
from jax.experimental import pallas as pl
from jax.experimental.pallas import tpu as pltpu

_SQRT2 = math.sqrt(2.0)
_LN_EPS = 1e-5  # nn.LayerNorm default
_VMEM_LIMIT = 48 * 1024 * 1024  # fits v7x's 64 MiB physical VMEM with headroom


# ----------------------------------------------------------------------------
# Helpers
# ----------------------------------------------------------------------------
def _fit_tile(dim, target, base):
    """Largest tile <= target that divides dim and is a multiple of `base`.

    Prefers 256-aligned tiles (v6e/v7x MXU is 2x256^2); falls back to the
    full dimension (always legal) only if no aligned divisor exists.
    """
    if dim <= target:
        return dim
    best = None
    t = (target // base) * base
    while t >= base:
        if dim % t == 0:
            if t % 256 == 0:
                return t
            if best is None:
                best = t
        t -= base
    return best if best is not None else dim


def _erf_poly(x):
    # Abramowitz & Stegun 7.1.26, max abs error 1.5e-7 (f32-indistinguishable
    # from exact erf); only abs/exp/where/poly so it fuses cleanly in Mosaic.
    a1, a2, a3, a4, a5 = (0.254829592, -0.284496736, 1.421413741,
                          -1.453152027, 1.061405429)
    p = 0.3275911
    ax = jnp.abs(x)
    t = 1.0 / (1.0 + p * ax)
    poly = t * (a1 + t * (a2 + t * (a3 + t * (a4 + t * a5))))
    y = 1.0 - poly * jnp.exp(-ax * ax)
    return jnp.where(x >= 0, y, -y)


def _gelu(x):
    # exact (erf-based) GELU, matching torch.nn.GELU()
    return 0.5 * x * (1.0 + _erf_poly(x * (1.0 / _SQRT2)))


# ----------------------------------------------------------------------------
# Tiled linear kernel:
#   y = [LayerNorm](x) @ w + b  [+ GELU] [+ residual]
# bf16 MXU inputs, f32 VMEM accumulator, f32 epilogue.
# ----------------------------------------------------------------------------
def _linear_kernel(*refs, activation, has_residual, fuse_ln, eps):
    it = iter(refs)
    x_ref = next(it)
    g_ref = next(it) if fuse_ln else None
    be_ref = next(it) if fuse_ln else None
    w_ref = next(it)
    b_ref = next(it)
    res_ref = next(it) if has_residual else None
    o_ref = next(it)
    acc_ref = next(it)

    k = pl.program_id(2)

    @pl.when(k == 0)
    def _():
        acc_ref[...] = jnp.zeros_like(acc_ref)

    x = x_ref[...]
    if fuse_ln:
        xf = x.astype(jnp.float32)
        mean = jnp.mean(xf, axis=-1, keepdims=True)
        c = xf - mean
        var = jnp.mean(c * c, axis=-1, keepdims=True)
        x = c * lax.rsqrt(var + eps) * g_ref[...] + be_ref[...]
    x = x.astype(jnp.bfloat16)

    w = w_ref[...]
    if w.dtype != jnp.bfloat16:
        w = w.astype(jnp.bfloat16)

    acc_ref[...] += jnp.dot(x, w, preferred_element_type=jnp.float32)

    @pl.when(k == pl.num_programs(2) - 1)
    def _():
        y = acc_ref[...] + b_ref[...]
        if activation == "gelu":
            y = _gelu(y)
        if has_residual:
            y = y + res_ref[...].astype(jnp.float32)
        o_ref[...] = y.astype(o_ref.dtype)


def linear(x2d, w, b, residual=None, activation=None,
           ln_gamma=None, ln_beta=None, out_dtype=None,
           tm=512, tn=512, tk=512):
    """x2d: (M, K); w: (K, N) (bf16 preferred); b: (N,); residual: (M, N)."""
    m, kdim = x2d.shape
    n = w.shape[1]
    fuse_ln = ln_gamma is not None
    if out_dtype is None:
        out_dtype = x2d.dtype

    tm = _fit_tile(m, tm, 8)
    tn = _fit_tile(n, tn, 128)
    tk = kdim if fuse_ln else _fit_tile(kdim, tk, 128)  # LN needs full rows
    grid = (m // tm, n // tn, kdim // tk)

    in_specs = [pl.BlockSpec((tm, tk), lambda i, j, k: (i, k))]
    inputs = [x2d]
    if fuse_ln:
        in_specs += [pl.BlockSpec((1, tk), lambda i, j, k: (0, k)),
                     pl.BlockSpec((1, tk), lambda i, j, k: (0, k))]
        inputs += [ln_gamma.reshape(1, kdim), ln_beta.reshape(1, kdim)]
    in_specs += [pl.BlockSpec((tk, tn), lambda i, j, k: (k, j)),
                 pl.BlockSpec((1, tn), lambda i, j, k: (0, j))]
    inputs += [w, b.reshape(1, n)]
    if residual is not None:
        in_specs.append(pl.BlockSpec((tm, tn), lambda i, j, k: (i, j)))
        inputs.append(residual)

    return pl.pallas_call(
        functools.partial(_linear_kernel, activation=activation,
                          has_residual=residual is not None,
                          fuse_ln=fuse_ln, eps=_LN_EPS),
        out_shape=jax.ShapeDtypeStruct((m, n), out_dtype),
        grid=grid,
        in_specs=in_specs,
        out_specs=pl.BlockSpec((tm, tn), lambda i, j, k: (i, j)),
        scratch_shapes=[pltpu.VMEM((tm, tn), jnp.float32)],
        compiler_params=pltpu.CompilerParams(
            dimension_semantics=("parallel", "parallel", "arbitrary"),
            vmem_limit_bytes=_VMEM_LIMIT),
    )(*inputs)


# ----------------------------------------------------------------------------
# Embedding scale + add + LayerNorm (row-tiled); output is the residual
# stream so it must be materialized.
# ----------------------------------------------------------------------------
def _embed_norm_kernel(w_ref, t_ref, p_ref, g_ref, b_ref, o_ref, *, scale, eps):
    x = (w_ref[...].astype(jnp.float32) * scale + t_ref[...]) + p_ref[...]
    mean = jnp.mean(x, axis=-1, keepdims=True)
    c = x - mean
    var = jnp.mean(c * c, axis=-1, keepdims=True)
    y = c * lax.rsqrt(var + eps) * g_ref[...] + b_ref[...]
    o_ref[...] = y.astype(o_ref.dtype)


def embed_norm(word_e, type_e, pos_e, gamma, beta, scale, eps=_LN_EPS, tm=512):
    n, d = word_e.shape
    tm = _fit_tile(n, tm, 8)
    return pl.pallas_call(
        functools.partial(_embed_norm_kernel, scale=scale, eps=eps),
        out_shape=jax.ShapeDtypeStruct((n, d), jnp.float32),
        grid=(n // tm,),
        in_specs=[
            pl.BlockSpec((tm, d), lambda i: (i, 0)),
            pl.BlockSpec((tm, d), lambda i: (i, 0)),
            pl.BlockSpec((tm, d), lambda i: (i, 0)),
            pl.BlockSpec((1, d), lambda i: (0, 0)),
            pl.BlockSpec((1, d), lambda i: (0, 0)),
        ],
        out_specs=pl.BlockSpec((tm, d), lambda i: (i, 0)),
        compiler_params=pltpu.CompilerParams(dimension_semantics=("parallel",)),
    )(word_e, type_e, pos_e, gamma.reshape(1, d), beta.reshape(1, d))


# ----------------------------------------------------------------------------
# Attention core: reads the fused (B*T, 3H) QKV slab directly on a
# (batch, head-group) grid; writes a lane-dense (B*T, H) output slab.
# ----------------------------------------------------------------------------
def _attention_kernel(*refs, scaling, dh, hpb, has_mask):
    if has_mask:
        q_ref, k_ref, v_ref, m_ref, o_ref = refs
        mask = m_ref[0, 0]                                  # (T, S) additive f32
    else:
        q_ref, k_ref, v_ref, o_ref = refs
        mask = None

    outs = []
    for h in range(hpb):                                    # static unroll
        qh = q_ref[:, h * dh:(h + 1) * dh]                  # (T, dh) bf16
        kh = k_ref[:, h * dh:(h + 1) * dh]                  # (S, dh) bf16
        vh = v_ref[:, h * dh:(h + 1) * dh]                  # (S, dh) bf16
        s = lax.dot_general(qh, kh, (((1,), (1,)), ((), ())),
                            preferred_element_type=jnp.float32) * scaling
        if mask is not None:
            s = s + mask
        s = s - jnp.max(s, axis=-1, keepdims=True)
        p = jnp.exp(s)
        l = jnp.sum(p, axis=-1, keepdims=True)
        p = p * pl.reciprocal(l, approx=True)
        oh = jnp.dot(p.astype(vh.dtype), vh,
                     preferred_element_type=jnp.float32)    # (T, dh)
        outs.append(oh)
    o = outs[0] if hpb == 1 else jnp.concatenate(outs, axis=-1)
    o_ref[...] = o.astype(o_ref.dtype)


def _heads_per_block(num_heads, dh, t, s, budget=12 * 1024 * 1024):
    """Heads per grid step; group width hpb*dh must be a 128 multiple."""
    aligned = [h for h in range(1, num_heads + 1)
               if num_heads % h == 0 and (h * dh) % 128 == 0]
    if not aligned:
        return num_heads   # last resort: full-H-wide group
    best = aligned[0]
    for h in aligned:
        gw = h * dh
        est = (3 * 2 * t * gw * 2        # q, k, v double-buffered bf16
               + 2 * t * gw * 2          # output double-buffered bf16
               + 2 * t * s * 4           # mask double-buffered f32
               + t * s * 4 + t * gw * 4)  # per-head scores / f32 temps
        if est <= budget:
            best = h
    return best


def attention_core(qkv, mask, B, T, H, num_heads, scaling):
    """qkv: (B*T, 3H) bf16 slab; mask: optional (B, 1, T, T) additive f32."""
    dh = H // num_heads
    s_len = T                              # self-attention: keys == queries
    hpb = _heads_per_block(num_heads, dh, T, s_len)
    gw = hpb * dh                          # group (column block) width
    groups = num_heads // hpb
    k_off, v_off = groups, 2 * groups      # column-block offsets of K / V

    # TODO(synk): add a KV-tile grid axis with online softmax for long S
    # (>512); full scores are fine for max_position_embeddings=128.
    in_specs = [
        pl.BlockSpec((T, gw), lambda b, g: (b, g)),
        pl.BlockSpec((T, gw), lambda b, g: (b, g + k_off)),
        pl.BlockSpec((T, gw), lambda b, g: (b, g + v_off)),
    ]
    inputs = [qkv, qkv, qkv]
    if mask is not None:
        in_specs.append(
            pl.BlockSpec((1, 1, T, s_len), lambda b, g: (b, 0, 0, 0)))
        inputs.append(mask.astype(jnp.float32))

    return pl.pallas_call(
        functools.partial(_attention_kernel, scaling=scaling, dh=dh, hpb=hpb,
                          has_mask=mask is not None),
        out_shape=jax.ShapeDtypeStruct((B * T, H), qkv.dtype),
        grid=(B, groups),
        in_specs=in_specs,
        out_specs=pl.BlockSpec((T, gw), lambda b, g: (b, g)),
        compiler_params=pltpu.CompilerParams(
            dimension_semantics=("parallel", "parallel"),
            vmem_limit_bytes=_VMEM_LIMIT),
    )(*inputs)


# ----------------------------------------------------------------------------
# Model glue (gathers / output reshape stay in plain JAX)
# ----------------------------------------------------------------------------
def decoder_layer(h2, mask, lp, num_heads, B, T, H):
    # --- self-attention block: ln1 fused into the QKV projection prologue
    qkv = linear(h2, lp["qkv_w"], lp["qkv_b"],
                 ln_gamma=lp["ln1_g"], ln_beta=lp["ln1_b"],
                 out_dtype=jnp.bfloat16)
    dh = H // num_heads
    attn = attention_core(qkv, mask, B, T, H, num_heads, dh ** (-0.5))
    h2 = linear(attn, lp["o_w"], lp["o_b"], residual=h2,
                out_dtype=jnp.float32)

    # encoder_hidden_states is None in UnifiedTransformerModel.forward, so
    # the cross-attention block is skipped (matches PyTorch control flow).

    # --- FFN block: final_layer_norm fused into fc1, GELU in its epilogue
    x = linear(h2, lp["fc1_w"], lp["fc1_b"],
               ln_gamma=lp["ln3_g"], ln_beta=lp["ln3_b"],
               activation="gelu", out_dtype=jnp.bfloat16)
    h2 = linear(x, lp["fc2_w"], lp["fc2_b"], residual=h2,
                out_dtype=jnp.float32)
    return h2


def unified_transformer_forward(params, cfg, input_ids, attention_mask=None,
                                position_ids=None, type_token_ids=None,
                                masked_positions=None):
    B, T = input_ids.shape
    H = cfg["hidden_size"]
    nH = cfg["decoder_attention_heads"]
    V = cfg["vocab_size"]
    embed_scale = math.sqrt(H) if cfg["scale_embedding"] else 1.0

    # ---- Embeddings (gathers are XLA glue; scale+add+LN fused in a kernel)
    word_e = jnp.take(params["word_emb"], input_ids, axis=0)
    if type_token_ids is not None:
        type_e = jnp.take(params["type_emb"], type_token_ids, axis=0)
    else:
        type_e = jnp.zeros_like(word_e)
    if position_ids is None:
        position_ids = jnp.arange(T, dtype=jnp.int32)
    position_ids = jnp.broadcast_to(position_ids, (B, T))
    pos_e = jnp.take(params["pos_emb"], position_ids, axis=0)

    h2 = embed_norm(word_e.reshape(B * T, H), type_e.reshape(B * T, H),
                    pos_e.reshape(B * T, H), params["emb_ln_g"],
                    params["emb_ln_b"], embed_scale)

    # ---- Decoder layers (activations stay as a flat (B*T, H) f32 slab)
    for lp in params["layers"]:
        h2 = decoder_layer(h2, attention_mask, lp, nH, B, T, H)

    # ---- LM head. The final decoder LayerNorm is row-wise, so it commutes
    # with the masked_positions row gather and fuses into the transform.
    if masked_positions is not None:
        h2 = h2[masked_positions, :]
    x = linear(h2, params["lm_tr_w"], params["lm_tr_b"],
               ln_gamma=params["final_ln_g"], ln_beta=params["final_ln_b"],
               activation="gelu", out_dtype=jnp.float32)
    # logits = lm_ln(x) @ word_emb.T + bias; tied weight is pre-transposed and
    # vocab-padded to a 256 multiple at init; big tm amortizes weight streams.
    # TODO(synk): optionally emit bf16 logits to halve the largest HBM store.
    logits = linear(x, params["word_emb_t"], params["logits_bias_pad"],
                    ln_gamma=params["lm_ln_g"], ln_beta=params["lm_ln_b"],
                    out_dtype=jnp.float32, tm=1024)
    logits = logits[:, :V]
    if masked_positions is None:
        logits = logits.reshape(B, T, V)
    return logits


# ----------------------------------------------------------------------------
# Deterministic parameter init (normal(0, 0.02), biases zero, LayerNorm (1,0),
# padding rows of word/pos/type embeddings zeroed, logits_bias zero).
# Linear weights stored as [in, out] in bf16 (MXU inputs); q/k/v fused.
# Tied LM-head weight pre-transposed and vocab-padded to a 256 multiple.
# ----------------------------------------------------------------------------
def init_params(key, cfg):
    std = 0.02
    H = cfg["hidden_size"]
    F = cfg["decoder_filter_size"]
    V = cfg["vocab_size"]
    n_layers = cfg["decoder_layers"]
    keys = iter(jax.random.split(key, 6 * n_layers + 8))

    def nrm(shape):
        return jax.random.normal(next(keys), shape, jnp.float32) * std

    pad = cfg["pad_token_id"]
    v_pad = ((V + 255) // 256) * 256

    word_emb = nrm((V, H)).at[pad].set(0.0)
    word_emb_t = jnp.zeros((H, v_pad), jnp.float32).at[:, :V].set(word_emb.T)

    params = {
        "word_emb": word_emb,                              # f32, for gathers
        "word_emb_t": word_emb_t.astype(jnp.bfloat16),     # tied LM-head W^T
        "logits_bias_pad": jnp.zeros((v_pad,), jnp.float32),
        "pos_emb": nrm((cfg["max_position_embeddings"], H)).at[pad].set(0.0),
        "type_emb": nrm((cfg["type_token_embeddings"], H)).at[pad].set(0.0),
        "emb_ln_g": jnp.ones((H,), jnp.float32),
        "emb_ln_b": jnp.zeros((H,), jnp.float32),
        "final_ln_g": jnp.ones((H,), jnp.float32),
        "final_ln_b": jnp.zeros((H,), jnp.float32),
        "lm_tr_w": nrm((H, H)).astype(jnp.bfloat16),
        "lm_tr_b": jnp.zeros((H,), jnp.float32),
        "lm_ln_g": jnp.ones((H,), jnp.float32),
        "lm_ln_b": jnp.zeros((H,), jnp.float32),
        "layers": [],
    }
    for _ in range(n_layers):
        qkv_w = jnp.concatenate([nrm((H, H)), nrm((H, H)), nrm((H, H))],
                                axis=1)
        params["layers"].append(dict(
            ln1_g=jnp.ones((H,), jnp.float32),
            ln1_b=jnp.zeros((H,), jnp.float32),
            qkv_w=qkv_w.astype(jnp.bfloat16),
            qkv_b=jnp.zeros((3 * H,), jnp.float32),
            o_w=nrm((H, H)).astype(jnp.bfloat16),
            o_b=jnp.zeros((H,), jnp.float32),
            ln3_g=jnp.ones((H,), jnp.float32),
            ln3_b=jnp.zeros((H,), jnp.float32),
            fc1_w=nrm((H, F)).astype(jnp.bfloat16),
            fc1_b=jnp.zeros((F,), jnp.float32),
            fc2_w=nrm((F, H)).astype(jnp.bfloat16),
            fc2_b=jnp.zeros((H,), jnp.float32),
        ))
    return params


# ----------------------------------------------------------------------------
if __name__ == "__main__":
    # Small config consistent with the module structure (vocab deliberately
    # not a multiple of 128 to exercise the vocab-padding path).
    cfg = dict(
        vocab_size=1000,
        hidden_size=128,
        decoder_filter_size=256,
        decoder_attention_heads=4,
        decoder_layers=2,
        max_position_embeddings=16,
        type_token_embeddings=2,
        pad_token_id=0,
        scale_embedding=True,
    )

    root = jax.random.PRNGKey(0)
    k_params, k_ids, k_types = jax.random.split(root, 3)
    params = init_params(k_params, cfg)

    B, T = 2, 8
    input_ids = jax.random.randint(k_ids, (B, T), 0, cfg["vocab_size"],
                                   dtype=jnp.int32)
    type_token_ids = jax.random.randint(k_types, (B, T), 0,
                                        cfg["type_token_embeddings"],
                                        dtype=jnp.int32)
    # Additive attention mask (B, 1, T, T) — causal, as a decoder caller
    # would supply.
    causal = jnp.where(jnp.tril(jnp.ones((T, T), bool)), 0.0, -1e9)
    attention_mask = jnp.broadcast_to(causal.astype(jnp.float32), (B, 1, T, T))

    fwd = jax.jit(lambda p, ids, m, tt: unified_transformer_forward(
        p, cfg, ids, attention_mask=m, position_ids=None, type_token_ids=tt,
        masked_positions=None))  # TODO(synk): masked_positions gather path is
                                 # supported but exercised as None here.

    logits = fwd(params, input_ids, attention_mask, type_token_ids)
    jax.block_until_ready(logits)
    assert logits.shape == (B, T, cfg["vocab_size"])
    assert bool(jnp.all(jnp.isfinite(logits)))
    print("KERNEL_OK")
</pallas_src>

<mosaic_0001>
module attributes {stable_mosaic.version = 11 : i64} {
  func.func @_embed_norm_kernel(%arg0: i32, %arg1: memref<16x128xf32, #tpu.memory_space<vmem>>, %arg2: memref<16x128xf32, #tpu.memory_space<vmem>>, %arg3: memref<16x128xf32, #tpu.memory_space<vmem>>, %arg4: memref<1x128xf32, #tpu.memory_space<vmem>>, %arg5: memref<1x128xf32, #tpu.memory_space<vmem>>, %arg6: memref<16x128xf32, #tpu.memory_space<vmem>>) attributes {dimension_semantics = [#tpu.dimension_semantics<parallel>], iteration_bounds = array<i64: 1>, scalar_prefetch = 0 : i64, scratch_operands = 0 : i64, tpu.core_type = #tpu.core_type<tc>, window_params = [{transform_indices = @transform_0, window_bounds = array<i64: 16, 128>}, {transform_indices = @transform_1, window_bounds = array<i64: 16, 128>}, {transform_indices = @transform_2, window_bounds = array<i64: 16, 128>}, {pipeline_mode = #tpu.pipeline_mode<synchronous>, transform_indices = @transform_3, window_bounds = array<i64: 1, 128>}, {pipeline_mode = #tpu.pipeline_mode<synchronous>, transform_indices = @transform_4, window_bounds = array<i64: 1, 128>}, {transform_indices = @transform_5, window_bounds = array<i64: 16, 128>}]} {
    %c0 = arith.constant 0 : index
    %c0_0 = arith.constant 0 : index
    %0 = vector.load %arg1[%c0, %c0_0] : memref<16x128xf32, #tpu.memory_space<vmem>>, vector<16x128xf32>
    %cst = arith.constant 11.3137083 : f32
    %1 = vector.broadcast %cst : f32 to vector<16x128xf32>
    %2 = arith.mulf %0, %1 : vector<16x128xf32>
    %c0_1 = arith.constant 0 : index
    %c0_2 = arith.constant 0 : index
    %3 = vector.load %arg2[%c0_1, %c0_2] : memref<16x128xf32, #tpu.memory_space<vmem>>, vector<16x128xf32>
    %4 = arith.addf %2, %3 : vector<16x128xf32>
    %c0_3 = arith.constant 0 : index
    %c0_4 = arith.constant 0 : index
    %5 = vector.load %arg3[%c0_3, %c0_4] : memref<16x128xf32, #tpu.memory_space<vmem>>, vector<16x128xf32>
    %6 = arith.addf %4, %5 : vector<16x128xf32>
    %cst_5 = arith.constant dense<0.000000e+00> : vector<16xf32>
    %7 = vector.multi_reduction <add>, %6, %cst_5 [1] : vector<16x128xf32> to vector<16xf32>
    %8 = vector.shape_cast %7 : vector<16xf32> to vector<16x1xf32>
    %cst_6 = arith.constant 1.280000e+02 : f32
    %9 = vector.broadcast %cst_6 : f32 to vector<16x1xf32>
    %10 = arith.divf %8, %9 : vector<16x1xf32>
    %11 = vector.broadcast %10 : vector<16x1xf32> to vector<16x128xf32>
    %12 = arith.subf %6, %11 : vector<16x128xf32>
    %13 = arith.mulf %12, %12 : vector<16x128xf32>
    %cst_7 = arith.constant dense<0.000000e+00> : vector<16xf32>
    %14 = vector.multi_reduction <add>, %13, %cst_7 [1] : vector<16x128xf32> to vector<16xf32>
    %15 = vector.shape_cast %14 : vector<16xf32> to vector<16x1xf32>
    %cst_8 = arith.constant 1.280000e+02 : f32
    %16 = vector.broadcast %cst_8 : f32 to vector<16x1xf32>
    %17 = arith.divf %15, %16 : vector<16x1xf32>
    %cst_9 = arith.constant 9.99999974E-6 : f32
    %18 = vector.broadcast %cst_9 : f32 to vector<16x1xf32>
    %19 = arith.addf %17, %18 : vector<16x1xf32>
    %20 = math.rsqrt %19 : vector<16x1xf32>
    %21 = vector.broadcast %20 : vector<16x1xf32> to vector<16x128xf32>
    %22 = arith.mulf %12, %21 : vector<16x128xf32>
    %c0_10 = arith.constant 0 : index
    %c0_11 = arith.constant 0 : index
    %23 = vector.load %arg4[%c0_10, %c0_11] : memref<1x128xf32, #tpu.memory_space<vmem>>, vector<1x128xf32>
    %24 = vector.broadcast %23 : vector<1x128xf32> to vector<16x128xf32>
    %25 = arith.mulf %22, %24 : vector<16x128xf32>
    %c0_12 = arith.constant 0 : index
    %c0_13 = arith.constant 0 : index
    %26 = vector.load %arg5[%c0_12, %c0_13] : memref<1x128xf32, #tpu.memory_space<vmem>>, vector<1x128xf32>
    %27 = vector.broadcast %26 : vector<1x128xf32> to vector<16x128xf32>
    %28 = arith.addf %25, %27 : vector<16x128xf32>
    %c0_14 = arith.constant 0 : index
    %c0_15 = arith.constant 0 : index
    %29 = vector.load %arg6[%c0_14, %c0_15] : memref<16x128xf32, #tpu.memory_space<vmem>>, vector<16x128xf32>
    tpu.vector_store %arg6[%c0_14, %c0_15], %28 {strides = array<i32>} : memref<16x128xf32, #tpu.memory_space<vmem>>, vector<16x128xf32>,
    return
  }
  func.func @transform_0(%arg0: i32) -> (i32, i32) {
    %c0_i32 = arith.constant 0 : i32
    %c0_i32_0 = arith.constant 0 : i32
    return %arg0, %c0_i32 : i32, i32
  }
  func.func @transform_1(%arg0: i32) -> (i32, i32) {
    %c0_i32 = arith.constant 0 : i32
    %c0_i32_0 = arith.constant 0 : i32
    return %arg0, %c0_i32 : i32, i32
  }
  func.func @transform_2(%arg0: i32) -> (i32, i32) {
    %c0_i32 = arith.constant 0 : i32
    %c0_i32_0 = arith.constant 0 : i32
    return %arg0, %c0_i32 : i32, i32
  }
  func.func @transform_3(%arg0: i32) -> (i32, i32) {
    %c0_i32 = arith.constant 0 : i32
    %c0_i32_0 = arith.constant 0 : i32
    %c0_i32_1 = arith.constant 0 : i32
    return %c0_i32, %c0_i32_0 : i32, i32
  }
  func.func @transform_4(%arg0: i32) -> (i32, i32) {
    %c0_i32 = arith.constant 0 : i32
    %c0_i32_0 = arith.constant 0 : i32
    %c0_i32_1 = arith.constant 0 : i32
    return %c0_i32, %c0_i32_0 : i32, i32
  }
  func.func @transform_5(%arg0: i32) -> (i32, i32) {
    %c0_i32 = arith.constant 0 : i32
    %c0_i32_0 = arith.constant 0 : i32
    return %arg0, %c0_i32 : i32, i32
  }
}

module attributes {stable_mosaic.version = 11 : i64} {
  func.func @_linear_kernel(%arg0: i32, %arg1: i32, %arg2: i32, %arg3: memref<16x128xbf16, #tpu.memory_space<vmem>>, %arg4: memref<128x128xbf16, #tpu.memory_space<vmem>>, %arg5: memref<1x128xf32, #tpu.memory_space<vmem>>, %arg6: memref<16x128xf32, #tpu.memory_space<vmem>>, %arg7: memref<16x128xf32, #tpu.memory_space<vmem>>, %arg8: memref<16x128xf32, #tpu.memory_space<vmem>>) attributes {dimension_semantics = [#tpu.dimension_semantics<parallel>, #tpu.dimension_semantics<parallel>, #tpu.dimension_semantics<arbitrary>], iteration_bounds = array<i64: 1, 1, 1>, scalar_prefetch = 0 : i64, scratch_operands = 1 : i64, tpu.core_type = #tpu.core_type<tc>, window_params = [{transform_indices = @transform_0, window_bounds = array<i64: 16, 128>}, {transform_indices = @transform_1, window_bounds = array<i64: 128, 128>}, {transform_indices = @transform_2, window_bounds = array<i64: 1, 128>}, {transform_indices = @transform_3, window_bounds = array<i64: 16, 128>}, {transform_indices = @transform_4, window_bounds = array<i64: 16, 128>}]} {
    %c0_i32 = arith.constant 0 : i32
    %0 = arith.cmpi eq, %arg2, %c0_i32 : i32
    %1 = arith.extui %0 : i1 to i32
    %c0_i32_0 = arith.constant 0 : i32
    %2 = arith.cmpi ne, %1, %c0_i32_0 : i32
    scf.if %2 {
      %cst_10 = arith.constant 0.000000e+00 : f32
      %12 = vector.broadcast %cst_10 : f32 to vector<16x128xf32>
      %c0_11 = arith.constant 0 : index
      %c0_12 = arith.constant 0 : index
      %13 = vector.load %arg8[%c0_11, %c0_12] : memref<16x128xf32, #tpu.memory_space<vmem>>, vector<16x128xf32>
      tpu.vector_store %arg8[%c0_11, %c0_12], %12 {strides = array<i32>} : memref<16x128xf32, #tpu.memory_space<vmem>>, vector<16x128xf32>,
    } else {
    }
    %c0 = arith.constant 0 : index
    %c0_1 = arith.constant 0 : index
    %3 = vector.load %arg3[%c0, %c0_1] : memref<16x128xbf16, #tpu.memory_space<vmem>>, vector<16x128xbf16>
    %c0_2 = arith.constant 0 : index
    %c0_3 = arith.constant 0 : index
    %4 = vector.load %arg4[%c0_2, %c0_3] : memref<128x128xbf16, #tpu.memory_space<vmem>>, vector<128x128xbf16>
    %c0_4 = arith.constant 0 : index
    %c0_5 = arith.constant 0 : index
    %5 = vector.load %arg8[%c0_4, %c0_5] : memref<16x128xf32, #tpu.memory_space<vmem>>, vector<16x128xf32>
    %cst = arith.constant dense<0.000000e+00> : vector<16x128xf32>
    %6 = tpu.matmul %3, %4, %cst {dimension_numbers = #tpu.dot_dimension_numbers<[1], [0], [0], [1], [0, 0, 1, 1], [], []>} : vector<16x128xbf16>, vector<128x128xbf16>, vector<16x128xf32> -> vector<16x128xf32>
    %7 = arith.addf %5, %6 : vector<16x128xf32>
    %c0_6 = arith.constant 0 : index
    %c0_7 = arith.constant 0 : index
    %8 = vector.load %arg8[%c0_6, %c0_7] : memref<16x128xf32, #tpu.memory_space<vmem>>, vector<16x128xf32>
    tpu.vector_store %arg8[%c0_6, %c0_7], %7 {strides = array<i32>} : memref<16x128xf32, #tpu.memory_space<vmem>>, vector<16x128xf32>,
    %c0_i32_8 = arith.constant 0 : i32
    %9 = arith.cmpi eq, %arg2, %c0_i32_8 : i32
    %10 = arith.extui %9 : i1 to i32
    %c0_i32_9 = arith.constant 0 : i32
    %11 = arith.cmpi ne, %10, %c0_i32_9 : i32
    scf.if %11 {
      %c0_10 = arith.constant 0 : index
      %c0_11 = arith.constant 0 : index
      %12 = vector.load %arg8[%c0_10, %c0_11] : memref<16x128xf32, #tpu.memory_space<vmem>>, vector<16x128xf32>
      %c0_12 = arith.constant 0 : index
      %c0_13 = arith.constant 0 : index
      %13 = vector.load %arg5[%c0_12, %c0_13] : memref<1x128xf32, #tpu.memory_space<vmem>>, vector<1x128xf32>
      %14 = vector.broadcast %13 : vector<1x128xf32> to vector<16x128xf32>
      %15 = arith.addf %12, %14 : vector<16x128xf32>
      %c0_14 = arith.constant 0 : index
      %c0_15 = arith.constant 0 : index
      %16 = vector.load %arg6[%c0_14, %c0_15] : memref<16x128xf32, #tpu.memory_space<vmem>>, vector<16x128xf32>
      %17 = arith.addf %15, %16 : vector<16x128xf32>
      %c0_16 = arith.constant 0 : index
      %c0_17 = arith.constant 0 : index
      %18 = vector.load %arg7[%c0_16, %c0_17] : memref<16x128xf32, #tpu.memory_space<vmem>>, vector<16x128xf32>
      tpu.vector_store %arg7[%c0_16, %c0_17], %17 {strides = array<i32>} : memref<16x128xf32, #tpu.memory_space<vmem>>, vector<16x128xf32>,
    } else {
    }
    return
  }
  func.func @transform_0(%arg0: i32, %arg1: i32, %arg2: i32) -> (i32, i32) {
    %c0_i32 = arith.constant 0 : i32
    return %arg0, %arg2 : i32, i32
  }
  func.func @transform_1(%arg0: i32, %arg1: i32, %arg2: i32) -> (i32, i32) {
    %c0_i32 = arith.constant 0 : i32
    return %arg2, %arg1 : i32, i32
  }
  func.func @transform_2(%arg0: i32, %arg1: i32, %arg2: i32) -> (i32, i32) {
    %c0_i32 = arith.constant 0 : i32
    %c0_i32_0 = arith.constant 0 : i32
    return %c0_i32, %arg1 : i32, i32
  }
  func.func @transform_3(%arg0: i32, %arg1: i32, %arg2: i32) -> (i32, i32) {
    %c0_i32 = arith.constant 0 : i32
    return %arg0, %arg1 : i32, i32
  }
  func.func @transform_4(%arg0: i32, %arg1: i32, %arg2: i32) -> (i32, i32) {
    %c0_i32 = arith.constant 0 : i32
    return %arg0, %arg1 : i32, i32
  }
}

module attributes {stable_mosaic.version = 11 : i64} {
  func.func @_linear_kernel(%arg0: i32, %arg1: i32, %arg2: i32, %arg3: memref<16x128xf32, #tpu.memory_space<vmem>>, %arg4: memref<1x128xf32, #tpu.memory_space<vmem>>, %arg5: memref<1x128xf32, #tpu.memory_space<vmem>>, %arg6: memref<128x384xbf16, #tpu.memory_space<vmem>>, %arg7: memref<1x384xf32, #tpu.memory_space<vmem>>, %arg8: memref<16x384xbf16, #tpu.memory_space<vmem>>, %arg9: memref<16x384xf32, #tpu.memory_space<vmem>>) attributes {dimension_semantics = [#tpu.dimension_semantics<parallel>, #tpu.dimension_semantics<parallel>, #tpu.dimension_semantics<arbitrary>], iteration_bounds = array<i64: 1, 1, 1>, scalar_prefetch = 0 : i64, scratch_operands = 1 : i64, tpu.core_type = #tpu.core_type<tc>, window_params = [{transform_indices = @transform_0, window_bounds = array<i64: 16, 128>}, {transform_indices = @transform_1, window_bounds = array<i64: 1, 128>}, {transform_indices = @transform_2, window_bounds = array<i64: 1, 128>}, {transform_indices = @transform_3, window_bounds = array<i64: 128, 384>}, {transform_indices = @transform_4, window_bounds = array<i64: 1, 384>}, {transform_indices = @transform_5, window_bounds = array<i64: 16, 384>}]} {
    %c0_i32 = arith.constant 0 : i32
    %0 = arith.cmpi eq, %arg2, %c0_i32 : i32
    %1 = arith.extui %0 : i1 to i32
    %c0_i32_0 = arith.constant 0 : i32
    %2 = arith.cmpi ne, %1, %c0_i32_0 : i32
    scf.if %2 {
      %cst_19 = arith.constant 0.000000e+00 : f32
      %35 = vector.broadcast %cst_19 : f32 to vector<16x384xf32>
      %c0_20 = arith.constant 0 : index
      %c0_21 = arith.constant 0 : index
      %36 = vector.load %arg9[%c0_20, %c0_21] : memref<16x384xf32, #tpu.memory_space<vmem>>, vector<16x384xf32>
      tpu.vector_store %arg9[%c0_20, %c0_21], %35 {strides = array<i32>} : memref<16x384xf32, #tpu.memory_space<vmem>>, vector<16x384xf32>,
    } else {
    }
    %c0 = arith.constant 0 : index
    %c0_1 = arith.constant 0 : index
    %3 = vector.load %arg3[%c0, %c0_1] : memref<16x128xf32, #tpu.memory_space<vmem>>, vector<16x128xf32>
    %cst = arith.constant dense<0.000000e+00> : vector<16xf32>
    %4 = vector.multi_reduction <add>, %3, %cst [1] : vector<16x128xf32> to vector<16xf32>
    %5 = vector.shape_cast %4 : vector<16xf32> to vector<16x1xf32>
    %cst_2 = arith.constant 1.280000e+02 : f32
    %6 = vector.broadcast %cst_2 : f32 to vector<16x1xf32>
    %7 = arith.divf %5, %6 : vector<16x1xf32>
    %8 = vector.broadcast %7 : vector<16x1xf32> to vector<16x128xf32>
    %9 = arith.subf %3, %8 : vector<16x128xf32>
    %10 = arith.mulf %9, %9 : vector<16x128xf32>
    %cst_3 = arith.constant dense<0.000000e+00> : vector<16xf32>
    %11 = vector.multi_reduction <add>, %10, %cst_3 [1] : vector<16x128xf32> to vector<16xf32>
    %12 = vector.shape_cast %11 : vector<16xf32> to vector<16x1xf32>
    %cst_4 = arith.constant 1.280000e+02 : f32
    %13 = vector.broadcast %cst_4 : f32 to vector<16x1xf32>
    %14 = arith.divf %12, %13 : vector<16x1xf32>
    %cst_5 = arith.constant 9.99999974E-6 : f32
    %15 = vector.broadcast %cst_5 : f32 to vector<16x1xf32>
    %16 = arith.addf %14, %15 : vector<16x1xf32>
    %17 = math.rsqrt %16 : vector<16x1xf32>
    %18 = vector.broadcast %17 : vector<16x1xf32> to vector<16x128xf32>
    %19 = arith.mulf %9, %18 : vector<16x128xf32>
    %c0_6 = arith.constant 0 : index
    %c0_7 = arith.constant 0 : index
    %20 = vector.load %arg4[%c0_6, %c0_7] : memref<1x128xf32, #tpu.memory_space<vmem>>, vector<1x128xf32>
    %21 = vector.broadcast %20 : vector<1x128xf32> to vector<16x128xf32>
    %22 = arith.mulf %19, %21 : vector<16x128xf32>
    %c0_8 = arith.constant 0 : index
    %c0_9 = arith.constant 0 : index
    %23 = vector.load %arg5[%c0_8, %c0_9] : memref<1x128xf32, #tpu.memory_space<vmem>>, vector<1x128xf32>
    %24 = vector.broadcast %23 : vector<1x128xf32> to vector<16x128xf32>
    %25 = arith.addf %22, %24 : vector<16x128xf32>
    %26 = arith.truncf %25 : vector<16x128xf32> to vector<16x128xbf16>
    %c0_10 = arith.constant 0 : index
    %c0_11 = arith.constant 0 : index
    %27 = vector.load %arg6[%c0_10, %c0_11] : memref<128x384xbf16, #tpu.memory_space<vmem>>, vector<128x384xbf16>
    %c0_12 = arith.constant 0 : index
    %c0_13 = arith.constant 0 : index
    %28 = vector.load %arg9[%c0_12, %c0_13] : memref<16x384xf32, #tpu.memory_space<vmem>>, vector<16x384xf32>
    %cst_14 = arith.constant dense<0.000000e+00> : vector<16x384xf32>
    %29 = tpu.matmul %26, %27, %cst_14 {dimension_numbers = #tpu.dot_dimension_numbers<[1], [0], [0], [1], [0, 0, 1, 1], [], []>} : vector<16x128xbf16>, vector<128x384xbf16>, vector<16x384xf32> -> vector<16x384xf32>
    %30 = arith.addf %28, %29 : vector<16x384xf32>
    %c0_15 = arith.constant 0 : index
    %c0_16 = arith.constant 0 : index
    %31 = vector.load %arg9[%c0_15, %c0_16] : memref<16x384xf32, #tpu.memory_space<vmem>>, vector<16x384xf32>
    tpu.vector_store %arg9[%c0_15, %c0_16], %30 {strides = array<i32>} : memref<16x384xf32, #tpu.memory_space<vmem>>, vector<16x384xf32>,
    %c0_i32_17 = arith.constant 0 : i32
    %32 = arith.cmpi eq, %arg2, %c0_i32_17 : i32
    %33 = arith.extui %32 : i1 to i32
    %c0_i32_18 = arith.constant 0 : i32
    %34 = arith.cmpi ne, %33, %c0_i32_18 : i32
    scf.if %34 {
      %c0_19 = arith.constant 0 : index
      %c0_20 = arith.constant 0 : index
      %35 = vector.load %arg9[%c0_19, %c0_20] : memref<16x384xf32, #tpu.memory_space<vmem>>, vector<16x384xf32>
      %c0_21 = arith.constant 0 : index
      %c0_22 = arith.constant 0 : index
      %36 = vector.load %arg7[%c0_21, %c0_22] : memref<1x384xf32, #tpu.memory_space<vmem>>, vector<1x384xf32>
      %37 = vector.broadcast %36 : vector<1x384xf32> to vector<16x384xf32>
      %38 = arith.addf %35, %37 : vector<16x384xf32>
      %39 = arith.truncf %38 : vector<16x384xf32> to vector<16x384xbf16>
      %c0_23 = arith.constant 0 : index
      %c0_24 = arith.constant 0 : index
      %40 = vector.load %arg8[%c0_23, %c0_24] : memref<16x384xbf16, #tpu.memory_space<vmem>>, vector<16x384xbf16>
      tpu.vector_store %arg8[%c0_23, %c0_24], %39 {strides = array<i32>} : memref<16x384xbf16, #tpu.memory_space<vmem>>, vector<16x384xbf16>,
    } else {
    }
    return
  }
  func.func @transform_0(%arg0: i32, %arg1: i32, %arg2: i32) -> (i32, i32) {
    %c0_i32 = arith.constant 0 : i32
    return %arg0, %arg2 : i32, i32
  }
  func.func @transform_1(%arg0: i32, %arg1: i32, %arg2: i32) -> (i32, i32) {
    %c0_i32 = arith.constant 0 : i32
    %c0_i32_0 = arith.constant 0 : i32
    return %c0_i32, %arg2 : i32, i32
  }
  func.func @transform_2(%arg0: i32, %arg1: i32, %arg2: i32) -> (i32, i32) {
    %c0_i32 = arith.constant 0 : i32
    %c0_i32_0 = arith.constant 0 : i32
    return %c0_i32, %arg2 : i32, i32
  }
  func.func @transform_3(%arg0: i32, %arg1: i32, %arg2: i32) -> (i32, i32) {
    %c0_i32 = arith.constant 0 : i32
    return %arg2, %arg1 : i32, i32
  }
  func.func @transform_4(%arg0: i32, %arg1: i32, %arg2: i32) -> (i32, i32) {
    %c0_i32 = arith.constant 0 : i32
    %c0_i32_0 = arith.constant 0 : i32
    return %c0_i32, %arg1 : i32, i32
  }
  func.func @transform_5(%arg0: i32, %arg1: i32, %arg2: i32) -> (i32, i32) {
    %c0_i32 = arith.constant 0 : i32
    return %arg0, %arg1 : i32, i32
  }
}

module attributes {stable_mosaic.version = 11 : i64} {
  func.func @_attention_kernel(%arg0: i32, %arg1: i32, %arg2: memref<8x128xbf16, #tpu.memory_space<vmem>>, %arg3: memref<8x128xbf16, #tpu.memory_space<vmem>>, %arg4: memref<8x128xbf16, #tpu.memory_space<vmem>>, %arg5: memref<1x1x8x8xf32, #tpu.memory_space<vmem>>, %arg6: memref<8x128xbf16, #tpu.memory_space<vmem>>) attributes {dimension_semantics = [#tpu.dimension_semantics<parallel>, #tpu.dimension_semantics<parallel>], iteration_bounds = array<i64: 2, 1>, scalar_prefetch = 0 : i64, scratch_operands = 0 : i64, tpu.core_type = #tpu.core_type<tc>, window_params = [{transform_indices = @transform_0, window_bounds = array<i64: 8, 128>}, {transform_indices = @transform_1, window_bounds = array<i64: 8, 128>}, {transform_indices = @transform_2, window_bounds = array<i64: 8, 128>}, {transform_indices = @transform_3, window_bounds = array<i64: 1, 1, 8, 8>}, {transform_indices = @transform_4, window_bounds = array<i64: 8, 128>}]} {
    %c0 = arith.constant 0 : index
    %c0_0 = arith.constant 0 : index
    %c0_1 = arith.constant 0 : index
    %c0_2 = arith.constant 0 : index
    %0 = vector.load %arg5[%c0, %c0_0, %c0_1, %c0_2] : memref<1x1x8x8xf32, #tpu.memory_space<vmem>>, vector<1x1x8x8xf32>
    %1 = vector.shape_cast %0 : vector<1x1x8x8xf32> to vector<8x8xf32>
    %c0_3 = arith.constant 0 : index
    %c0_4 = arith.constant 0 : index
    %2 = vector.load %arg2[%c0_3, %c0_4] : memref<8x128xbf16, #tpu.memory_space<vmem>>, vector<8x32xbf16>
    %c0_5 = arith.constant 0 : index
    %c0_6 = arith.constant 0 : index
    %3 = vector.load %arg3[%c0_5, %c0_6] : memref<8x128xbf16, #tpu.memory_space<vmem>>, vector<8x32xbf16>
    %c0_7 = arith.constant 0 : index
    %c0_8 = arith.constant 0 : index
    %4 = vector.load %arg4[%c0_7, %c0_8] : memref<8x128xbf16, #tpu.memory_space<vmem>>, vector<8x32xbf16>
    %cst = arith.constant dense<0.000000e+00> : vector<8x8xf32>
    %5 = tpu.matmul %2, %3, %cst {dimension_numbers = #tpu.dot_dimension_numbers<[1], [1], [0], [0], [0, 0, 1, 0], [], []>} : vector<8x32xbf16>, vector<8x32xbf16>, vector<8x8xf32> -> vector<8x8xf32>
    %cst_9 = arith.constant 0.176776692 : f32
    %6 = vector.broadcast %cst_9 : f32 to vector<8x8xf32>
    %7 = arith.mulf %5, %6 : vector<8x8xf32>
    %8 = arith.addf %7, %1 : vector<8x8xf32>
    %cst_10 = arith.constant dense<0xFF800000> : vector<8xf32>
    %9 = vector.multi_reduction <maximumf>, %8, %cst_10 [1] : vector<8x8xf32> to vector<8xf32>
    %10 = vector.shape_cast %9 : vector<8xf32> to vector<8x1xf32>
    %11 = vector.broadcast %10 : vector<8x1xf32> to vector<8x8xf32>
    %12 = arith.subf %8, %11 : vector<8x8xf32>
    %13 = math.exp %12 : vector<8x8xf32>
    %cst_11 = arith.constant dense<0.000000e+00> : vector<8xf32>
    %14 = vector.multi_reduction <add>, %13, %cst_11 [1] : vector<8x8xf32> to vector<8xf32>
    %15 = vector.shape_cast %14 : vector<8xf32> to vector<8x1xf32>
    %16 = tpu.reciprocal %15 {approx = true} : vector<8x1xf32> -> vector<8x1xf32>
    %17 = vector.broadcast %16 : vector<8x1xf32> to vector<8x8xf32>
    %18 = arith.mulf %13, %17 : vector<8x8xf32>
    %19 = arith.truncf %18 : vector<8x8xf32> to vector<8x8xbf16>
    %cst_12 = arith.constant dense<0.000000e+00> : vector<8x32xf32>
    %20 = tpu.matmul %19, %4, %cst_12 {dimension_numbers = #tpu.dot_dimension_numbers<[1], [0], [0], [1], [0, 0, 1, 1], [], []>} : vector<8x8xbf16>, vector<8x32xbf16>, vector<8x32xf32> -> vector<8x32xf32>
    %c0_13 = arith.constant 0 : index
    %c32 = arith.constant 32 : index
    %21 = vector.load %arg2[%c0_13, %c32] : memref<8x128xbf16, #tpu.memory_space<vmem>>, vector<8x32xbf16>
    %c0_14 = arith.constant 0 : index
    %c32_15 = arith.constant 32 : index
    %22 = vector.load %arg3[%c0_14, %c32_15] : memref<8x128xbf16, #tpu.memory_space<vmem>>, vector<8x32xbf16>
    %c0_16 = arith.constant 0 : index
    %c32_17 = arith.constant 32 : index
    %23 = vector.load %arg4[%c0_16, %c32_17] : memref<8x128xbf16, #tpu.memory_space<vmem>>, vector<8x32xbf16>
    %cst_18 = arith.constant dense<0.000000e+00> : vector<8x8xf32>
    %24 = tpu.matmul %21, %22, %cst_18 {dimension_numbers = #tpu.dot_dimension_numbers<[1], [1], [0], [0], [0, 0, 1, 0], [], []>} : vector<8x32xbf16>, vector<8x32xbf16>, vector<8x8xf32> -> vector<8x8xf32>
    %cst_19 = arith.constant 0.176776692 : f32
    %25 = vector.broadcast %cst_19 : f32 to vector<8x8xf32>
    %26 = arith.mulf %24, %25 : vector<8x8xf32>
    %27 = arith.addf %26, %1 : vector<8x8xf32>
    %cst_20 = arith.constant dense<0xFF800000> : vector<8xf32>
    %28 = vector.multi_reduction <maximumf>, %27, %cst_20 [1] : vector<8x8xf32> to vector<8xf32>
    %29 = vector.shape_cast %28 : vector<8xf32> to vector<8x1xf32>
    %30 = vector.broadcast %29 : vector<8x1xf32> to vector<8x8xf32>
    %31 = arith.subf %27, %30 : vector<8x8xf32>
    %32 = math.exp %31 : vector<8x8xf32>
    %cst_21 = arith.constant dense<0.000000e+00> : vector<8xf32>
    %33 = vector.multi_reduction <add>, %32, %cst_21 [1] : vector<8x8xf32> to vector<8xf32>
    %34 = vector.shape_cast %33 : vector<8xf32> to vector<8x1xf32>
    %35 = tpu.reciprocal %34 {approx = true} : vector<8x1xf32> -> vector<8x1xf32>
    %36 = vector.broadcast %35 : vector<8x1xf32> to vector<8x8xf32>
    %37 = arith.mulf %32, %36 : vector<8x8xf32>
    %38 = arith.truncf %37 : vector<8x8xf32> to vector<8x8xbf16>
    %cst_22 = arith.constant dense<0.000000e+00> : vector<8x32xf32>
    %39 = tpu.matmul %38, %23, %cst_22 {dimension_numbers = #tpu.dot_dimension_numbers<[1], [0], [0], [1], [0, 0, 1, 1], [], []>} : vector<8x8xbf16>, vector<8x32xbf16>, vector<8x32xf32> -> vector<8x32xf32>
    %c0_23 = arith.constant 0 : index
    %c64 = arith.constant 64 : index
    %40 = vector.load %arg2[%c0_23, %c64] : memref<8x128xbf16, #tpu.memory_space<vmem>>, vector<8x32xbf16>
    %c0_24 = arith.constant 0 : index
    %c64_25 = arith.constant 64 : index
    %41 = vector.load %arg3[%c0_24, %c64_25] : memref<8x128xbf16, #tpu.memory_space<vmem>>, vector<8x32xbf16>
    %c0_26 = arith.constant 0 : index
    %c64_27 = arith.constant 64 : index
    %42 = vector.load %arg4[%c0_26, %c64_27] : memref<8x128xbf16, #tpu.memory_space<vmem>>, vector<8x32xbf16>
    %cst_28 = arith.constant dense<0.000000e+00> : vector<8x8xf32>
    %43 = tpu.matmul %40, %41, %cst_28 {dimension_numbers = #tpu.dot_dimension_numbers<[1], [1], [0], [0], [0, 0, 1, 0], [], []>} : vector<8x32xbf16>, vector<8x32xbf16>, vector<8x8xf32> -> vector<8x8xf32>
    %cst_29 = arith.constant 0.176776692 : f32
    %44 = vector.broadcast %cst_29 : f32 to vector<8x8xf32>
    %45 = arith.mulf %43, %44 : vector<8x8xf32>
    %46 = arith.addf %45, %1 : vector<8x8xf32>
    %cst_30 = arith.constant dense<0xFF800000> : vector<8xf32>
    %47 = vector.multi_reduction <maximumf>, %46, %cst_30 [1] : vector<8x8xf32> to vector<8xf32>
    %48 = vector.shape_cast %47 : vector<8xf32> to vector<8x1xf32>
    %49 = vector.broadcast %48 : vector<8x1xf32> to vector<8x8xf32>
    %50 = arith.subf %46, %49 : vector<8x8xf32>
    %51 = math.exp %50 : vector<8x8xf32>
    %cst_31 = arith.constant dense<0.000000e+00> : vector<8xf32>
    %52 = vector.multi_reduction <add>, %51, %cst_31 [1] : vector<8x8xf32> to vector<8xf32>
    %53 = vector.shape_cast %52 : vector<8xf32> to vector<8x1xf32>
    %54 = tpu.reciprocal %53 {approx = true} : vector<8x1xf32> -> vector<8x1xf32>
    %55 = vector.broadcast %54 : vector<8x1xf32> to vector<8x8xf32>
    %56 = arith.mulf %51, %55 : vector<8x8xf32>
    %57 = arith.truncf %56 : vector<8x8xf32> to vector<8x8xbf16>
    %cst_32 = arith.constant dense<0.000000e+00> : vector<8x32xf32>
    %58 = tpu.matmul %57, %42, %cst_32 {dimension_numbers = #tpu.dot_dimension_numbers<[1], [0], [0], [1], [0, 0, 1, 1], [], []>} : vector<8x8xbf16>, vector<8x32xbf16>, vector<8x32xf32> -> vector<8x32xf32>
    %c0_33 = arith.constant 0 : index
    %c96 = arith.constant 96 : index
    %59 = vector.load %arg2[%c0_33, %c96] : memref<8x128xbf16, #tpu.memory_space<vmem>>, vector<8x32xbf16>
    %c0_34 = arith.constant 0 : index
    %c96_35 = arith.constant 96 : index
    %60 = vector.load %arg3[%c0_34, %c96_35] : memref<8x128xbf16, #tpu.memory_space<vmem>>, vector<8x32xbf16>
    %c0_36 = arith.constant 0 : index
    %c96_37 = arith.constant 96 : index
    %61 = vector.load %arg4[%c0_36, %c96_37] : memref<8x128xbf16, #tpu.memory_space<vmem>>, vector<8x32xbf16>
    %cst_38 = arith.constant dense<0.000000e+00> : vector<8x8xf32>
    %62 = tpu.matmul %59, %60, %cst_38 {dimension_numbers = #tpu.dot_dimension_numbers<[1], [1], [0], [0], [0, 0, 1, 0], [], []>} : vector<8x32xbf16>, vector<8x32xbf16>, vector<8x8xf32> -> vector<8x8xf32>
    %cst_39 = arith.constant 0.176776692 : f32
    %63 = vector.broadcast %cst_39 : f32 to vector<8x8xf32>
    %64 = arith.mulf %62, %63 : vector<8x8xf32>
    %65 = arith.addf %64, %1 : vector<8x8xf32>
    %cst_40 = arith.constant dense<0xFF800000> : vector<8xf32>
    %66 = vector.multi_reduction <maximumf>, %65, %cst_40 [1] : vector<8x8xf32> to vector<8xf32>
    %67 = vector.shape_cast %66 : vector<8xf32> to vector<8x1xf32>
    %68 = vector.broadcast %67 : vector<8x1xf32> to vector<8x8xf32>
    %69 = arith.subf %65, %68 : vector<8x8xf32>
    %70 = math.exp %69 : vector<8x8xf32>
    %cst_41 = arith.constant dense<0.000000e+00> : vector<8xf32>
    %71 = vector.multi_reduction <add>, %70, %cst_41 [1] : vector<8x8xf32> to vector<8xf32>
    %72 = vector.shape_cast %71 : vector<8xf32> to vector<8x1xf32>
    %73 = tpu.reciprocal %72 {approx = true} : vector<8x1xf32> -> vector<8x1xf32>
    %74 = vector.broadcast %73 : vector<8x1xf32> to vector<8x8xf32>
    %75 = arith.mulf %70, %74 : vector<8x8xf32>
    %76 = arith.truncf %75 : vector<8x8xf32> to vector<8x8xbf16>
    %cst_42 = arith.constant dense<0.000000e+00> : vector<8x32xf32>
    %77 = tpu.matmul %76, %61, %cst_42 {dimension_numbers = #tpu.dot_dimension_numbers<[1], [0], [0], [1], [0, 0, 1, 1], [], []>} : vector<8x8xbf16>, vector<8x32xbf16>, vector<8x32xf32> -> vector<8x32xf32>
    %78 = tpu.concatenate %20, %39, %58, %77 in 1 : vector<8x32xf32>, vector<8x32xf32>, vector<8x32xf32>, vector<8x32xf32> -> vector<8x128xf32>
    %79 = arith.truncf %78 : vector<8x128xf32> to vector<8x128xbf16>
    %c0_43 = arith.constant 0 : index
    %c0_44 = arith.constant 0 : index
    %80 = vector.load %arg6[%c0_43, %c0_44] : memref<8x128xbf16, #tpu.memory_space<vmem>>, vector<8x128xbf16>
    tpu.vector_store %arg6[%c0_43, %c0_44], %79 {strides = array<i32>} : memref<8x128xbf16, #tpu.memory_space<vmem>>, vector<8x128xbf16>,
    return
  }
  func.func @transform_0(%arg0: i32, %arg1: i32) -> (i32, i32) {
    %c0_i32 = arith.constant 0 : i32
    return %arg0, %arg1 : i32, i32
  }
  func.func @transform_1(%arg0: i32, %arg1: i32) -> (i32, i32) {
    %c1_i32 = arith.constant 1 : i32
    %0 = arith.addi %arg1, %c1_i32 : i32
    %c0_i32 = arith.constant 0 : i32
    return %arg0, %0 : i32, i32
  }
  func.func @transform_2(%arg0: i32, %arg1: i32) -> (i32, i32) {
    %c2_i32 = arith.constant 2 : i32
    %0 = arith.addi %arg1, %c2_i32 : i32
    %c0_i32 = arith.constant 0 : i32
    return %arg0, %0 : i32, i32
  }
  func.func @transform_3(%arg0: i32, %arg1: i32) -> (i32, i32, i32, i32) {
    %c0_i32 = arith.constant 0 : i32
    %c0_i32_0 = arith.constant 0 : i32
    %c0_i32_1 = arith.constant 0 : i32
    %c0_i32_2 = arith.constant 0 : i32
    return %arg0, %c0_i32, %c0_i32_0, %c0_i32_1 : i32, i32, i32, i32
  }
  func.func @transform_4(%arg0: i32, %arg1: i32) -> (i32, i32) {
    %c0_i32 = arith.constant 0 : i32
    return %arg0, %arg1 : i32, i32
  }
}

module attributes {stable_mosaic.version = 11 : i64} {
  func.func @_linear_kernel(%arg0: i32, %arg1: i32, %arg2: i32, %arg3: memref<16x128xf32, #tpu.memory_space<vmem>>, %arg4: memref<1x128xf32, #tpu.memory_space<vmem>>, %arg5: memref<1x128xf32, #tpu.memory_space<vmem>>, %arg6: memref<128x128xbf16, #tpu.memory_space<vmem>>, %arg7: memref<1x128xf32, #tpu.memory_space<vmem>>, %arg8: memref<16x128xf32, #tpu.memory_space<vmem>>, %arg9: memref<16x128xf32, #tpu.memory_space<vmem>>) attributes {dimension_semantics = [#tpu.dimension_semantics<parallel>, #tpu.dimension_semantics<parallel>, #tpu.dimension_semantics<arbitrary>], iteration_bounds = array<i64: 1, 1, 1>, scalar_prefetch = 0 : i64, scratch_operands = 1 : i64, tpu.core_type = #tpu.core_type<tc>, window_params = [{transform_indices = @transform_0, window_bounds = array<i64: 16, 128>}, {transform_indices = @transform_1, window_bounds = array<i64: 1, 128>}, {transform_indices = @transform_2, window_bounds = array<i64: 1, 128>}, {transform_indices = @transform_3, window_bounds = array<i64: 128, 128>}, {transform_indices = @transform_4, window_bounds = array<i64: 1, 128>}, {transform_indices = @transform_5, window_bounds = array<i64: 16, 128>}]} {
    %c0_i32 = arith.constant 0 : i32
    %0 = arith.cmpi eq, %arg2, %c0_i32 : i32
    %1 = arith.extui %0 : i1 to i32
    %c0_i32_0 = arith.constant 0 : i32
    %2 = arith.cmpi ne, %1, %c0_i32_0 : i32
    scf.if %2 {
      %cst_19 = arith.constant 0.000000e+00 : f32
      %35 = vector.broadcast %cst_19 : f32 to vector<16x128xf32>
      %c0_20 = arith.constant 0 : index
      %c0_21 = arith.constant 0 : index
      %36 = vector.load %arg9[%c0_20, %c0_21] : memref<16x128xf32, #tpu.memory_space<vmem>>, vector<16x128xf32>
      tpu.vector_store %arg9[%c0_20, %c0_21], %35 {strides = array<i32>} : memref<16x128xf32, #tpu.memory_space<vmem>>, vector<16x128xf32>,
    } else {
    }
    %c0 = arith.constant 0 : index
    %c0_1 = arith.constant 0 : index
    %3 = vector.load %arg3[%c0, %c0_1] : memref<16x128xf32, #tpu.memory_space<vmem>>, vector<16x128xf32>
    %cst = arith.constant dense<0.000000e+00> : vector<16xf32>
    %4 = vector.multi_reduction <add>, %3, %cst [1] : vector<16x128xf32> to vector<16xf32>
    %5 = vector.shape_cast %4 : vector<16xf32> to vector<16x1xf32>
    %cst_2 = arith.constant 1.280000e+02 : f32
    %6 = vector.broadcast %cst_2 : f32 to vector<16x1xf32>
    %7 = arith.divf %5, %6 : vector<16x1xf32>
    %8 = vector.broadcast %7 : vector<16x1xf32> to vector<16x128xf32>
    %9 = arith.subf %3, %8 : vector<16x128xf32>
    %10 = arith.mulf %9, %9 : vector<16x128xf32>
    %cst_3 = arith.constant dense<0.000000e+00> : vector<16xf32>
    %11 = vector.multi_reduction <add>, %10, %cst_3 [1] : vector<16x128xf32> to vector<16xf32>
    %12 = vector.shape_cast %11 : vector<16xf32> to vector<16x1xf32>
    %cst_4 = arith.constant 1.280000e+02 : f32
    %13 = vector.broadcast %cst_4 : f32 to vector<16x1xf32>
    %14 = arith.divf %12, %13 : vector<16x1xf32>
    %cst_5 = arith.constant 9.99999974E-6 : f32
    %15 = vector.broadcast %cst_5 : f32 to vector<16x1xf32>
    %16 = arith.addf %14, %15 : vector<16x1xf32>
    %17 = math.rsqrt %16 : vector<16x1xf32>
    %18 = vector.broadcast %17 : vector<16x1xf32> to vector<16x128xf32>
    %19 = arith.mulf %9, %18 : vector<16x128xf32>
    %c0_6 = arith.constant 0 : index
    %c0_7 = arith.constant 0 : index
    %20 = vector.load %arg4[%c0_6, %c0_7] : memref<1x128xf32, #tpu.memory_space<vmem>>, vector<1x128xf32>
    %21 = vector.broadcast %20 : vector<1x128xf32> to vector<16x128xf32>
    %22 = arith.mulf %19, %21 : vector<16x128xf32>
    %c0_8 = arith.constant 0 : index
    %c0_9 = arith.constant 0 : index
    %23 = vector.load %arg5[%c0_8, %c0_9] : memref<1x128xf32, #tpu.memory_space<vmem>>, vector<1x128xf32>
    %24 = vector.broadcast %23 : vector<1x128xf32> to vector<16x128xf32>
    %25 = arith.addf %22, %24 : vector<16x128xf32>
    %26 = arith.truncf %25 : vector<16x128xf32> to vector<16x128xbf16>
    %c0_10 = arith.constant 0 : index
    %c0_11 = arith.constant 0 : index
    %27 = vector.load %arg6[%c0_10, %c0_11] : memref<128x128xbf16, #tpu.memory_space<vmem>>, vector<128x128xbf16>
    %c0_12 = arith.constant 0 : index
    %c0_13 = arith.constant 0 : index
    %28 = vector.load %arg9[%c0_12, %c0_13] : memref<16x128xf32, #tpu.memory_space<vmem>>, vector<16x128xf32>
    %cst_14 = arith.constant dense<0.000000e+00> : vector<16x128xf32>
    %29 = tpu.matmul %26, %27, %cst_14 {dimension_numbers = #tpu.dot_dimension_numbers<[1], [0], [0], [1], [0, 0, 1, 1], [], []>} : vector<16x128xbf16>, vector<128x128xbf16>, vector<16x128xf32> -> vector<16x128xf32>
    %30 = arith.addf %28, %29 : vector<16x128xf32>
    %c0_15 = arith.constant 0 : index
    %c0_16 = arith.constant 0 : index
    %31 = vector.load %arg9[%c0_15, %c0_16] : memref<16x128xf32, #tpu.memory_space<vmem>>, vector<16x128xf32>
    tpu.vector_store %arg9[%c0_15, %c0_16], %30 {strides = array<i32>} : memref<16x128xf32, #tpu.memory_space<vmem>>, vector<16x128xf32>,
    %c0_i32_17 = arith.constant 0 : i32
    %32 = arith.cmpi eq, %arg2, %c0_i32_17 : i32
    %33 = arith.extui %32 : i1 to i32
    %c0_i32_18 = arith.constant 0 : i32
    %34 = arith.cmpi ne, %33, %c0_i32_18 : i32
    scf.if %34 {
      %c0_19 = arith.constant 0 : index
      %c0_20 = arith.constant 0 : index
      %35 = vector.load %arg9[%c0_19, %c0_20] : memref<16x128xf32, #tpu.memory_space<vmem>>, vector<16x128xf32>
      %c0_21 = arith.constant 0 : index
      %c0_22 = arith.constant 0 : index
      %36 = vector.load %arg7[%c0_21, %c0_22] : memref<1x128xf32, #tpu.memory_space<vmem>>, vector<1x128xf32>
      %37 = vector.broadcast %36 : vector<1x128xf32> to vector<16x128xf32>
      %38 = arith.addf %35, %37 : vector<16x128xf32>
      %cst_23 = arith.constant 5.000000e-01 : f32
      %39 = vector.broadcast %cst_23 : f32 to vector<16x128xf32>
      %40 = arith.mulf %39, %38 : vector<16x128xf32>
      %cst_24 = arith.constant 0.707106769 : f32
      %41 = vector.broadcast %cst_24 : f32 to vector<16x128xf32>
      %42 = arith.mulf %38, %41 : vector<16x128xf32>
      %43 = math.absf %42 : vector<16x128xf32>
      %cst_25 = arith.constant 0.327591091 : f32
      %44 = vector.broadcast %cst_25 : f32 to vector<16x128xf32>
      %45 = arith.mulf %44, %43 : vector<16x128xf32>
      %cst_26 = arith.constant 1.000000e+00 : f32
      %46 = vector.broadcast %cst_26 : f32 to vector<16x128xf32>
      %47 = arith.addf %46, %45 : vector<16x128xf32>
      %cst_27 = arith.constant 1.000000e+00 : f32
      %48 = vector.broadcast %cst_27 : f32 to vector<16x128xf32>
      %49 = arith.divf %48, %47 : vector<16x128xf32>
      %cst_28 = arith.constant 1.06140542 : f32
      %50 = vector.broadcast %cst_28 : f32 to vector<16x128xf32>
      %51 = arith.mulf %49, %50 : vector<16x128xf32>
      %cst_29 = arith.constant -1.45315206 : f32
      %52 = vector.broadcast %cst_29 : f32 to vector<16x128xf32>
      %53 = arith.addf %52, %51 : vector<16x128xf32>
      %54 = arith.mulf %49, %53 : vector<16x128xf32>
      %cst_30 = arith.constant 1.42141378 : f32
      %55 = vector.broadcast %cst_30 : f32 to vector<16x128xf32>
      %56 = arith.addf %55, %54 : vector<16x128xf32>
      %57 = arith.mulf %49, %56 : vector<16x128xf32>
      %cst_31 = arith.constant -0.284496725 : f32
      %58 = vector.broadcast %cst_31 : f32 to vector<16x128xf32>
      %59 = arith.addf %58, %57 : vector<16x128xf32>
      %60 = arith.mulf %49, %59 : vector<16x128xf32>
      %cst_32 = arith.constant 0.254829586 : f32
      %61 = vector.broadcast %cst_32 : f32 to vector<16x128xf32>
      %62 = arith.addf %61, %60 : vector<16x128xf32>
      %63 = arith.mulf %49, %62 : vector<16x128xf32>
      %cst_33 = arith.constant 0.000000e+00 : f32
      %64 = vector.broadcast %cst_33 : f32 to vector<16x128xf32>
      %65 = arith.subf %64, %43 : vector<16x128xf32>
      %66 = arith.mulf %65, %43 : vector<16x128xf32>
      %67 = math.exp %66 : vector<16x128xf32>
      %68 = arith.mulf %63, %67 : vector<16x128xf32>
      %cst_34 = arith.constant 1.000000e+00 : f32
      %69 = vector.broadcast %cst_34 : f32 to vector<16x128xf32>
      %70 = arith.subf %69, %68 : vector<16x128xf32>
      %cst_35 = arith.constant 0.000000e+00 : f32
      %71 = vector.broadcast %cst_35 : f32 to vector<16x128xf32>
      %72 = arith.cmpf oge, %42, %71 : vector<16x128xf32>
      %cst_36 = arith.constant 0.000000e+00 : f32
      %73 = vector.broadcast %cst_36 : f32 to vector<16x128xf32>
      %74 = arith.subf %73, %70 : vector<16x128xf32>
      %75 = arith.select %72, %70, %74 : vector<16x128xi1>, vector<16x128xf32>
      %cst_37 = arith.constant 1.000000e+00 : f32
      %76 = vector.broadcast %cst_37 : f32 to vector<16x128xf32>
      %77 = arith.addf %76, %75 : vector<16x128xf32>
      %78 = arith.mulf %40, %77 : vector<16x128xf32>
      %c0_38 = arith.constant 0 : index
      %c0_39 = arith.constant 0 : index
      %79 = vector.load %arg8[%c0_38, %c0_39] : memref<16x128xf32, #tpu.memory_space<vmem>>, vector<16x128xf32>
      tpu.vector_store %arg8[%c0_38, %c0_39], %78 {strides = array<i32>} : memref<16x128xf32, #tpu.memory_space<vmem>>, vector<16x128xf32>,
    } else {
    }
    return
  }
  func.func @transform_0(%arg0: i32, %arg1: i32, %arg2: i32) -> (i32, i32) {
    %c0_i32 = arith.constant 0 : i32
    return %arg0, %arg2 : i32, i32
  }
  func.func @transform_1(%arg0: i32, %arg1: i32, %arg2: i32) -> (i32, i32) {
    %c0_i32 = arith.constant 0 : i32
    %c0_i32_0 = arith.constant 0 : i32
    return %c0_i32, %arg2 : i32, i32
  }
  func.func @transform_2(%arg0: i32, %arg1: i32, %arg2: i32) -> (i32, i32) {
    %c0_i32 = arith.constant 0 : i32
    %c0_i32_0 = arith.constant 0 : i32
    return %c0_i32, %arg2 : i32, i32
  }
  func.func @transform_3(%arg0: i32, %arg1: i32, %arg2: i32) -> (i32, i32) {
    %c0_i32 = arith.constant 0 : i32
    return %arg2, %arg1 : i32, i32
  }
  func.func @transform_4(%arg0: i32, %arg1: i32, %arg2: i32) -> (i32, i32) {
    %c0_i32 = arith.constant 0 : i32
    %c0_i32_0 = arith.constant 0 : i32
    return %c0_i32, %arg1 : i32, i32
  }
  func.func @transform_5(%arg0: i32, %arg1: i32, %arg2: i32) -> (i32, i32) {
    %c0_i32 = arith.constant 0 : i32
    return %arg0, %arg1 : i32, i32
  }
}

module attributes {stable_mosaic.version = 11 : i64} {
  func.func @_linear_kernel(%arg0: i32, %arg1: i32, %arg2: i32, %arg3: memref<16x256xbf16, #tpu.memory_space<vmem>>, %arg4: memref<256x128xbf16, #tpu.memory_space<vmem>>, %arg5: memref<1x128xf32, #tpu.memory_space<vmem>>, %arg6: memref<16x128xf32, #tpu.memory_space<vmem>>, %arg7: memref<16x128xf32, #tpu.memory_space<vmem>>, %arg8: memref<16x128xf32, #tpu.memory_space<vmem>>) attributes {dimension_semantics = [#tpu.dimension_semantics<parallel>, #tpu.dimension_semantics<parallel>, #tpu.dimension_semantics<arbitrary>], iteration_bounds = array<i64: 1, 1, 1>, scalar_prefetch = 0 : i64, scratch_operands = 1 : i64, tpu.core_type = #tpu.core_type<tc>, window_params = [{transform_indices = @transform_0, window_bounds = array<i64: 16, 256>}, {transform_indices = @transform_1, window_bounds = array<i64: 256, 128>}, {transform_indices = @transform_2, window_bounds = array<i64: 1, 128>}, {transform_indices = @transform_3, window_bounds = array<i64: 16, 128>}, {transform_indices = @transform_4, window_bounds = array<i64: 16, 128>}]} {
    %c0_i32 = arith.constant 0 : i32
    %0 = arith.cmpi eq, %arg2, %c0_i32 : i32
    %1 = arith.extui %0 : i1 to i32
    %c0_i32_0 = arith.constant 0 : i32
    %2 = arith.cmpi ne, %1, %c0_i32_0 : i32
    scf.if %2 {
      %cst_10 = arith.constant 0.000000e+00 : f32
      %12 = vector.broadcast %cst_10 : f32 to vector<16x128xf32>
      %c0_11 = arith.constant 0 : index
      %c0_12 = arith.constant 0 : index
      %13 = vector.load %arg8[%c0_11, %c0_12] : memref<16x128xf32, #tpu.memory_space<vmem>>, vector<16x128xf32>
      tpu.vector_store %arg8[%c0_11, %c0_12], %12 {strides = array<i32>} : memref<16x128xf32, #tpu.memory_space<vmem>>, vector<16x128xf32>,
    } else {
    }
    %c0 = arith.constant 0 : index
    %c0_1 = arith.constant 0 : index
    %3 = vector.load %arg3[%c0, %c0_1] : memref<16x256xbf16, #tpu.memory_space<vmem>>, vector<16x256xbf16>
    %c0_2 = arith.constant 0 : index
    %c0_3 = arith.constant 0 : index
    %4 = vector.load %arg4[%c0_2, %c0_3] : memref<256x128xbf16, #tpu.memory_space<vmem>>, vector<256x128xbf16>
    %c0_4 = arith.constant 0 : index
    %c0_5 = arith.constant 0 : index
    %5 = vector.load %arg8[%c0_4, %c0_5] : memref<16x128xf32, #tpu.memory_space<vmem>>, vector<16x128xf32>
    %cst = arith.constant dense<0.000000e+00> : vector<16x128xf32>
    %6 = tpu.matmul %3, %4, %cst {dimension_numbers = #tpu.dot_dimension_numbers<[1], [0], [0], [1], [0, 0, 1, 1], [], []>} : vector<16x256xbf16>, vector<256x128xbf16>, vector<16x128xf32> -> vector<16x128xf32>
    %7 = arith.addf %5, %6 : vector<16x128xf32>
    %c0_6 = arith.constant 0 : index
    %c0_7 = arith.constant 0 : index
    %8 = vector.load %arg8[%c0_6, %c0_7] : memref<16x128xf32, #tpu.memory_space<vmem>>, vector<16x128xf32>
    tpu.vector_store %arg8[%c0_6, %c0_7], %7 {strides = array<i32>} : memref<16x128xf32, #tpu.memory_space<vmem>>, vector<16x128xf32>,
    %c0_i32_8 = arith.constant 0 : i32
    %9 = arith.cmpi eq, %arg2, %c0_i32_8 : i32
    %10 = arith.extui %9 : i1 to i32
    %c0_i32_9 = arith.constant 0 : i32
    %11 = arith.cmpi ne, %10, %c0_i32_9 : i32
    scf.if %11 {
      %c0_10 = arith.constant 0 : index
      %c0_11 = arith.constant 0 : index
      %12 = vector.load %arg8[%c0_10, %c0_11] : memref<16x128xf32, #tpu.memory_space<vmem>>, vector<16x128xf32>
      %c0_12 = arith.constant 0 : index
      %c0_13 = arith.constant 0 : index
      %13 = vector.load %arg5[%c0_12, %c0_13] : memref<1x128xf32, #tpu.memory_space<vmem>>, vector<1x128xf32>
      %14 = vector.broadcast %13 : vector<1x128xf32> to vector<16x128xf32>
      %15 = arith.addf %12, %14 : vector<16x128xf32>
      %c0_14 = arith.constant 0 : index
      %c0_15 = arith.constant 0 : index
      %16 = vector.load %arg6[%c0_14, %c0_15] : memref<16x128xf32, #tpu.memory_space<vmem>>, vector<16x128xf32>
      %17 = arith.addf %15, %16 : vector<16x128xf32>
      %c0_16 = arith.constant 0 : index
      %c0_17 = arith.constant 0 : index
      %18 = vector.load %arg7[%c0_16, %c0_17] : memref<16x128xf32, #tpu.memory_space<vmem>>, vector<16x128xf32>
      tpu.vector_store %arg7[%c0_16, %c0_17], %17 {strides = array<i32>} : memref<16x128xf32, #tpu.memory_space<vmem>>, vector<16x128xf32>,
    } else {
    }
    return
  }
  func.func @transform_0(%arg0: i32, %arg1: i32, %arg2: i32) -> (i32, i32) {
    %c0_i32 = arith.constant 0 : i32
    return %arg0, %arg2 : i32, i32
  }
  func.func @transform_1(%arg0: i32, %arg1: i32, %arg2: i32) -> (i32, i32) {
    %c0_i32 = arith.constant 0 : i32
    return %arg2, %arg1 : i32, i32
  }
  func.func @transform_2(%arg0: i32, %arg1: i32, %arg2: i32) -> (i32, i32) {
    %c0_i32 = arith.constant 0 : i32
    %c0_i32_0 = arith.constant 0 : i32
    return %c0_i32, %arg1 : i32, i32
  }
  func.func @transform_3(%arg0: i32, %arg1: i32, %arg2: i32) -> (i32, i32) {
    %c0_i32 = arith.constant 0 : i32
    return %arg0, %arg1 : i32, i32
  }
  func.func @transform_4(%arg0: i32, %arg1: i32, %arg2: i32) -> (i32, i32) {
    %c0_i32 = arith.constant 0 : i32
    return %arg0, %arg1 : i32, i32
  }
}

module attributes {stable_mosaic.version = 11 : i64} {
  func.func @_linear_kernel(%arg0: i32, %arg1: i32, %arg2: i32, %arg3: memref<16x128xf32, #tpu.memory_space<vmem>>, %arg4: memref<1x128xf32, #tpu.memory_space<vmem>>, %arg5: memref<1x128xf32, #tpu.memory_space<vmem>>, %arg6: memref<128x256xbf16, #tpu.memory_space<vmem>>, %arg7: memref<1x256xf32, #tpu.memory_space<vmem>>, %arg8: memref<16x256xbf16, #tpu.memory_space<vmem>>, %arg9: memref<16x256xf32, #tpu.memory_space<vmem>>) attributes {dimension_semantics = [#tpu.dimension_semantics<parallel>, #tpu.dimension_semantics<parallel>, #tpu.dimension_semantics<arbitrary>], iteration_bounds = array<i64: 1, 1, 1>, scalar_prefetch = 0 : i64, scratch_operands = 1 : i64, tpu.core_type = #tpu.core_type<tc>, window_params = [{transform_indices = @transform_0, window_bounds = array<i64: 16, 128>}, {transform_indices = @transform_1, window_bounds = array<i64: 1, 128>}, {transform_indices = @transform_2, window_bounds = array<i64: 1, 128>}, {transform_indices = @transform_3, window_bounds = array<i64: 128, 256>}, {transform_indices = @transform_4, window_bounds = array<i64: 1, 256>}, {transform_indices = @transform_5, window_bounds = array<i64: 16, 256>}]} {
    %c0_i32 = arith.constant 0 : i32
    %0 = arith.cmpi eq, %arg2, %c0_i32 : i32
    %1 = arith.extui %0 : i1 to i32
    %c0_i32_0 = arith.constant 0 : i32
    %2 = arith.cmpi ne, %1, %c0_i32_0 : i32
    scf.if %2 {
      %cst_19 = arith.constant 0.000000e+00 : f32
      %35 = vector.broadcast %cst_19 : f32 to vector<16x256xf32>
      %c0_20 = arith.constant 0 : index
      %c0_21 = arith.constant 0 : index
      %36 = vector.load %arg9[%c0_20, %c0_21] : memref<16x256xf32, #tpu.memory_space<vmem>>, vector<16x256xf32>
      tpu.vector_store %arg9[%c0_20, %c0_21], %35 {strides = array<i32>} : memref<16x256xf32, #tpu.memory_space<vmem>>, vector<16x256xf32>,
    } else {
    }
    %c0 = arith.constant 0 : index
    %c0_1 = arith.constant 0 : index
    %3 = vector.load %arg3[%c0, %c0_1] : memref<16x128xf32, #tpu.memory_space<vmem>>, vector<16x128xf32>
    %cst = arith.constant dense<0.000000e+00> : vector<16xf32>
    %4 = vector.multi_reduction <add>, %3, %cst [1] : vector<16x128xf32> to vector<16xf32>
    %5 = vector.shape_cast %4 : vector<16xf32> to vector<16x1xf32>
    %cst_2 = arith.constant 1.280000e+02 : f32
    %6 = vector.broadcast %cst_2 : f32 to vector<16x1xf32>
    %7 = arith.divf %5, %6 : vector<16x1xf32>
    %8 = vector.broadcast %7 : vector<16x1xf32> to vector<16x128xf32>
    %9 = arith.subf %3, %8 : vector<16x128xf32>
    %10 = arith.mulf %9, %9 : vector<16x128xf32>
    %cst_3 = arith.constant dense<0.000000e+00> : vector<16xf32>
    %11 = vector.multi_reduction <add>, %10, %cst_3 [1] : vector<16x128xf32> to vector<16xf32>
    %12 = vector.shape_cast %11 : vector<16xf32> to vector<16x1xf32>
    %cst_4 = arith.constant 1.280000e+02 : f32
    %13 = vector.broadcast %cst_4 : f32 to vector<16x1xf32>
    %14 = arith.divf %12, %13 : vector<16x1xf32>
    %cst_5 = arith.constant 9.99999974E-6 : f32
    %15 = vector.broadcast %cst_5 : f32 to vector<16x1xf32>
    %16 = arith.addf %14, %15 : vector<16x1xf32>
    %17 = math.rsqrt %16 : vector<16x1xf32>
    %18 = vector.broadcast %17 : vector<16x1xf32> to vector<16x128xf32>
    %19 = arith.mulf %9, %18 : vector<16x128xf32>
    %c0_6 = arith.constant 0 : index
    %c0_7 = arith.constant 0 : index
    %20 = vector.load %arg4[%c0_6, %c0_7] : memref<1x128xf32, #tpu.memory_space<vmem>>, vector<1x128xf32>
    %21 = vector.broadcast %20 : vector<1x128xf32> to vector<16x128xf32>
    %22 = arith.mulf %19, %21 : vector<16x128xf32>
    %c0_8 = arith.constant 0 : index
    %c0_9 = arith.constant 0 : index
    %23 = vector.load %arg5[%c0_8, %c0_9] : memref<1x128xf32, #tpu.memory_space<vmem>>, vector<1x128xf32>
    %24 = vector.broadcast %23 : vector<1x128xf32> to vector<16x128xf32>
    %25 = arith.addf %22, %24 : vector<16x128xf32>
    %26 = arith.truncf %25 : vector<16x128xf32> to vector<16x128xbf16>
    %c0_10 = arith.constant 0 : index
    %c0_11 = arith.constant 0 : index
    %27 = vector.load %arg6[%c0_10, %c0_11] : memref<128x256xbf16, #tpu.memory_space<vmem>>, vector<128x256xbf16>
    %c0_12 = arith.constant 0 : index
    %c0_13 = arith.constant 0 : index
    %28 = vector.load %arg9[%c0_12, %c0_13] : memref<16x256xf32, #tpu.memory_space<vmem>>, vector<16x256xf32>
    %cst_14 = arith.constant dense<0.000000e+00> : vector<16x256xf32>
    %29 = tpu.matmul %26, %27, %cst_14 {dimension_numbers = #tpu.dot_dimension_numbers<[1], [0], [0], [1], [0, 0, 1, 1], [], []>} : vector<16x128xbf16>, vector<128x256xbf16>, vector<16x256xf32> -> vector<16x256xf32>
    %30 = arith.addf %28, %29 : vector<16x256xf32>
    %c0_15 = arith.constant 0 : index
    %c0_16 = arith.constant 0 : index
    %31 = vector.load %arg9[%c0_15, %c0_16] : memref<16x256xf32, #tpu.memory_space<vmem>>, vector<16x256xf32>
    tpu.vector_store %arg9[%c0_15, %c0_16], %30 {strides = array<i32>} : memref<16x256xf32, #tpu.memory_space<vmem>>, vector<16x256xf32>,
    %c0_i32_17 = arith.constant 0 : i32
    %32 = arith.cmpi eq, %arg2, %c0_i32_17 : i32
    %33 = arith.extui %32 : i1 to i32
    %c0_i32_18 = arith.constant 0 : i32
    %34 = arith.cmpi ne, %33, %c0_i32_18 : i32
    scf.if %34 {
      %c0_19 = arith.constant 0 : index
      %c0_20 = arith.constant 0 : index
      %35 = vector.load %arg9[%c0_19, %c0_20] : memref<16x256xf32, #tpu.memory_space<vmem>>, vector<16x256xf32>
      %c0_21 = arith.constant 0 : index
      %c0_22 = arith.constant 0 : index
      %36 = vector.load %arg7[%c0_21, %c0_22] : memref<1x256xf32, #tpu.memory_space<vmem>>, vector<1x256xf32>
      %37 = vector.broadcast %36 : vector<1x256xf32> to vector<16x256xf32>
      %38 = arith.addf %35, %37 : vector<16x256xf32>
      %cst_23 = arith.constant 5.000000e-01 : f32
      %39 = vector.broadcast %cst_23 : f32 to vector<16x256xf32>
      %40 = arith.mulf %39, %38 : vector<16x256xf32>
      %cst_24 = arith.constant 0.707106769 : f32
      %41 = vector.broadcast %cst_24 : f32 to vector<16x256xf32>
      %42 = arith.mulf %38, %41 : vector<16x256xf32>
      %43 = math.absf %42 : vector<16x256xf32>
      %cst_25 = arith.constant 0.327591091 : f32
      %44 = vector.broadcast %cst_25 : f32 to vector<16x256xf32>
      %45 = arith.mulf %44, %43 : vector<16x256xf32>
      %cst_26 = arith.constant 1.000000e+00 : f32
      %46 = vector.broadcast %cst_26 : f32 to vector<16x256xf32>
      %47 = arith.addf %46, %45 : vector<16x256xf32>
      %cst_27 = arith.constant 1.000000e+00 : f32
      %48 = vector.broadcast %cst_27 : f32 to vector<16x256xf32>
      %49 = arith.divf %48, %47 : vector<16x256xf32>
      %cst_28 = arith.constant 1.06140542 : f32
      %50 = vector.broadcast %cst_28 : f32 to vector<16x256xf32>
      %51 = arith.mulf %49, %50 : vector<16x256xf32>
      %cst_29 = arith.constant -1.45315206 : f32
      %52 = vector.broadcast %cst_29 : f32 to vector<16x256xf32>
      %53 = arith.addf %52, %51 : vector<16x256xf32>
      %54 = arith.mulf %49, %53 : vector<16x256xf32>
      %cst_30 = arith.constant 1.42141378 : f32
      %55 = vector.broadcast %cst_30 : f32 to vector<16x256xf32>
      %56 = arith.addf %55, %54 : vector<16x256xf32>
      %57 = arith.mulf %49, %56 : vector<16x256xf32>
      %cst_31 = arith.constant -0.284496725 : f32
      %58 = vector.broadcast %cst_31 : f32 to vector<16x256xf32>
      %59 = arith.addf %58, %57 : vector<16x256xf32>
      %60 = arith.mulf %49, %59 : vector<16x256xf32>
      %cst_32 = arith.constant 0.254829586 : f32
      %61 = vector.broadcast %cst_32 : f32 to vector<16x256xf32>
      %62 = arith.addf %61, %60 : vector<16x256xf32>
      %63 = arith.mulf %49, %62 : vector<16x256xf32>
      %cst_33 = arith.constant 0.000000e+00 : f32
      %64 = vector.broadcast %cst_33 : f32 to vector<16x256xf32>
      %65 = arith.subf %64, %43 : vector<16x256xf32>
      %66 = arith.mulf %65, %43 : vector<16x256xf32>
      %67 = math.exp %66 : vector<16x256xf32>
      %68 = arith.mulf %63, %67 : vector<16x256xf32>
      %cst_34 = arith.constant 1.000000e+00 : f32
      %69 = vector.broadcast %cst_34 : f32 to vector<16x256xf32>
      %70 = arith.subf %69, %68 : vector<16x256xf32>
      %cst_35 = arith.constant 0.000000e+00 : f32
      %71 = vector.broadcast %cst_35 : f32 to vector<16x256xf32>
      %72 = arith.cmpf oge, %42, %71 : vector<16x256xf32>
      %cst_36 = arith.constant 0.000000e+00 : f32
      %73 = vector.broadcast %cst_36 : f32 to vector<16x256xf32>
      %74 = arith.subf %73, %70 : vector<16x256xf32>
      %75 = arith.select %72, %70, %74 : vector<16x256xi1>, vector<16x256xf32>
      %cst_37 = arith.constant 1.000000e+00 : f32
      %76 = vector.broadcast %cst_37 : f32 to vector<16x256xf32>
      %77 = arith.addf %76, %75 : vector<16x256xf32>
      %78 = arith.mulf %40, %77 : vector<16x256xf32>
      %79 = arith.truncf %78 : vector<16x256xf32> to vector<16x256xbf16>
      %c0_38 = arith.constant 0 : index
      %c0_39 = arith.constant 0 : index
      %80 = vector.load %arg8[%c0_38, %c0_39] : memref<16x256xbf16, #tpu.memory_space<vmem>>, vector<16x256xbf16>
      tpu.vector_store %arg8[%c0_38, %c0_39], %79 {strides = array<i32>} : memref<16x256xbf16, #tpu.memory_space<vmem>>, vector<16x256xbf16>,
    } else {
    }
    return
  }
  func.func @transform_0(%arg0: i32, %arg1: i32, %arg2: i32) -> (i32, i32) {
    %c0_i32 = arith.constant 0 : i32
    return %arg0, %arg2 : i32, i32
  }
  func.func @transform_1(%arg0: i32, %arg1: i32, %arg2: i32) -> (i32, i32) {
    %c0_i32 = arith.constant 0 : i32
    %c0_i32_0 = arith.constant 0 : i32
    return %c0_i32, %arg2 : i32, i32
  }
  func.func @transform_2(%arg0: i32, %arg1: i32, %arg2: i32) -> (i32, i32) {
    %c0_i32 = arith.constant 0 : i32
    %c0_i32_0 = arith.constant 0 : i32
    return %c0_i32, %arg2 : i32, i32
  }
  func.func @transform_3(%arg0: i32, %arg1: i32, %arg2: i32) -> (i32, i32) {
    %c0_i32 = arith.constant 0 : i32
    return %arg2, %arg1 : i32, i32
  }
  func.func @transform_4(%arg0: i32, %arg1: i32, %arg2: i32) -> (i32, i32) {
    %c0_i32 = arith.constant 0 : i32
    %c0_i32_0 = arith.constant 0 : i32
    return %c0_i32, %arg1 : i32, i32
  }
  func.func @transform_5(%arg0: i32, %arg1: i32, %arg2: i32) -> (i32, i32) {
    %c0_i32 = arith.constant 0 : i32
    return %arg0, %arg1 : i32, i32
  }
}

module attributes {stable_mosaic.version = 11 : i64} {
  func.func @_linear_kernel(%arg0: i32, %arg1: i32, %arg2: i32, %arg3: memref<16x128xf32, #tpu.memory_space<vmem>>, %arg4: memref<1x128xf32, #tpu.memory_space<vmem>>, %arg5: memref<1x128xf32, #tpu.memory_space<vmem>>, %arg6: memref<128x512xbf16, #tpu.memory_space<vmem>>, %arg7: memref<1x512xf32, #tpu.memory_space<vmem>>, %arg8: memref<16x512xf32, #tpu.memory_space<vmem>>, %arg9: memref<16x512xf32, #tpu.memory_space<vmem>>) attributes {dimension_semantics = [#tpu.dimension_semantics<parallel>, #tpu.dimension_semantics<parallel>, #tpu.dimension_semantics<arbitrary>], iteration_bounds = array<i64: 1, 2, 1>, scalar_prefetch = 0 : i64, scratch_operands = 1 : i64, tpu.core_type = #tpu.core_type<tc>, window_params = [{transform_indices = @transform_0, window_bounds = array<i64: 16, 128>}, {transform_indices = @transform_1, window_bounds = array<i64: 1, 128>}, {transform_indices = @transform_2, window_bounds = array<i64: 1, 128>}, {transform_indices = @transform_3, window_bounds = array<i64: 128, 512>}, {transform_indices = @transform_4, window_bounds = array<i64: 1, 512>}, {transform_indices = @transform_5, window_bounds = array<i64: 16, 512>}]} {
    %c0_i32 = arith.constant 0 : i32
    %0 = arith.cmpi eq, %arg2, %c0_i32 : i32
    %1 = arith.extui %0 : i1 to i32
    %c0_i32_0 = arith.constant 0 : i32
    %2 = arith.cmpi ne, %1, %c0_i32_0 : i32
    scf.if %2 {
      %cst_19 = arith.constant 0.000000e+00 : f32
      %35 = vector.broadcast %cst_19 : f32 to vector<16x512xf32>
      %c0_20 = arith.constant 0 : index
      %c0_21 = arith.constant 0 : index
      %36 = vector.load %arg9[%c0_20, %c0_21] : memref<16x512xf32, #tpu.memory_space<vmem>>, vector<16x512xf32>
      tpu.vector_store %arg9[%c0_20, %c0_21], %35 {strides = array<i32>} : memref<16x512xf32, #tpu.memory_space<vmem>>, vector<16x512xf32>,
    } else {
    }
    %c0 = arith.constant 0 : index
    %c0_1 = arith.constant 0 : index
    %3 = vector.load %arg3[%c0, %c0_1] : memref<16x128xf32, #tpu.memory_space<vmem>>, vector<16x128xf32>
    %cst = arith.constant dense<0.000000e+00> : vector<16xf32>
    %4 = vector.multi_reduction <add>, %3, %cst [1] : vector<16x128xf32> to vector<16xf32>
    %5 = vector.shape_cast %4 : vector<16xf32> to vector<16x1xf32>
    %cst_2 = arith.constant 1.280000e+02 : f32
    %6 = vector.broadcast %cst_2 : f32 to vector<16x1xf32>
    %7 = arith.divf %5, %6 : vector<16x1xf32>
    %8 = vector.broadcast %7 : vector<16x1xf32> to vector<16x128xf32>
    %9 = arith.subf %3, %8 : vector<16x128xf32>
    %10 = arith.mulf %9, %9 : vector<16x128xf32>
    %cst_3 = arith.constant dense<0.000000e+00> : vector<16xf32>
    %11 = vector.multi_reduction <add>, %10, %cst_3 [1] : vector<16x128xf32> to vector<16xf32>
    %12 = vector.shape_cast %11 : vector<16xf32> to vector<16x1xf32>
    %cst_4 = arith.constant 1.280000e+02 : f32
    %13 = vector.broadcast %cst_4 : f32 to vector<16x1xf32>
    %14 = arith.divf %12, %13 : vector<16x1xf32>
    %cst_5 = arith.constant 9.99999974E-6 : f32
    %15 = vector.broadcast %cst_5 : f32 to vector<16x1xf32>
    %16 = arith.addf %14, %15 : vector<16x1xf32>
    %17 = math.rsqrt %16 : vector<16x1xf32>
    %18 = vector.broadcast %17 : vector<16x1xf32> to vector<16x128xf32>
    %19 = arith.mulf %9, %18 : vector<16x128xf32>
    %c0_6 = arith.constant 0 : index
    %c0_7 = arith.constant 0 : index
    %20 = vector.load %arg4[%c0_6, %c0_7] : memref<1x128xf32, #tpu.memory_space<vmem>>, vector<1x128xf32>
    %21 = vector.broadcast %20 : vector<1x128xf32> to vector<16x128xf32>
    %22 = arith.mulf %19, %21 : vector<16x128xf32>
    %c0_8 = arith.constant 0 : index
    %c0_9 = arith.constant 0 : index
    %23 = vector.load %arg5[%c0_8, %c0_9] : memref<1x128xf32, #tpu.memory_space<vmem>>, vector<1x128xf32>
    %24 = vector.broadcast %23 : vector<1x128xf32> to vector<16x128xf32>
    %25 = arith.addf %22, %24 : vector<16x128xf32>
    %26 = arith.truncf %25 : vector<16x128xf32> to vector<16x128xbf16>
    %c0_10 = arith.constant 0 : index
    %c0_11 = arith.constant 0 : index
    %27 = vector.load %arg6[%c0_10, %c0_11] : memref<128x512xbf16, #tpu.memory_space<vmem>>, vector<128x512xbf16>
    %c0_12 = arith.constant 0 : index
    %c0_13 = arith.constant 0 : index
    %28 = vector.load %arg9[%c0_12, %c0_13] : memref<16x512xf32, #tpu.memory_space<vmem>>, vector<16x512xf32>
    %cst_14 = arith.constant dense<0.000000e+00> : vector<16x512xf32>
    %29 = tpu.matmul %26, %27, %cst_14 {dimension_numbers = #tpu.dot_dimension_numbers<[1], [0], [0], [1], [0, 0, 1, 1], [], []>} : vector<16x128xbf16>, vector<128x512xbf16>, vector<16x512xf32> -> vector<16x512xf32>
    %30 = arith.addf %28, %29 : vector<16x512xf32>
    %c0_15 = arith.constant 0 : index
    %c0_16 = arith.constant 0 : index
    %31 = vector.load %arg9[%c0_15, %c0_16] : memref<16x512xf32, #tpu.memory_space<vmem>>, vector<16x512xf32>
    tpu.vector_store %arg9[%c0_15, %c0_16], %30 {strides = array<i32>} : memref<16x512xf32, #tpu.memory_space<vmem>>, vector<16x512xf32>,
    %c0_i32_17 = arith.constant 0 : i32
    %32 = arith.cmpi eq, %arg2, %c0_i32_17 : i32
    %33 = arith.extui %32 : i1 to i32
    %c0_i32_18 = arith.constant 0 : i32
    %34 = arith.cmpi ne, %33, %c0_i32_18 : i32
    scf.if %34 {
      %c0_19 = arith.constant 0 : index
      %c0_20 = arith.constant 0 : index
      %35 = vector.load %arg9[%c0_19, %c0_20] : memref<16x512xf32, #tpu.memory_space<vmem>>, vector<16x512xf32>
      %c0_21 = arith.constant 0 : index
      %c0_22 = arith.constant 0 : index
      %36 = vector.load %arg7[%c0_21, %c0_22] : memref<1x512xf32, #tpu.memory_space<vmem>>, vector<1x512xf32>
      %37 = vector.broadcast %36 : vector<1x512xf32> to vector<16x512xf32>
      %38 = arith.addf %35, %37 : vector<16x512xf32>
      %c0_23 = arith.constant 0 : index
      %c0_24 = arith.constant 0 : index
      %39 = vector.load %arg8[%c0_23, %c0_24] : memref<16x512xf32, #tpu.memory_space<vmem>>, vector<16x512xf32>
      tpu.vector_store %arg8[%c0_23, %c0_24], %38 {strides = array<i32>} : memref<16x512xf32, #tpu.memory_space<vmem>>, vector<16x512xf32>,
    } else {
    }
    return
  }
  func.func @transform_0(%arg0: i32, %arg1: i32, %arg2: i32) -> (i32, i32) {
    %c0_i32 = arith.constant 0 : i32
    return %arg0, %arg2 : i32, i32
  }
  func.func @transform_1(%arg0: i32, %arg1: i32, %arg2: i32) -> (i32, i32) {
    %c0_i32 = arith.constant 0 : i32
    %c0_i32_0 = arith.constant 0 : i32
    return %c0_i32, %arg2 : i32, i32
  }
  func.func @transform_2(%arg0: i32, %arg1: i32, %arg2: i32) -> (i32, i32) {
    %c0_i32 = arith.constant 0 : i32
    %c0_i32_0 = arith.constant 0 : i32
    return %c0_i32, %arg2 : i32, i32
  }
  func.func @transform_3(%arg0: i32, %arg1: i32, %arg2: i32) -> (i32, i32) {
    %c0_i32 = arith.constant 0 : i32
    return %arg2, %arg1 : i32, i32
  }
  func.func @transform_4(%arg0: i32, %arg1: i32, %arg2: i32) -> (i32, i32) {
    %c0_i32 = arith.constant 0 : i32
    %c0_i32_0 = arith.constant 0 : i32
    return %c0_i32, %arg1 : i32, i32
  }
  func.func @transform_5(%arg0: i32, %arg1: i32, %arg2: i32) -> (i32, i32) {
    %c0_i32 = arith.constant 0 : i32
    return %arg0, %arg1 : i32, i32
  }
}

</mosaic_0001>

<bundles_post_ra>
// kernel: _lambda_.16
= control target key start
LH: loop header
LB: loop body
LE: loop exit
PB: predicated region body
PF: predicated region fallthrough
CT: control target
= control target key end

     0   :  { %v217_v0 = vmov 0.0   ;;  %vm218_vm0 = vmmov 0   ;;  %s286_s1 = inlined_call_operand.vmem [shape: bf16[128,128], index: 1, kind: input, shape index: {}]   ;;  %s287_s0 = inlined_call_operand.vmem [shape: bf16[16,128], index: 0, kind: input, shape index: {}]   ;;  %s288_s2 = inlined_call_operand.vmem [shape: f32[1,128], index: 2, kind: input, shape index: {}]   ;;  %s289_s3 = inlined_call_operand.vmem [shape: f32[16,128], index: 3, kind: input, shape index: {}]   ;;  %s290_s4 = inlined_call_operand.vmem [shape: f32[16,128], index: 4, kind: output, shape index: {}]  }
   0x1   :  { %186 = vmatprep.subr.bf16.mxu0 %v217_v0  ;;  %v208_v1 = vld [vmem:[%s286_s1 + $0x38] sm:$0xff]   ;;  %202 = vmatprep.mubr.msk.bf16.mxu0 %vm218_vm0, %v217_v0  ;;  %v209_v2 = vld [vmem:[%s286_s1 + $0x30] sm:$0xff]   ;;  %v210_v3 = vld [vmem:[%s286_s1 + $0x28] sm:$0xff]  }
   0x2   :  { %187 = vmatpush3.bf16.msra.mxu0 %v208_v1  ;;  %v211_v4 = vld [vmem:[%s286_s1 + $0x20] sm:$0xff]   ;;  %v212_v5 = vld [vmem:[%s286_s1 + $0x18] sm:$0xff]   ;;  %v213_v6 = vld [vmem:[%s286_s1 + $0x10] sm:$0xff]  }
   0x3   :  { %188 = vmatprep.subr.bf16.mxu0 %v217_v0  ;;  %v214_v7 = vld [vmem:[%s286_s1 + $0x8] sm:$0xff]   ;;  %v215_v8 = vld [vmem:[%s286_s1] sm:$0xff]  }
   0x4   :  { %v216_v9 = vld [vmem:[%s287_s0] sm:$0xff]   ;;  %v158_v17 = vld [vmem:[%s289_s3 + $0x8] sm:$0xff] }
   0x5   :  { %v176_v10 = vld [vmem:[%s288_s2] ss:$0 sm:$0xff] }
   0x6   :  { %189 = vmatpush3.bf16.msra.mxu0 %v209_v2  ;;  %v157_v12 = vld [vmem:[%s289_s3] sm:$0xff] }
   0x7   :  { %190 = vmatprep.subr.bf16.mxu0 %v217_v0 }
   0xa   :  { %191 = vmatpush3.bf16.msra.mxu0 %v210_v3 }
   0xb   :  { %192 = vmatprep.subr.bf16.mxu0 %v217_v0 }
   0xe   :  { %193 = vmatpush3.bf16.msra.mxu0 %v211_v4 }
   0xf   :  { %194 = vmatprep.subr.bf16.mxu0 %v217_v0 }
  0x12   :  { %195 = vmatpush3.bf16.msra.mxu0 %v212_v5 }
  0x13   :  { %196 = vmatprep.subr.bf16.mxu0 %v217_v0 }
  0x16   :  { %197 = vmatpush3.bf16.msra.mxu0 %v213_v6 }
  0x17   :  { %198 = vmatprep.subr.bf16.mxu0 %v217_v0 }
  0x1a   :  { %199 = vmatpush3.bf16.msra.mxu0 %v214_v7 }
  0x1b   :  { %200 = vmatprep.subr.bf16.mxu0 %v217_v0 }
  0x1e   :  { %201 = vmatpush3.bf16.msra.mxu0 %v215_v8 }
  0x21   :  { %203 = vmatmul.mubr.bf16.vlgmr.msra.gmra.mxu0 %v216_v9 }
  0xe1   :  { %v132_v11 = vpop.f32.mrf.mxu0 }
  0xe2   :  { %v155_v13 = vadd.f32 %v176_v10, %v132_v11 }
  0xe3   :  { %v204_v14 = vpop.f32.mrf.mxu0 }
  0xe4   :  { %v159_v15 = vadd.f32 %v157_v12, %v155_v13 }
  0xe5   :  { %v135_v16 = vpop.f32.mrf.mxu0 }
  0xe6   :  { %161 = vst [vmem:[%s290_s4] sm:$0xff] %v159_v15  ;;  %v156_v18 = vadd.f32 %v176_v10, %v135_v16 }
  0xe7   :  { %v205_v19 = vpop.f32.mrf.mxu0 }
  0xe8   :  { %v160_v20 = vadd.f32 %v158_v17, %v156_v18 }
  0xea   :  { %162 = vst [vmem:[%s290_s4 + $0x8] sm:$0xff] %v160_v20 }

// kernel: _lambda_.13
= control target key start
LH: loop header
LB: loop body
LE: loop exit
PB: predicated region body
PF: predicated region fallthrough
CT: control target
= control target key end

     0   :  { %s145_s0 = inlined_call_operand.vmem [shape: f32[16,128], index: 0, kind: input, shape index: {}]   ;;  %s146_s1 = inlined_call_operand.vmem [shape: f32[16,128], index: 1, kind: input, shape index: {}]   ;;  %s147_s2 = inlined_call_operand.vmem [shape: f32[16,128], index: 2, kind: input, shape index: {}]   ;;  %s148_s3 = inlined_call_operand.vmem [shape: f32[1,128], index: 3, kind: input, shape index: {}]   ;;  %s149_s4 = inlined_call_operand.vmem [shape: f32[1,128], index: 4, kind: input, shape index: {}]   ;;  %s150_s5 = inlined_call_operand.vmem [shape: f32[16,128], index: 5, kind: output, shape index: {}]  }
   0x1   :  { %v20_v0 = vld [vmem:[%s145_s0] sm:$0xff]  ;;  %v21_v3 = vld [vmem:[%s145_s0 + $0x8] sm:$0xff] }
   0x2   :  { %v24_v1 = vld [vmem:[%s146_s1] sm:$0xff]  ;;  %v22_v2 = vmul.f32 11.313708, %v20_v0  ;;  %v25_v4 = vld [vmem:[%s146_s1 + $0x8] sm:$0xff]  ;;  %v23_v6 = vmul.f32 11.313708, %v21_v3 }
   0x3   :  { %v28_v5 = vld [vmem:[%s147_s2] sm:$0xff]  ;;  %v29_v9 = vld [vmem:[%s147_s2 + $0x8] sm:$0xff] }
   0x4   :  { %v26_v7 = vadd.f32 %v24_v1, %v22_v2  ;;  %v27_v8 = vadd.f32 %v25_v4, %v23_v6  ;;  %v79_v27 = vld [vmem:[%s148_s3] ss:$0 sm:$0xff] }
   0x5   :  { %v80_v29 = vld [vmem:[%s149_s4] ss:$0 sm:$0xff] }
   0x6   :  { %v30_v10 = vadd.f32 %v28_v5, %v26_v7  ;;  %v31_v11 = vadd.f32 %v29_v9, %v27_v8 }
   0x8   :  { %32 = vadd.xlane.f32.xlu0 %v30_v10 }
   0xc   :  { %34 = vadd.xlane.f32.xlu0 %v31_v11 }
  0x91   :  { %v33_v12 = vpop.xlane.xlu0 %32 }
  0x92   :  { %v37_v13 = vmul.f32 0.0078125, %v33_v12 }
  0x94   :  { %v39_v14 = vsub.f32 %v30_v10, %v37_v13 }
  0x95   :  { %v35_v15 = vpop.xlane.xlu0 %34 }
  0x96   :  { %v38_v16 = vmul.f32 0.0078125, %v35_v15  ;;  %v41_v17 = vmul.f32 %v39_v14, %v39_v14 }
  0x98   :  { %v40_v18 = vsub.f32 %v31_v11, %v38_v16  ;;  %43 = vadd.xlane.f32.xlu1 %v41_v17 }
  0x9a   :  { %v42_v19 = vmul.f32 %v40_v18, %v40_v18 }
  0x9c   :  { %45 = vadd.xlane.f32.xlu1 %v42_v19 }
 0x121   :  { %v44_v20 = vpop.xlane.xlu1 %43 }
 0x122   :  { %v47_v21 = vmul.f32 0.0078125, %v44_v20 }
 0x124   :  { %v49_v22 = vadd.f32 1e-05, %v47_v21 }
 0x125   :  { %v46_v23 = vpop.xlane.xlu1 %45 }
 0x126   :  { %81 = vrsqrt.f32 %v49_v22  ;;  %v48_v24 = vmul.f32 0.0078125, %v46_v23 }
 0x128   :  { %v50_v25 = vadd.f32 1e-05, %v48_v24 }
 0x12a   :  { %83 = vrsqrt.f32 %v50_v25 }
 0x133   :  { %v82_v26 = vpop.eup %81 }
 0x134   :  { %v53_v28 = vmul.f32 %v82_v26, %v39_v14 }
 0x136   :  { %v62_v30 = vmul.f32 %v79_v27, %v53_v28 }
 0x137   :  { %v84_v31 = vpop.eup %83 }
 0x138   :  { %v71_v32 = vadd.f32 %v80_v29, %v62_v30  ;;  %v54_v33 = vmul.f32 %v84_v31, %v40_v18 }
 0x13a   :  { %73 = vst [vmem:[%s150_s5] sm:$0xff] %v71_v32  ;;  %v63_v34 = vmul.f32 %v79_v27, %v54_v33 }
 0x13c   :  { %v72_v35 = vadd.f32 %v80_v29, %v63_v34 }
 0x13e   :  { %74 = vst [vmem:[%s150_s5 + $0x8] sm:$0xff] %v72_v35 }

// kernel: _lambda_.14
= control target key start
LH: loop header
LB: loop body
LE: loop exit
PB: predicated region body
PF: predicated region fallthrough
CT: control target
= control target key end

     0   :  { %v499_v3 = vmov 0.0   ;;  %v500_v27 = vmov 0   ;;  %vm501_vm0 = vmmov 0   ;;  %v348_v53 = vlaneseq  ;;  %s650_s0 = inlined_call_operand.vmem [shape: f32[16,128], index: 0, kind: input, shape index: {}]   ;;  %s651_s3 = inlined_call_operand.vmem [shape: bf16[128,384], index: 3, kind: input, shape index: {}]   ;;  %s652_s1 = inlined_call_operand.vmem [shape: f32[1,128], index: 1, kind: input, shape index: {}]   ;;  %s653_s2 = inlined_call_operand.vmem [shape: f32[1,128], index: 2, kind: input, shape index: {}]   ;;  %s654_s4 = inlined_call_operand.vmem [shape: f32[1,384], index: 4, kind: input, shape index: {}]   ;;  %s655_s5 = inlined_call_operand.vmem [shape: bf16[16,384], index: 5, kind: output, shape index: {}]  }
   0x1   :  { %v31_v0 = vld [vmem:[%s650_s0] sm:$0xff]  ;;  %v32_v1 = vld [vmem:[%s650_s0 + $0x8] sm:$0xff]  ;;  %440 = vmatprep.subr.bf16.mxu1 %v499_v3  ;;  %v466_v5 = vld [vmem:[%s651_s3 + $0xb0] ss:$12 sps:$4 sm:$0xff]   ;;  %273 = vmatprep.mubr.bf16.mxu0 %v500_v27 }
   0x2   :  { %33 = vadd.xlane.f32.xlu0 %v31_v0  ;;  %v463_v2 = vld [vmem:[%s651_s3 + $0xac] ss:$12 sps:$4 sm:$0xff]   ;;  %v465_v4 = vld [vmem:[%s651_s3 + $0xa8] ss:$12 sps:$4 sm:$0xff]   ;;  %441 = vmatpush3.bf16.msra.mxu1 %v466_v5  ;;  %v469_v15 = vld [vmem:[%s651_s3 + $0x90] ss:$12 sps:$4 sm:$0xff]  }
   0x3   :  { %241 = vmatprep.subr.bf16.mxu0 %v463_v2  ;;  %442 = vmatprep.subr.bf16.mxu1 %v499_v3  ;;  %v467_v14 = vld [vmem:[%s651_s3 + $0x94] ss:$12 sps:$4 sm:$0xff]   ;;  %v470_v16 = vld [vmem:[%s651_s3 + $0x98] ss:$12 sps:$4 sm:$0xff]   ;;  %v471_v17 = vld [vmem:[%s651_s3 + $0x7c] ss:$12 sps:$4 sm:$0xff]  }
   0x4   :  { %242 = vmatpush1.bf16.msra.mxu0 %v465_v4  ;;  %v473_v18 = vld [vmem:[%s651_s3 + $0x78] ss:$12 sps:$4 sm:$0xff]   ;;  %v474_v19 = vld [vmem:[%s651_s3 + $0x80] ss:$12 sps:$4 sm:$0xff]   ;;  %v478_v22 = vld [vmem:[%s651_s3 + $0x68] ss:$12 sps:$4 sm:$0xff]   ;;  %456 = vmatprep.mubr.msk.bf16.mxu1 %vm501_vm0, %v499_v3 }
   0x5   :  { %243 = vmatprep.subr.bf16.mxu0 %v467_v14  ;;  %v475_v20 = vld [vmem:[%s651_s3 + $0x64] ss:$12 sps:$4 sm:$0xff]   ;;  %v477_v21 = vld [vmem:[%s651_s3 + $0x60] ss:$12 sps:$4 sm:$0xff]   ;;  %v481_v24 = vld [vmem:[%s651_s3 + $0x48] ss:$12 sps:$4 sm:$0xff]  }
   0x6   :  { %35 = vadd.xlane.f32.xlu0 %v32_v1  ;;  %443 = vmatpush3.bf16.msra.mxu1 %v470_v16  ;;  %v479_v23 = vld [vmem:[%s651_s3 + $0x4c] ss:$12 sps:$4 sm:$0xff]   ;;  %v482_v25 = vld [vmem:[%s651_s3 + $0x50] ss:$12 sps:$4 sm:$0xff]   ;;  %v483_v26 = vld [vmem:[%s651_s3 + $0x34] ss:$12 sps:$4 sm:$0xff]  }
   0x7   :  { %444 = vmatprep.subr.bf16.mxu1 %v499_v3  ;;  %v485_v28 = vld [vmem:[%s651_s3 + $0x30] ss:$12 sps:$4 sm:$0xff]   ;;  %v486_v29 = vld [vmem:[%s651_s3 + $0x38] ss:$12 sps:$4 sm:$0xff]   ;;  %v490_v32 = vld [vmem:[%s651_s3 + $0x20] ss:$12 sps:$4 sm:$0xff]  }
   0x8   :  { %244 = vmatpush1.bf16.msra.mxu0 %v469_v15  ;;  %v487_v30 = vld [vmem:[%s651_s3 + $0x1c] ss:$12 sps:$4 sm:$0xff]   ;;  %v489_v31 = vld [vmem:[%s651_s3 + $0x18] ss:$12 sps:$4 sm:$0xff]   ;;  %v493_v34 = vld [vmem:[%s651_s3] ss:$12 sps:$4 sm:$0xff]  }
   0x9   :  { %245 = vmatprep.subr.bf16.mxu0 %v471_v17  ;;  %v491_v33 = vld [vmem:[%s651_s3 + $0x4] ss:$12 sps:$4 sm:$0xff]   ;;  %v494_v35 = vld [vmem:[%s651_s3 + $0x8] ss:$12 sps:$4 sm:$0xff]   ;;  %v397_v44 = vld [vmem:[%s652_s1] ss:$0 sm:$0xff] }
   0xa   :  { %445 = vmatpush3.bf16.msra.mxu1 %v474_v19  ;;  %v398_v48 = vld [vmem:[%s653_s2] ss:$0 sm:$0xff]  ;;  %v349_v54 = vshrl.u32 %v348_v53, 7 }
   0xb   :  { %446 = vmatprep.subr.bf16.mxu1 %v499_v3  ;;  %v346_v56 = vld [vmem:[%s654_s4] sm:$0x7] }
   0xc   :  { %246 = vmatpush1.bf16.msra.mxu0 %v473_v18  ;;  %v358_v55 = vsub.s32 2, %v349_v54  ;;  %v350_v57 = vsub.s32 0, %v349_v54  ;;  %v354_v58 = vsub.s32 1, %v349_v54 }
   0xd   :  { %247 = vmatprep.subr.bf16.mxu0 %v475_v20 }
   0xe   :  { %447 = vmatpush3.bf16.msra.mxu1 %v478_v22  ;;  %v359_v59 = vrot.slane %v346_v56, %v358_v55  ;;  %v351_v60 = vrot.slane %v346_v56, %v350_v57  ;;  %v355_v61 = vrot.slane %v346_v56, %v354_v58 }
   0xf   :  { %448 = vmatprep.subr.bf16.mxu1 %v499_v3 }
  0x10   :  { %248 = vmatpush1.bf16.msra.mxu0 %v477_v21 }
  0x11   :  { %249 = vmatprep.subr.bf16.mxu0 %v479_v23 }
  0x12   :  { %449 = vmatpush3.bf16.msra.mxu1 %v482_v25 }
  0x13   :  { %450 = vmatprep.subr.bf16.mxu1 %v499_v3 }
  0x14   :  { %250 = vmatpush1.bf16.msra.mxu0 %v481_v24 }
  0x15   :  { %251 = vmatprep.subr.bf16.mxu0 %v483_v26 }
  0x16   :  { %451 = vmatpush3.bf16.msra.mxu1 %v486_v29 }
  0x17   :  { %452 = vmatprep.subr.bf16.mxu1 %v499_v3 }
  0x18   :  { %252 = vmatpush1.bf16.msra.mxu0 %v485_v28 }
  0x19   :  { %253 = vmatprep.subr.bf16.mxu0 %v487_v30 }
  0x1a   :  { %453 = vmatpush3.bf16.msra.mxu1 %v490_v32 }
  0x1b   :  { %454 = vmatprep.subr.bf16.mxu1 %v499_v3 }
  0x1c   :  { %254 = vmatpush1.bf16.msra.mxu0 %v489_v31 }
  0x1d   :  { %255 = vmatprep.subr.bf16.mxu0 %v491_v33 }
  0x1e   :  { %455 = vmatpush3.bf16.msra.mxu1 %v494_v35 }
  0x20   :  { %256 = vmatpush1.bf16.msra.mxu0 %v493_v34 }
  0x8b   :  { %v34_v6 = vpop.xlane.xlu0 %33 }
  0x8c   :  { %v38_v7 = vmul.f32 0.0078125, %v34_v6 }
  0x8e   :  { %v549_v8 = vsub.f32 %v31_v0, %v38_v7 }
  0x8f   :  { %v36_v9 = vpop.xlane.xlu0 %35 }
  0x90   :  { %v39_v10 = vmul.f32 0.0078125, %v36_v9  ;;  %v42_v11 = vmul.f32 %v549_v8, %v549_v8 }
  0x92   :  { %v553_v12 = vsub.f32 %v32_v1, %v39_v10  ;;  %44 = vadd.xlane.f32.xlu1 %v42_v11 }
  0x94   :  { %v43_v13 = vmul.f32 %v553_v12, %v553_v12 }
  0x96   :  { %46 = vadd.xlane.f32.xlu1 %v43_v13 }
 0x11b   :  { %v45_v36 = vpop.xlane.xlu1 %44 }
 0x11c   :  { %v48_v37 = vmul.f32 0.0078125, %v45_v36 }
 0x11e   :  { %v50_v38 = vadd.f32 1e-05, %v48_v37 }
 0x11f   :  { %v47_v39 = vpop.xlane.xlu1 %46 }
 0x120   :  { %495 = vrsqrt.f32 %v50_v38  ;;  %v49_v40 = vmul.f32 0.0078125, %v47_v39 }
 0x122   :  { %v51_v41 = vadd.f32 1e-05, %v49_v40 }
 0x124   :  { %497 = vrsqrt.f32 %v51_v41 }
 0x12d   :  { %v496_v42 = vpop.eup %495 }
 0x12e   :  { %v54_v43 = vmul.f32 %v496_v42, %v549_v8 }
 0x130   :  { %v63_v47 = vmul.f32 %v397_v44, %v54_v43 }
 0x131   :  { %v498_v45 = vpop.eup %497 }
 0x132   :  { %v55_v46 = vmul.f32 %v498_v45, %v553_v12  ;;  %v72_v50 = vadd.f32 %v398_v48, %v63_v47 }
 0x134   :  { %v64_v49 = vmul.f32 %v397_v44, %v55_v46 }
 0x136   :  { %v73_v51 = vadd.f32 %v398_v48, %v64_v49 }
 0x138   :  { %v74_v52 = vpack.c.bf16 %v73_v51, %v72_v50 }
 0x13a   :  { %274 = vmatmul.mubr.bf16.vlgmr.msra.gmra.mxu0 %v74_v52  ;;  %457 = vmatmul.mubr.bf16.vlgmr.msra.gmra.mxu1 %v74_v52 }
 0x1fa   :  { %v275_v62 = vpop.f32.mrf.mxu0  ;;  %v318_v63 = vpop.f32.mrf.mxu1 }
 0x1fb   :  { %v365_v0 = vadd.f32 %v359_v59, %v318_v63  ;;  %v363_v3 = vadd.f32 %v351_v60, %v275_v62 }
 0x1fc   :  { %v277_v1 = vpop.f32.mrf.mxu0  ;;  %v458_v2 = vpop.f32.mrf.mxu1 }
 0x1fd   :  { %v428_v4 = vpack.c.bf16 %v365_v0, %v365_v0  ;;  %v364_v5 = vadd.f32 %v355_v61, %v277_v1 }
 0x1fe   :  { %v279_v6 = vpop.f32.mrf.mxu0  ;;  %v321_v7 = vpop.f32.mrf.mxu1 }
 0x1ff   :  { %390 = vst [vmem:[%s655_s5 + $0x8] sm:$0xf] %v428_v4  ;;  %v427_v8 = vpack.c.bf16 %v364_v5, %v363_v3  ;;  %v368_v9 = vadd.f32 %v359_v59, %v321_v7  ;;  %v366_v12 = vadd.f32 %v351_v60, %v279_v6 }
 0x200   :  { %v281_v10 = vpop.f32.mrf.mxu0  ;;  %v459_v11 = vpop.f32.mrf.mxu1 }
 0x201   :  { %389 = vst [vmem:[%s655_s5] sm:$0xff] %v427_v8  ;;  %v430_v13 = vpack.c.bf16 %v368_v9, %v368_v9  ;;  %v367_v14 = vadd.f32 %v355_v61, %v281_v10 }
 0x203   :  { %392 = vst [vmem:[%s655_s5 + $0x14] sm:$0xf] %v430_v13  ;;  %v429_v15 = vpack.c.bf16 %v367_v14, %v366_v12 }
 0x205   :  { %391 = vst [vmem:[%s655_s5 + $0xc] sm:$0xff] %v429_v15 }

// kernel: _lambda_.15
= control target key start
LH: loop header
LB: loop body
LE: loop exit
PB: predicated region body
PF: predicated region fallthrough
CT: control target
= control target key end

     0   :  { %s1119_s15 = smov 0   ;;  %s1121_s16 = smov 0   ;;  %s1246_s0 = inlined_call_operand.vmem [shape: bf16[16,384], index: 0, kind: input, shape index: {}, may-alias: {0,1,2}]   ;;  %s1247_s1 = inlined_call_operand.vmem [shape: bf16[16,384], index: 1, kind: input, shape index: {}, may-alias: {0,1,2}]   ;;  %s1248_s2 = inlined_call_operand.vmem [shape: bf16[16,384], index: 2, kind: input, shape index: {}, may-alias: {0,1,2}]   ;;  %s1249_s3 = inlined_call_operand.vmem [shape: f32[2,1,8,8], index: 3, kind: input, shape index: {}]   ;;  %s1250_s4 = inlined_call_operand.vmem [shape: bf16[16,128], index: 4, kind: output, shape index: {}]  }
   0x1   :  { %s1123_s17 = smov 0  }
   0x2 LB: > { %s26_s18 = sadd.s32 1, %s1083_s16  ;;  %p927_p0 = scmp.ge.s32.totalorder %s1087_s17, 1  ;;  %s1087_s17 = sphi %s1123_s17, %s14_s17   ;;  %s1083_s16 = sphi %s1121_s16, %s1252_s16   ;;  %s1079_s15 = sphi %s1119_s15, %s1251_s15  }
   0x3   : > { %p28_p1 = scmp.ge.s32.totalorder %s26_s18, 2  ;;  %p228_p2 = scmp.lt.s32.totalorder %s1087_s17, 3 }
   0x5   : > { %s1254_s18 = smov (%p28_p1, %s26_s18), 0  ;;  %p229_p3 = pnand %p927_p0, %p228_p2 }
   0x6   : > { %p281_p4 = scmp.lt.s32.totalorder (!%p229_p3), %s1079_s15, 1  ;;  %s1091_s5 = smov (!%p229_p3), 96  }
   0x7   : > { %232 = sbr.rel (%p229_p3) target bundleno = 1421 (0x58d), region = 36  ;;  %s1092_s6 = smov (!%p229_p3), 64  }
   0x8   : > { %s1093_s7 = smov (!%p229_p3), 32  }
   0xc   : > { %v1089_v0 = vmov 0.0   ;;  %vm1090_vm0 = vmmov 0   ;;  %s1256_s15 = smov (!%p281_p4, %s1079_s15), 1  ;;  %vm325_vm1 = vcmask 261120   ;;  %vm374_vm2 = vcmask 64512  }
   0xd   : > { %966 = vmatprep.subr.bf16.mxu0 %v1089_v0  ;;  %968 = vmatprep.mubr.msk.bf16.mxu0 %vm1090_vm0, %v1089_v0  ;;  %s1146_s19 = smul.u32 12, %s1256_s15  ;;  %s931_s27 = sshll.u32 %s1256_s15, 3  ;;  %vm390_vm3 = vcmask 1043456   ;;  %vm792_vm4 = vcmask 523264   ;;  %vm794_vm5 = vcmask 785408  }
   0xe   : > { %972 = vmatprep.subr.bf16.mxu1 %v1089_v0  ;;  %974 = vmatprep.mubr.msk.bf16.mxu1 %vm1090_vm0, %v1089_v0  ;;  %s312_s30 = scalar_lea.vmem %s1249_s3, %s931_s27  ;;  %s932_s12 = sshll.u32 %s1256_s15, 2 }
   0xf   : > { %s947_s20 = sadd.s32 4, %s1146_s19  ;;  %s288_s26 = scalar_lea.vmem %s1246_s0, %s1146_s19  ;;  %v1165_v5 = vld [vmem:[%s312_s30] sm:$0xff] }
  0x10   : > { %s297_s23 = scalar_lea.vmem %s1247_s1, %s947_s20  ;;  %v322_v3 = vld [vmem:[%s288_s26] sm:$0xf]  ;;  %s949_s8 = sadd.s32 8, %s1146_s19 }
  0x11   : > { %v323_v1 = vld [vmem:[%s297_s23] sm:$0xf]  ;;  %v935_v13 = vcombine.low %v322_v3, %v322_v3  ;;  %s307_s11 = scalar_lea.vmem %s1248_s2, %s949_s8  ;;  %s319_s19 = scalar_lea.vmem %s1250_s4, %s932_s12 }
  0x12   : > { %v330_v2 = vsel %vm325_vm1, %v323_v1, 0  ;;  %v936_v12 = vcombine.low %v323_v1, %v323_v1  ;;  %v1179_v19 = vld [vmem:[%s307_s11] sm:$0xf] }
  0x13   : > { %967 = vmatpush3.bf16.xpose.msra.mxu0 %v330_v2  ;;  %v392_v20 = vsel %vm390_vm3, %v1179_v19, 0 }
  0x14   : > { %984 = vmatprep.subr.bf16.mxu0 %v1089_v0  ;;  %442 = vrot.lane.b32.xlu1 %v936_v12, %s1091_s5 }
  0x15   : > { %973 = vmatpush3.bf16.msra.mxu1 %v392_v20 }
  0x16   : > { %978 = vmatprep.subr.bf16.mxu1 %v1089_v0 }
  0x18   : > { %437 = vrot.lane.b32.xlu1 %v935_v13, %s1091_s5 }
  0x1a   : > { %969 = vmatmul.mubr.msk.bf16.vlgmr.msra.gmra.mxu0 %vm325_vm1, %v322_v3 }
  0x1b   : > { %986 = vmatprep.mubr.msk.bf16.mxu0 %vm1090_vm0, %v1089_v0 }
  0x1c   : > { %555 = vrot.lane.b32.xlu1 %v935_v13, %s1092_s6 }
  0x20   : > { %669 = vrot.lane.b32.xlu1 %v936_v12, %s1093_s7 }
  0x24   : > { %667 = vrot.lane.b32.xlu1 %v935_v13, %s1093_s7 }
  0x86   : > { %v443_v23 = vpop.permute.xlu1 %442 }
  0x87   : > { %v448_v25 = vsel %vm325_vm1, %v443_v23, 0 }
  0x8a   : > { %v438_v27 = vpop.permute.xlu1 %437 }
  0x8e   : > { %v556_v29 = vpop.permute.xlu1 %555 }
  0x92   : > { %v670_v31 = vpop.permute.xlu1 %669 }
  0x93   : > { %v675_v32 = vsel %vm325_vm1, %v670_v31, 0 }
  0x96   : > { %v668_v33 = vpop.permute.xlu1 %667 }
  0xda   : > { %v366_v4 = vpop.f32.mrf.mxu0 }
  0xdb   : > { %v372_v6 = vmul.f32 0.17677669, %v366_v4 }
  0xdc   : > { %v970_v7 = vpop.f32.mrf.mxu0 }
  0xdd   : > { %v373_v8 = vadd.f32 %v372_v6, %v1165_v5  ;;  %v938_v6 = vcombine.low %v1179_v19, %v1179_v19 }
  0xde   : > { %v369_v9 = vpop.f32.mrf.mxu0 }
  0xdf   : > { %v375_v10 = vsel %vm374_vm2, %v373_v8, -inf }
  0xe0   : > { %376 = vmax.xlane.f32.xlu0 %v375_v10  ;;  %v971_v11 = vpop.f32.mrf.mxu0 }
 0x169   : > { %v377_v14 = vpop.xlane.xlu0 %376 }
 0x16a   : > { %v378_v15 = vsub.f32 %v373_v8, %v377_v14 }
 0x16c   : > { %v379_v16 = vmul.f32 1.442695, %v378_v15 }
 0x16e   : > { %1049 = vpow2.f32 %v379_v16 }
 0x17b   : > { %v1050_v17 = vpop.eup %1049 }
 0x17c   : > { %v381_v18 = vsel %vm374_vm2, %v1050_v17, 0.0 }
 0x17d   : > { %382 = vadd.xlane.f32.xlu0 %v381_v18 }
 0x193   : > { %557 = vrot.lane.b32.xlu0 %v936_v12, %s1092_s6 }
 0x206   : > { %v383_v21 = vpop.xlane.xlu0 %382 }
 0x207   : > { %1051 = vrcp.f32 %v383_v21 }
 0x20a   : > { %v558_v28 = vpop.permute.xlu0 %557 }
 0x20b   : > { %v563_v30 = vsel %vm325_vm1, %v558_v28, 0 }
 0x214   : > { %v1052_v22 = vpop.eup %1051 }
 0x215   : > { %v385_v24 = vmul.f32 %v1052_v22, %v1050_v17 }
 0x217   : > { %v386_v26 = vpack.c.bf16 %v385_v24, %v385_v24 }
 0x219   : > { %975 = vmatmul.mubr.msk.bf16.vlgmr.msra.gmra.mxu1 %vm374_vm2, %v386_v26 }
 0x21a   : > { %979 = vmatpush3.bf16.xpose.msra.mxu1 %v448_v25  ;;  %980 = vmatprep.mubr.msk.bf16.mxu1 %vm1090_vm0, %v1089_v0 }
 0x21b   : > { %990 = vmatprep.subr.bf16.mxu1 %v1089_v0 }
 0x221   : > { %981 = vmatmul.mubr.msk.bf16.vlgmr.msra.gmra.mxu1 %vm325_vm1, %v438_v27 }
 0x222   : > { %991 = vmatpush3.bf16.xpose.msra.mxu1 %v563_v30  ;;  %992 = vmatprep.mubr.msk.bf16.mxu1 %vm1090_vm0, %v1089_v0 }
 0x223   : > { %1002 = vmatprep.subr.bf16.mxu1 %v1089_v0 }
 0x229   : > { %993 = vmatmul.mubr.msk.bf16.vlgmr.msra.gmra.mxu1 %vm325_vm1, %v556_v29 }
 0x22a   : > { %1003 = vmatpush3.bf16.xpose.msra.mxu1 %v675_v32  ;;  %1004 = vmatprep.mubr.msk.bf16.mxu1 %vm1090_vm0, %v1089_v0 }
 0x231   : > { %1005 = vmatmul.mubr.msk.bf16.vlgmr.msra.gmra.mxu1 %vm325_vm1, %v668_v33 }
 0x2d9   : > { %v1200_v34 = vpop.f32.mrf.mxu1 }
 0x2db   : > { %v976_v35 = vpop.f32.mrf.mxu1 }
 0x2dd   : > { %v431_v36 = vpop.f32.mrf.mxu1 }
 0x2df   : > { %v977_v37 = vpop.f32.mrf.mxu1 }
 0x2e1   : > { %v484_v38 = vpop.f32.mrf.mxu1 }
 0x2e2   : > { %v490_v39 = vmul.f32 0.17677669, %v484_v38 }
 0x2e3   : > { %v982_v40 = vpop.f32.mrf.mxu1 }
 0x2e4   : > { %v491_v41 = vadd.f32 %v490_v39, %v1165_v5 }
 0x2e5   : > { %v487_v42 = vpop.f32.mrf.mxu1 }
 0x2e6   : > { %v492_v43 = vsel %vm374_vm2, %v491_v41, -inf }
 0x2e7   : > { %493 = vmax.xlane.f32.xlu1 %v492_v43  ;;  %v983_v44 = vpop.f32.mrf.mxu1 }
 0x2e9   : > { %v599_v45 = vpop.f32.mrf.mxu1 }
 0x2ea   : > { %v605_v46 = vmul.f32 0.17677669, %v599_v45 }
 0x2eb   : > { %v994_v47 = vpop.f32.mrf.mxu1 }
 0x2ec   : > { %v606_v48 = vadd.f32 %v605_v46, %v1165_v5 }
 0x2ed   : > { %v602_v49 = vpop.f32.mrf.mxu1 }
 0x2ee   : > { %v607_v50 = vsel %vm374_vm2, %v606_v48, -inf }
 0x2ef   : > { %608 = vmax.xlane.f32.xlu0 %v607_v50  ;;  %v995_v51 = vpop.f32.mrf.mxu1 }
 0x2f1   : > { %v711_v52 = vpop.f32.mrf.mxu1 }
 0x2f2   : > { %v717_v53 = vmul.f32 0.17677669, %v711_v52 }
 0x2f3   : > { %v1006_v54 = vpop.f32.mrf.mxu1 }
 0x2f4   : > { %v718_v55 = vadd.f32 %v717_v53, %v1165_v5 }
 0x2f5   : > { %v714_v56 = vpop.f32.mrf.mxu1 }
 0x2f6   : > { %v719_v57 = vsel %vm374_vm2, %v718_v55, -inf }
 0x2f7   : > { %720 = vmax.xlane.f32.xlu1 %v719_v57  ;;  %v1007_v58 = vpop.f32.mrf.mxu1 }
 0x370   : > { %v494_v59 = vpop.xlane.xlu1 %493 }
 0x371   : > { %v495_v60 = vsub.f32 %v491_v41, %v494_v59 }
 0x373   : > { %v496_v61 = vmul.f32 1.442695, %v495_v60 }
 0x375   : > { %1053 = vpow2.f32 %v496_v61 }
 0x378   : > { %v609_v62 = vpop.xlane.xlu0 %608 }
 0x379   : > { %v610_v63 = vsub.f32 %v606_v48, %v609_v62 }
 0x37b   : > { %v611_v1 = vmul.f32 1.442695, %v610_v63 }
 0x37d   : > { %1055 = vpow2.f32 %v611_v1 }
 0x380   : > { %v721_v7 = vpop.xlane.xlu1 %720 }
 0x381   : > { %v722_v8 = vsub.f32 %v718_v55, %v721_v7 }
 0x382   : > { %v1054_v2 = vpop.eup %1053 }
 0x383   : > { %v498_v3 = vsel %vm374_vm2, %v1054_v2, 0.0  ;;  %v723_v9 = vmul.f32 1.442695, %v722_v8 }
 0x384   : > { %499 = vadd.xlane.f32.xlu1 %v498_v3 }
 0x385   : > { %1057 = vpow2.f32 %v723_v9 }
 0x38a   : > { %v1056_v4 = vpop.eup %1055 }
 0x38b   : > { %v613_v5 = vsel %vm374_vm2, %v1056_v4, 0.0 }
 0x38c   : > { %614 = vadd.xlane.f32.xlu0 %v613_v5 }
 0x392   : > { %v1058_v10 = vpop.eup %1057 }
 0x393   : > { %v725_v11 = vsel %vm374_vm2, %v1058_v10, 0.0 }
 0x395   : > { %619 = vrot.lane.b32.xlu1 %v938_v6, %s1092_s6 }
 0x3a2   : > { %507 = vrot.lane.b32.xlu0 %v938_v6, %s1091_s5 }
 0x3b9   : > { %726 = vadd.xlane.f32.xlu1 %v725_v11 }
 0x3ca   : > { %731 = vrot.lane.b32.xlu1 %v938_v6, %s1093_s7 }
 0x40d   : > { %v500_v12 = vpop.xlane.xlu1 %499 }
 0x40e   : > { %1059 = vrcp.f32 %v500_v12 }
 0x411   : > { %v620_v18 = vpop.permute.xlu1 %619 }
 0x412   : > { %v625_v20 = vsel %vm390_vm3, %v620_v18, 0 }
 0x415   : > { %v615_v13 = vpop.xlane.xlu0 %614 }
 0x416   : > { %1061 = vrcp.f32 %v615_v13 }
 0x419   : > { %v508_v14 = vpop.permute.xlu0 %507 }
 0x41a   : > { %v513_v15 = vsel %vm390_vm3, %v508_v14, 0 }
 0x41b   : > { %v1060_v16 = vpop.eup %1059  ;;  %985 = vmatpush3.bf16.msra.mxu0 %v513_v15 }
 0x41c   : > { %996 = vmatprep.subr.bf16.mxu0 %v1089_v0  ;;  %v502_v17 = vmul.f32 %v1060_v16, %v1054_v2 }
 0x41e   : > { %v503_v19 = vpack.c.bf16 %v502_v17, %v502_v17 }
 0x420   : > { %987 = vmatmul.mubr.msk.bf16.vlgmr.msra.gmra.mxu0 %vm374_vm2, %v503_v19 }
 0x421   : > { %997 = vmatpush3.bf16.msra.mxu0 %v625_v20  ;;  %998 = vmatprep.mubr.msk.bf16.mxu0 %vm1090_vm0, %v1089_v0 }
 0x422   : > { %1008 = vmatprep.subr.bf16.mxu0 %v1089_v0 }
 0x423   : > { %v1062_v21 = vpop.eup %1061 }
 0x424   : > { %v617_v22 = vmul.f32 %v1062_v21, %v1056_v4 }
 0x426   : > { %v618_v23 = vpack.c.bf16 %v617_v22, %v617_v22 }
 0x428   : > { %999 = vmatmul.mubr.msk.bf16.vlgmr.msra.gmra.mxu0 %vm374_vm2, %v618_v23 }
 0x429   : > { %1010 = vmatprep.mubr.msk.bf16.mxu0 %vm1090_vm0, %v1089_v0 }
 0x442   : > { %v727_v24 = vpop.xlane.xlu1 %726 }
 0x443   : > { %1063 = vrcp.f32 %v727_v24 }
 0x446   : > { %v732_v25 = vpop.permute.xlu1 %731 }
 0x447   : > { %v737_v26 = vsel %vm390_vm3, %v732_v25, 0 }
 0x448   : > { %1009 = vmatpush3.bf16.msra.mxu0 %v737_v26 }
 0x450   : > { %v1064_v27 = vpop.eup %1063 }
 0x451   : > { %v729_v28 = vmul.f32 %v1064_v27, %v1058_v10 }
 0x453   : > { %v730_v29 = vpack.c.bf16 %v729_v28, %v729_v28 }
 0x455   : > { %1011 = vmatmul.mubr.msk.bf16.vlgmr.msra.gmra.mxu0 %vm374_vm2, %v730_v29 }
 0x4e0   : > { %v549_v30 = vpop.f32.mrf.mxu0 }
 0x4e1   : > { %780 = vrot.lane.b32.xlu0 %v549_v30, %s1093_s7 }
 0x4e2   : > { %v988_v31 = vpop.f32.mrf.mxu0 }
 0x4e4   : > { %v552_v32 = vpop.f32.mrf.mxu0 }
 0x4e6   : > { %v989_v33 = vpop.f32.mrf.mxu0 }
 0x4e8   : > { %v661_v35 = vpop.f32.mrf.mxu0 }
 0x4e9   : > { %784 = vrot.lane.b32.xlu1 %v661_v35, %s1092_s6 }
 0x4ea   : > { %v1000_v0 = vpop.f32.mrf.mxu0 }
 0x4ec   : > { %v664_v36 = vpop.f32.mrf.mxu0 }
 0x4ee   : > { %v1001_v37 = vpop.f32.mrf.mxu0 }
 0x515   : > { %v773_v38 = vpop.f32.mrf.mxu0 }
 0x516   : > { %788 = vrot.lane.b32.xlu0 %v773_v38, %s1091_s5 }
 0x517   : > { %v1012_v39 = vpop.f32.mrf.mxu0 }
 0x519   : > { %v776_v40 = vpop.f32.mrf.mxu0 }
 0x51b   : > { %v1013_v41 = vpop.f32.mrf.mxu0 }
 0x553   : > { %v781_v42 = vpop.permute.xlu0 %780 }
 0x554   : > { %v791_v44 = vsel %vm325_vm1, %v1200_v34, %v781_v42 }
 0x55b   : > { %v785_v43 = vpop.permute.xlu1 %784 }
 0x55c   : > { %v793_v45 = vsel %vm792_vm4, %v791_v44, %v785_v43 }
 0x588   : > { %v789_v46 = vpop.permute.xlu0 %788 }
 0x589   : > { %v795_v47 = vsel %vm794_vm5, %v793_v45, %v789_v46 }
 0x58a   : > { %v796_v48 = vpack.c.bf16 %v795_v47, %v795_v47 }
 0x58c   : > { %797 = vst [vmem:[%s319_s19] sm:$0xf] %v796_v48 }
 0x58d PF: > { %s14_s17 = sadd.s32 1, %s1087_s17   ;;  %s1251_s15 = smov %s1083_s16 }
 0x58e   : > { %p11_p5 = scmp.ge.s32.totalorder %s14_s17, 4   ;;  %s1252_s16 = smov %s1254_s18 }
 0x590   :  { %13 = sbr.rel (!%p11_p5) target bundleno = 2 (0x2), region = 75 }

// kernel: _lambda_.24
= control target key start
LH: loop header
LB: loop body
LE: loop exit
PB: predicated region body
PF: predicated region fallthrough
CT: control target
= control target key end

     0   :  { %v318_v2 = vmov 0.0   ;;  %vm319_vm0 = vmmov 0   ;;  %s395_s0 = inlined_call_operand.vmem [shape: f32[16,128], index: 0, kind: input, shape index: {}]   ;;  %s396_s3 = inlined_call_operand.vmem [shape: bf16[128,128], index: 3, kind: input, shape index: {}]   ;;  %s397_s1 = inlined_call_operand.vmem [shape: f32[1,128], index: 1, kind: input, shape index: {}]   ;;  %s398_s2 = inlined_call_operand.vmem [shape: f32[1,128], index: 2, kind: input, shape index: {}]   ;;  %s399_s4 = inlined_call_operand.vmem [shape: f32[1,128], index: 4, kind: input, shape index: {}]   ;;  %s400_s5 = inlined_call_operand.vmem [shape: f32[16,128], index: 5, kind: output, shape index: {}]  }
   0x1   :  { %v27_v0 = vld [vmem:[%s395_s0] sm:$0xff]  ;;  %v28_v1 = vld [vmem:[%s395_s0 + $0x8] sm:$0xff]  ;;  %276 = vmatprep.subr.bf16.mxu0 %v318_v2  ;;  %v298_v3 = vld [vmem:[%s396_s3 + $0x38] sm:$0xff]   ;;  %292 = vmatprep.mubr.msk.bf16.mxu0 %vm319_vm0, %v318_v2 }
   0x2   :  { %29 = vadd.xlane.f32.xlu0 %v27_v0  ;;  %277 = vmatpush3.bf16.msra.mxu0 %v298_v3  ;;  %v299_v12 = vld [vmem:[%s396_s3 + $0x30] sm:$0xff]   ;;  %v300_v13 = vld [vmem:[%s396_s3 + $0x28] sm:$0xff]   ;;  %v301_v14 = vld [vmem:[%s396_s3 + $0x20] sm:$0xff]  }
   0x3   :  { %278 = vmatprep.subr.bf16.mxu0 %v318_v2  ;;  %v302_v15 = vld [vmem:[%s396_s3 + $0x18] sm:$0xff]   ;;  %v303_v16 = vld [vmem:[%s396_s3 + $0x10] sm:$0xff]   ;;  %v304_v17 = vld [vmem:[%s396_s3 + $0x8] sm:$0xff]  }
   0x4   :  { %v305_v18 = vld [vmem:[%s396_s3] sm:$0xff]  }
   0x5   :  { %v256_v27 = vld [vmem:[%s397_s1] ss:$0 sm:$0xff] }
   0x6   :  { %31 = vadd.xlane.f32.xlu0 %v28_v1  ;;  %279 = vmatpush3.bf16.msra.mxu0 %v299_v12  ;;  %v257_v31 = vld [vmem:[%s398_s2] ss:$0 sm:$0xff] }
   0x7   :  { %280 = vmatprep.subr.bf16.mxu0 %v318_v2  ;;  %v266_v36 = vld [vmem:[%s399_s4] ss:$0 sm:$0xff] }
   0xa   :  { %281 = vmatpush3.bf16.msra.mxu0 %v300_v13 }
   0xb   :  { %282 = vmatprep.subr.bf16.mxu0 %v318_v2 }
   0xe   :  { %283 = vmatpush3.bf16.msra.mxu0 %v301_v14 }
   0xf   :  { %284 = vmatprep.subr.bf16.mxu0 %v318_v2 }
  0x12   :  { %285 = vmatpush3.bf16.msra.mxu0 %v302_v15 }
  0x13   :  { %286 = vmatprep.subr.bf16.mxu0 %v318_v2 }
  0x16   :  { %287 = vmatpush3.bf16.msra.mxu0 %v303_v16 }
  0x17   :  { %288 = vmatprep.subr.bf16.mxu0 %v318_v2 }
  0x1a   :  { %289 = vmatpush3.bf16.msra.mxu0 %v304_v17 }
  0x1b   :  { %290 = vmatprep.subr.bf16.mxu0 %v318_v2 }
  0x1e   :  { %291 = vmatpush3.bf16.msra.mxu0 %v305_v18 }
  0x8b   :  { %v30_v4 = vpop.xlane.xlu0 %29 }
  0x8c   :  { %v34_v5 = vmul.f32 0.0078125, %v30_v4 }
  0x8e   :  { %v36_v6 = vsub.f32 %v27_v0, %v34_v5 }
  0x8f   :  { %v32_v7 = vpop.xlane.xlu0 %31 }
  0x90   :  { %v35_v8 = vmul.f32 0.0078125, %v32_v7  ;;  %v38_v9 = vmul.f32 %v36_v6, %v36_v6 }
  0x92   :  { %v37_v10 = vsub.f32 %v28_v1, %v35_v8  ;;  %40 = vadd.xlane.f32.xlu1 %v38_v9 }
  0x94   :  { %v39_v11 = vmul.f32 %v37_v10, %v37_v10 }
  0x96   :  { %42 = vadd.xlane.f32.xlu1 %v39_v11 }
 0x11b   :  { %v41_v19 = vpop.xlane.xlu1 %40 }
 0x11c   :  { %v44_v20 = vmul.f32 0.0078125, %v41_v19 }
 0x11e   :  { %v46_v21 = vadd.f32 1e-05, %v44_v20 }
 0x11f   :  { %v43_v22 = vpop.xlane.xlu1 %42 }
 0x120   :  { %306 = vrsqrt.f32 %v46_v21  ;;  %v45_v23 = vmul.f32 0.0078125, %v43_v22 }
 0x122   :  { %v47_v24 = vadd.f32 1e-05, %v45_v23 }
 0x124   :  { %308 = vrsqrt.f32 %v47_v24 }
 0x12d   :  { %v307_v25 = vpop.eup %306 }
 0x12e   :  { %v50_v26 = vmul.f32 %v307_v25, %v36_v6 }
 0x130   :  { %v59_v30 = vmul.f32 %v256_v27, %v50_v26 }
 0x131   :  { %v309_v28 = vpop.eup %308 }
 0x132   :  { %v51_v29 = vmul.f32 %v309_v28, %v37_v10  ;;  %v68_v33 = vadd.f32 %v257_v31, %v59_v30 }
 0x134   :  { %v60_v32 = vmul.f32 %v256_v27, %v51_v29 }
 0x136   :  { %v69_v34 = vadd.f32 %v257_v31, %v60_v32 }
 0x138   :  { %v70_v35 = vpack.c.bf16 %v69_v34, %v68_v33 }
 0x13a   :  { %293 = vmatmul.mubr.bf16.vlgmr.msra.gmra.mxu0 %v70_v35 }
 0x1fa   :  { %v171_v37 = vpop.f32.mrf.mxu0 }
 0x1fb   :  { %v194_v38 = vadd.f32 %v266_v36, %v171_v37 }
 0x1fc   :  { %v294_v39 = vpop.f32.mrf.mxu0 }
 0x1fd   :  { %v198_v40 = vmul.f32 0.70710677, %v194_v38  ;;  %v196_v21 = vmul.f32 0.5, %v194_v38 }
 0x1fe   :  { %v174_v41 = vpop.f32.mrf.mxu0 }
 0x1ff   :  { %v200_v42 = vand.u32 2147483647, %v198_v40  ;;  %v195_v43 = vadd.f32 %v266_v36, %v174_v41  ;;  %vm240_vm1 = vcmp.ge.f32.partialorder %v198_v40, 0.0 }
 0x200   :  { %v295_v44 = vpop.f32.mrf.mxu0 }
 0x201   :  { %v202_v45 = vmul.f32 0.3275911, %v200_v42  ;;  %v199_v46 = vmul.f32 0.70710677, %v195_v43  ;;  %v228_v51 = vsub.f32 0.0, %v200_v42  ;;  %v197_v26 = vmul.f32 0.5, %v195_v43 }
 0x203   :  { %v204_v47 = vadd.f32 1.0, %v202_v45  ;;  %v201_v48 = vand.u32 2147483647, %v199_v46  ;;  %v230_v52 = vmul.f32 %v228_v51, %v200_v42  ;;  %vm241_vm2 = vcmp.ge.f32.partialorder %v199_v46, 0.0 }
 0x205   :  { %310 = vrcp.f32 %v204_v47  ;;  %v203_v49 = vmul.f32 0.3275911, %v201_v48  ;;  %v229_v53 = vsub.f32 0.0, %v201_v48  ;;  %v232_v56 = vmul.f32 1.442695, %v230_v52 }
 0x207   :  { %v205_v50 = vadd.f32 1.0, %v203_v49  ;;  %v231_v57 = vmul.f32 %v229_v53, %v201_v48 }
 0x209   :  { %312 = vrcp.f32 %v205_v50  ;;  %v234_v62 = vmul.f32 1.442695, %v231_v57 }
 0x20a   :  { %314 = vpow2.f32 %v232_v56 }
 0x20b   :  { %316 = vpow2.f32 %v234_v62 }
 0x212   :  { %v311_v54 = vpop.eup %310 }
 0x213   :  { %v210_v55 = vmul.f32 1.0614054, %v311_v54 }
 0x215   :  { %v212_v58 = vadd.f32 -1.4531521, %v210_v55 }
 0x216   :  { %v313_v59 = vpop.eup %312 }
 0x217   :  { %v214_v60 = vmul.f32 %v311_v54, %v212_v58  ;;  %v211_v61 = vmul.f32 1.0614054, %v313_v59  ;;  %v315_v11 = vpop.eup %314 }
 0x218   :  { %v317_v16 = vpop.eup %316 }
 0x219   :  { %v216_v63 = vadd.f32 1.4214138, %v214_v60  ;;  %v213_v0 = vadd.f32 -1.4531521, %v211_v61 }
 0x21b   :  { %v218_v1 = vmul.f32 %v311_v54, %v216_v63  ;;  %v215_v2 = vmul.f32 %v313_v59, %v213_v0 }
 0x21d   :  { %v220_v3 = vadd.f32 -0.28449672, %v218_v1  ;;  %v217_v4 = vadd.f32 1.4214138, %v215_v2 }
 0x21f   :  { %v222_v5 = vmul.f32 %v311_v54, %v220_v3  ;;  %v219_v6 = vmul.f32 %v313_v59, %v217_v4 }
 0x221   :  { %v224_v7 = vadd.f32 0.2548296, %v222_v5  ;;  %v221_v8 = vadd.f32 -0.28449672, %v219_v6 }
 0x223   :  { %v226_v9 = vmul.f32 %v311_v54, %v224_v7  ;;  %v223_v10 = vmul.f32 %v313_v59, %v221_v8 }
 0x225   :  { %v236_v12 = vmul.f32 %v315_v11, %v226_v9  ;;  %v225_v13 = vadd.f32 0.2548296, %v223_v10 }
 0x227   :  { %v238_v14 = vsub.f32 1.0, %v236_v12  ;;  %v227_v15 = vmul.f32 %v313_v59, %v225_v13 }
 0x229   :  { %v242_v17 = vsub.f32 0.0, %v238_v14  ;;  %v237_v18 = vmul.f32 %v317_v16, %v227_v15 }
 0x22b   :  { %v244_v19 = vsel %vm240_vm1, %v238_v14, %v242_v17  ;;  %v239_v20 = vsub.f32 1.0, %v237_v18 }
 0x22c   :  { %v246_v22 = vadd.f32 1.0, %v244_v19 }
 0x22d   :  { %v243_v23 = vsub.f32 0.0, %v239_v20 }
 0x22e   :  { %v248_v24 = vmul.f32 %v246_v22, %v196_v21 }
 0x22f   :  { %v245_v25 = vsel %vm241_vm2, %v239_v20, %v243_v23 }
 0x230   :  { %250 = vst [vmem:[%s400_s5] sm:$0xff] %v248_v24  ;;  %v247_v27 = vadd.f32 1.0, %v245_v25 }
 0x232   :  { %v249_v28 = vmul.f32 %v247_v27, %v197_v26 }
 0x234   :  { %251 = vst [vmem:[%s400_s5 + $0x8] sm:$0xff] %v249_v28 }

// kernel: _lambda_.18
= control target key start
LH: loop header
LB: loop body
LE: loop exit
PB: predicated region body
PF: predicated region fallthrough
CT: control target
= control target key end

     0   :  { %s389_s1 = inlined_call_operand.vmem [shape: bf16[256,128], index: 1, kind: input, shape index: {}]   ;;  %s390_s0 = inlined_call_operand.vmem [shape: bf16[16,256], index: 0, kind: input, shape index: {}]   ;;  %s391_s2 = inlined_call_operand.vmem [shape: f32[1,128], index: 2, kind: input, shape index: {}]   ;;  %s392_s3 = inlined_call_operand.vmem [shape: f32[16,128], index: 3, kind: input, shape index: {}]   ;;  %s393_s4 = inlined_call_operand.vmem [shape: f32[16,128], index: 4, kind: output, shape index: {}]  }
   0x1   :  { %v276_v0 = vld [vmem:[%s389_s1 + $0x78] sm:$0xff]   ;;  %v278_v2 = vld [vmem:[%s389_s1 + $0x70] sm:$0xff]   ;;  %v280_v4 = vld [vmem:[%s389_s1 + $0x68] sm:$0xff]  }
   0x2   :  { %v277_v1 = vld [vmem:[%s389_s1 + $0x38] sm:$0xff]   ;;  %254 = vmatprep.subr.bf16.mxu0 %v276_v0  ;;  %v279_v3 = vld [vmem:[%s389_s1 + $0x30] sm:$0xff]   ;;  %v281_v5 = vld [vmem:[%s389_s1 + $0x28] sm:$0xff]  }
   0x3   :  { %255 = vmatpush3.bf16.msra.mxu0 %v277_v1  ;;  %v282_v6 = vld [vmem:[%s389_s1 + $0x60] sm:$0xff]   ;;  %v284_v8 = vld [vmem:[%s389_s1 + $0x58] sm:$0xff]   ;;  %v286_v10 = vld [vmem:[%s389_s1 + $0x50] sm:$0xff]  }
   0x4   :  { %256 = vmatprep.subr.bf16.mxu0 %v278_v2  ;;  %v283_v7 = vld [vmem:[%s389_s1 + $0x20] sm:$0xff]   ;;  %v285_v9 = vld [vmem:[%s389_s1 + $0x18] sm:$0xff]   ;;  %v287_v12 = vld [vmem:[%s389_s1 + $0x10] sm:$0xff]  }
   0x5   :  { %v294_v11 = vld [vmem:[%s390_s0 + $0x4] ss:$8 sps:$4 sm:$0xff]   ;;  %v292_v17 = vld [vmem:[%s390_s0] ss:$8 sps:$4 sm:$0xff]  }
   0x6   :  { %198 = vmatprep.mubr.bf16.mxu0 %v294_v11  ;;  %v288_v13 = vld [vmem:[%s389_s1 + $0x48] sm:$0xff]   ;;  %v290_v15 = vld [vmem:[%s389_s1 + $0x40] sm:$0xff]  }
   0x7   :  { %257 = vmatpush3.bf16.msra.mxu0 %v279_v3  ;;  %v289_v14 = vld [vmem:[%s389_s1 + $0x8] sm:$0xff]   ;;  %v291_v16 = vld [vmem:[%s389_s1] sm:$0xff]  }
   0x8   :  { %258 = vmatprep.subr.bf16.mxu0 %v280_v4  ;;  %v253_v20 = vld [vmem:[%s391_s2] ss:$0 sm:$0xff]  ;;  %v226_v28 = vld [vmem:[%s392_s3 + $0x8] sm:$0xff] }
   0x9   :  { %v225_v22 = vld [vmem:[%s392_s3] sm:$0xff] }
   0xb   :  { %259 = vmatpush3.bf16.msra.mxu0 %v281_v5 }
   0xc   :  { %260 = vmatprep.subr.bf16.mxu0 %v282_v6 }
   0xf   :  { %261 = vmatpush3.bf16.msra.mxu0 %v283_v7 }
  0x10   :  { %262 = vmatprep.subr.bf16.mxu0 %v284_v8 }
  0x13   :  { %263 = vmatpush3.bf16.msra.mxu0 %v285_v9 }
  0x14   :  { %264 = vmatprep.subr.bf16.mxu0 %v286_v10 }
  0x17   :  { %265 = vmatpush3.bf16.msra.mxu0 %v287_v12 }
  0x18   :  { %266 = vmatprep.subr.bf16.mxu0 %v288_v13 }
  0x1b   :  { %267 = vmatpush3.bf16.msra.mxu0 %v289_v14 }
  0x1c   :  { %268 = vmatprep.subr.bf16.mxu0 %v290_v15 }
  0x1f   :  { %269 = vmatpush3.bf16.msra.mxu0 %v291_v16 }
  0x22   :  { %199 = vmatmul.mubr.bf16.vlgmr.msra.gmra.mxu0 %v292_v17 }
  0xe2   :  { %v270_v18 = vpop.f32.mrf.mxu0 }
  0xe4   :  { %v271_v19 = vpop.f32.mrf.mxu0 }
  0xe5   :  { %v272_v21 = vadd.f32 %v271_v19, %v270_v18 }
  0xe6   :  { %v273_v23 = vpop.f32.mrf.mxu0 }
  0xe7   :  { %v223_v24 = vadd.f32 %v272_v21, %v253_v20 }
  0xe8   :  { %v274_v25 = vpop.f32.mrf.mxu0 }
  0xe9   :  { %v227_v26 = vadd.f32 %v225_v22, %v223_v24  ;;  %v275_v27 = vadd.f32 %v274_v25, %v273_v23 }
  0xeb   :  { %229 = vst [vmem:[%s393_s4] sm:$0xff] %v227_v26  ;;  %v224_v29 = vadd.f32 %v275_v27, %v253_v20 }
  0xed   :  { %v228_v30 = vadd.f32 %v226_v28, %v224_v29 }
  0xef   :  { %230 = vst [vmem:[%s393_s4 + $0x8] sm:$0xff] %v228_v30 }

// kernel: _lambda_.17
= control target key start
LH: loop header
LB: loop body
LE: loop exit
PB: predicated region body
PF: predicated region fallthrough
CT: control target
= control target key end

     0   :  { %v440_v21 = vmov 0   ;;  %v233_v44 = vlaneseq  ;;  %s572_s0 = inlined_call_operand.vmem [shape: f32[16,128], index: 0, kind: input, shape index: {}]   ;;  %s573_s3 = inlined_call_operand.vmem [shape: bf16[128,256], index: 3, kind: input, shape index: {}]   ;;  %s574_s1 = inlined_call_operand.vmem [shape: f32[1,128], index: 1, kind: input, shape index: {}]   ;;  %s575_s2 = inlined_call_operand.vmem [shape: f32[1,128], index: 2, kind: input, shape index: {}]   ;;  %s576_s4 = inlined_call_operand.vmem [shape: f32[1,256], index: 4, kind: input, shape index: {}]   ;;  %s577_s5 = inlined_call_operand.vmem [shape: bf16[16,256], index: 5, kind: output, shape index: {}]  }
   0x1   :  { %v29_v0 = vld [vmem:[%s572_s0] sm:$0xff]  ;;  %v30_v1 = vld [vmem:[%s572_s0 + $0x8] sm:$0xff]  ;;  %v396_v2 = vld [vmem:[%s573_s3 + $0x74] ss:$8 sps:$4 sm:$0xff]   ;;  %205 = vmatprep.mubr.bf16.mxu0 %v440_v21 }
   0x2   :  { %31 = vadd.xlane.f32.xlu0 %v29_v0  ;;  %v398_v3 = vld [vmem:[%s573_s3 + $0x70] ss:$8 sps:$4 sm:$0xff]   ;;  %173 = vmatprep.subr.bf16.mxu0 %v396_v2  ;;  %v399_v12 = vld [vmem:[%s573_s3 + $0x64] ss:$8 sps:$4 sm:$0xff]   ;;  %v401_v13 = vld [vmem:[%s573_s3 + $0x60] ss:$8 sps:$4 sm:$0xff]  }
   0x3   :  { %174 = vmatpush1.bf16.msra.mxu0 %v398_v3  ;;  %v402_v14 = vld [vmem:[%s573_s3 + $0x54] ss:$8 sps:$4 sm:$0xff]   ;;  %v404_v15 = vld [vmem:[%s573_s3 + $0x50] ss:$8 sps:$4 sm:$0xff]   ;;  %v405_v16 = vld [vmem:[%s573_s3 + $0x44] ss:$8 sps:$4 sm:$0xff]  }
   0x4   :  { %175 = vmatprep.subr.bf16.mxu0 %v399_v12  ;;  %v407_v17 = vld [vmem:[%s573_s3 + $0x40] ss:$8 sps:$4 sm:$0xff]   ;;  %v408_v18 = vld [vmem:[%s573_s3 + $0x34] ss:$8 sps:$4 sm:$0xff]   ;;  %v410_v19 = vld [vmem:[%s573_s3 + $0x30] ss:$8 sps:$4 sm:$0xff]  }
   0x5   :  { %v411_v20 = vld [vmem:[%s573_s3 + $0x24] ss:$8 sps:$4 sm:$0xff]   ;;  %v413_v22 = vld [vmem:[%s573_s3 + $0x20] ss:$8 sps:$4 sm:$0xff]   ;;  %v414_v23 = vld [vmem:[%s573_s3 + $0x14] ss:$8 sps:$4 sm:$0xff]  }
   0x6   :  { %33 = vadd.xlane.f32.xlu0 %v30_v1  ;;  %v416_v24 = vld [vmem:[%s573_s3 + $0x10] ss:$8 sps:$4 sm:$0xff]   ;;  %v417_v25 = vld [vmem:[%s573_s3 + $0x4] ss:$8 sps:$4 sm:$0xff]   ;;  %v419_v26 = vld [vmem:[%s573_s3] ss:$8 sps:$4 sm:$0xff]  }
   0x7   :  { %176 = vmatpush1.bf16.msra.mxu0 %v401_v13  ;;  %v373_v35 = vld [vmem:[%s574_s1] ss:$0 sm:$0xff]  ;;  %v234_v45 = vshrl.u32 %v233_v44, 7 }
   0x8   :  { %177 = vmatprep.subr.bf16.mxu0 %v402_v14  ;;  %v374_v39 = vld [vmem:[%s575_s2] ss:$0 sm:$0xff] }
   0x9   :  { %v235_v46 = vsub.s32 0, %v234_v45  ;;  %v231_v47 = vld [vmem:[%s576_s4] sm:$0x3]  ;;  %v239_v48 = vsub.s32 1, %v234_v45 }
   0xb   :  { %178 = vmatpush1.bf16.msra.mxu0 %v404_v15  ;;  %v236_v49 = vrot.slane %v231_v47, %v235_v46  ;;  %v240_v50 = vrot.slane %v231_v47, %v239_v48 }
   0xc   :  { %179 = vmatprep.subr.bf16.mxu0 %v405_v16 }
   0xf   :  { %180 = vmatpush1.bf16.msra.mxu0 %v407_v17 }
  0x10   :  { %181 = vmatprep.subr.bf16.mxu0 %v408_v18 }
  0x13   :  { %182 = vmatpush1.bf16.msra.mxu0 %v410_v19 }
  0x14   :  { %183 = vmatprep.subr.bf16.mxu0 %v411_v20 }
  0x17   :  { %184 = vmatpush1.bf16.msra.mxu0 %v413_v22 }
  0x18   :  { %185 = vmatprep.subr.bf16.mxu0 %v414_v23 }
  0x1b   :  { %186 = vmatpush1.bf16.msra.mxu0 %v416_v24 }
  0x1c   :  { %187 = vmatprep.subr.bf16.mxu0 %v417_v25 }
  0x1f   :  { %188 = vmatpush1.bf16.msra.mxu0 %v419_v26 }
  0x8b   :  { %v32_v4 = vpop.xlane.xlu0 %31 }
  0x8c   :  { %v36_v5 = vmul.f32 0.0078125, %v32_v4 }
  0x8e   :  { %v38_v6 = vsub.f32 %v29_v0, %v36_v5 }
  0x8f   :  { %v34_v7 = vpop.xlane.xlu0 %33 }
  0x90   :  { %v37_v8 = vmul.f32 0.0078125, %v34_v7  ;;  %v40_v9 = vmul.f32 %v38_v6, %v38_v6 }
  0x92   :  { %v39_v10 = vsub.f32 %v30_v1, %v37_v8  ;;  %42 = vadd.xlane.f32.xlu1 %v40_v9 }
  0x94   :  { %v41_v11 = vmul.f32 %v39_v10, %v39_v10 }
  0x96   :  { %44 = vadd.xlane.f32.xlu1 %v41_v11 }
 0x11b   :  { %v43_v27 = vpop.xlane.xlu1 %42 }
 0x11c   :  { %v46_v28 = vmul.f32 0.0078125, %v43_v27 }
 0x11e   :  { %v48_v29 = vadd.f32 1e-05, %v46_v28 }
 0x11f   :  { %v45_v30 = vpop.xlane.xlu1 %44 }
 0x120   :  { %420 = vrsqrt.f32 %v48_v29  ;;  %v47_v31 = vmul.f32 0.0078125, %v45_v30 }
 0x122   :  { %v49_v32 = vadd.f32 1e-05, %v47_v31 }
 0x124   :  { %422 = vrsqrt.f32 %v49_v32 }
 0x12d   :  { %v421_v33 = vpop.eup %420 }
 0x12e   :  { %v52_v34 = vmul.f32 %v421_v33, %v38_v6 }
 0x130   :  { %v61_v38 = vmul.f32 %v373_v35, %v52_v34 }
 0x131   :  { %v423_v36 = vpop.eup %422 }
 0x132   :  { %v53_v37 = vmul.f32 %v423_v36, %v39_v10  ;;  %v70_v41 = vadd.f32 %v374_v39, %v61_v38 }
 0x134   :  { %v62_v40 = vmul.f32 %v373_v35, %v53_v37 }
 0x136   :  { %v71_v42 = vadd.f32 %v374_v39, %v62_v40 }
 0x138   :  { %v72_v43 = vpack.c.bf16 %v71_v42, %v70_v41 }
 0x13a   :  { %206 = vmatmul.mubr.bf16.vlgmr.msra.gmra.mxu0 %v72_v43 }
 0x1fa   :  { %v207_v51 = vpop.f32.mrf.mxu0 }
 0x1fb   :  { %v534_v52 = vadd.f32 %v236_v49, %v207_v51 }
 0x1fc   :  { %v209_v53 = vpop.f32.mrf.mxu0 }
 0x1fd   :  { %v537_v54 = vmul.f32 0.70710677, %v534_v52  ;;  %v539_v55 = vadd.f32 %v240_v50, %v209_v53 }
 0x1fe   :  { %v211_v56 = vpop.f32.mrf.mxu0 }
 0x1ff   :  { %v255_v57 = vand.u32 2147483647, %v537_v54  ;;  %v543_v58 = vmul.f32 0.70710677, %v539_v55  ;;  %v545_v59 = vadd.f32 %v236_v49, %v211_v56  ;;  %vm335_vm0 = vcmp.ge.f32.partialorder %v537_v54, 0.0 }
 0x200   :  { %v213_v60 = vpop.f32.mrf.mxu0 }
 0x201   :  { %v259_v61 = vmul.f32 0.3275911, %v255_v57  ;;  %v256_v62 = vand.u32 2147483647, %v543_v58  ;;  %v549_v63 = vmul.f32 0.70710677, %v545_v59  ;;  %v551_v0 = vadd.f32 %v240_v50, %v213_v60 }
 0x202   :  { %v311_v11 = vsub.f32 0.0, %v255_v57  ;;  %vm336_vm1 = vcmp.ge.f32.partialorder %v543_v58, 0.0 }
 0x203   :  { %v263_v1 = vadd.f32 1.0, %v259_v61  ;;  %v260_v2 = vmul.f32 0.3275911, %v256_v62  ;;  %v257_v3 = vand.u32 2147483647, %v549_v63  ;;  %v312_v12 = vsub.f32 0.0, %v256_v62 }
 0x204   :  { %v555_v4 = vmul.f32 0.70710677, %v551_v0  ;;  %v315_v13 = vmul.f32 %v311_v11, %v255_v57  ;;  %vm337_vm2 = vcmp.ge.f32.partialorder %v549_v63, 0.0 }
 0x205   :  { %424 = vrcp.f32 %v263_v1  ;;  %v264_v5 = vadd.f32 1.0, %v260_v2  ;;  %v261_v6 = vmul.f32 0.3275911, %v257_v3  ;;  %v313_v14 = vsub.f32 0.0, %v257_v3 }
 0x206   :  { %v258_v7 = vand.u32 2147483647, %v555_v4  ;;  %v316_v16 = vmul.f32 %v312_v12, %v256_v62  ;;  %v319_v18 = vmul.f32 1.442695, %v315_v13  ;;  %vm338_vm3 = vcmp.ge.f32.partialorder %v555_v4, 0.0 }
 0x207   :  { %426 = vrcp.f32 %v264_v5  ;;  %v265_v8 = vadd.f32 1.0, %v261_v6  ;;  %v317_v20 = vmul.f32 %v313_v14, %v257_v3 }
 0x208   :  { %v262_v9 = vmul.f32 0.3275911, %v258_v7  ;;  %v314_v19 = vsub.f32 0.0, %v258_v7  ;;  %v321_v24 = vmul.f32 1.442695, %v316_v16 }
 0x209   :  { %428 = vrcp.f32 %v265_v8  ;;  %v323_v30 = vmul.f32 1.442695, %v317_v20 }
 0x20a   :  { %v266_v10 = vadd.f32 1.0, %v262_v9  ;;  %v318_v27 = vmul.f32 %v314_v19, %v258_v7 }
 0x20c   :  { %430 = vrcp.f32 %v266_v10  ;;  %v325_v37 = vmul.f32 1.442695, %v318_v27 }
 0x20d   :  { %432 = vpow2.f32 %v319_v18 }
 0x20e   :  { %434 = vpow2.f32 %v321_v24 }
 0x20f   :  { %436 = vpow2.f32 %v323_v30 }
 0x210   :  { %438 = vpow2.f32 %v325_v37 }
 0x212   :  { %v425_v15 = vpop.eup %424 }
 0x213   :  { %v275_v17 = vmul.f32 1.0614054, %v425_v15 }
 0x214   :  { %v427_v21 = vpop.eup %426 }
 0x215   :  { %v279_v22 = vadd.f32 -1.4531521, %v275_v17  ;;  %v276_v23 = vmul.f32 1.0614054, %v427_v21 }
 0x216   :  { %v429_v25 = vpop.eup %428 }
 0x217   :  { %v283_v26 = vmul.f32 %v425_v15, %v279_v22  ;;  %v280_v28 = vadd.f32 -1.4531521, %v276_v23  ;;  %v277_v29 = vmul.f32 1.0614054, %v429_v25  ;;  %v247_v22 = vmul.f32 0.5, %v534_v52 }
 0x218   :  { %v250_v52 = vmul.f32 0.5, %v551_v0 }
 0x219   :  { %v287_v31 = vadd.f32 1.4214138, %v283_v26  ;;  %v431_v32 = vpop.eup %430  ;;  %v284_v33 = vmul.f32 %v427_v21, %v280_v28  ;;  %v281_v34 = vadd.f32 -1.4531521, %v277_v29 }
 0x21a   :  { %v278_v36 = vmul.f32 1.0614054, %v431_v32  ;;  %v433_v57 = vpop.eup %432 }
 0x21b   :  { %v291_v35 = vmul.f32 %v425_v15, %v287_v31  ;;  %v288_v38 = vadd.f32 1.4214138, %v284_v33  ;;  %v285_v39 = vmul.f32 %v429_v25, %v281_v34  ;;  %v435_v5 = vpop.eup %434  ;;  %v249_v33 = vmul.f32 0.5, %v545_v59 }
 0x21c   :  { %v282_v41 = vadd.f32 -1.4531521, %v278_v36  ;;  %v437_v10 = vpop.eup %436 }
 0x21d   :  { %v295_v40 = vadd.f32 -0.28449672, %v291_v35  ;;  %v292_v42 = vmul.f32 %v427_v21, %v288_v38  ;;  %v289_v43 = vadd.f32 1.4214138, %v285_v39  ;;  %v439_v17 = vpop.eup %438 }
 0x21e   :  { %v286_v45 = vmul.f32 %v431_v32, %v282_v41 }
 0x21f   :  { %v299_v44 = vmul.f32 %v425_v15, %v295_v40  ;;  %v296_v46 = vadd.f32 -0.28449672, %v292_v42  ;;  %v293_v47 = vmul.f32 %v429_v25, %v289_v43 }
 0x220   :  { %v290_v49 = vadd.f32 1.4214138, %v286_v45 }
 0x221   :  { %v303_v48 = vadd.f32 0.2548296, %v299_v44  ;;  %v300_v50 = vmul.f32 %v427_v21, %v296_v46  ;;  %v297_v51 = vadd.f32 -0.28449672, %v293_v47 }
 0x222   :  { %v294_v56 = vmul.f32 %v431_v32, %v290_v49 }
 0x223   :  { %v307_v53 = vmul.f32 %v425_v15, %v303_v48  ;;  %v304_v60 = vadd.f32 0.2548296, %v300_v50  ;;  %v301_v61 = vmul.f32 %v429_v25, %v297_v51 }
 0x224   :  { %v298_v1 = vadd.f32 -0.28449672, %v294_v56 }
 0x225   :  { %v327_v62 = vmul.f32 %v433_v57, %v307_v53  ;;  %v308_v2 = vmul.f32 %v427_v21, %v304_v60  ;;  %v305_v3 = vadd.f32 0.2548296, %v301_v61 }
 0x226   :  { %v302_v7 = vmul.f32 %v431_v32, %v298_v1 }
 0x227   :  { %v331_v6 = vsub.f32 1.0, %v327_v62  ;;  %v328_v8 = vmul.f32 %v435_v5, %v308_v2  ;;  %v309_v9 = vmul.f32 %v429_v25, %v305_v3  ;;  %v248_v25 = vmul.f32 0.5, %v539_v55 }
 0x228   :  { %v306_v12 = vadd.f32 0.2548296, %v302_v7 }
 0x229   :  { %v339_v11 = vsub.f32 0.0, %v331_v6  ;;  %v332_v13 = vsub.f32 1.0, %v328_v8  ;;  %v329_v14 = vmul.f32 %v437_v10, %v309_v9 }
 0x22a   :  { %v310_v16 = vmul.f32 %v431_v32, %v306_v12 }
 0x22b   :  { %v343_v15 = vsel %vm335_vm0, %v331_v6, %v339_v11  ;;  %v340_v18 = vsub.f32 0.0, %v332_v13  ;;  %v333_v19 = vsub.f32 1.0, %v329_v14 }
 0x22c   :  { %v347_v20 = vadd.f32 1.0, %v343_v15  ;;  %v330_v21 = vmul.f32 %v439_v17, %v310_v16 }
 0x22d   :  { %v344_v23 = vsel %vm336_vm1, %v332_v13, %v340_v18  ;;  %v341_v24 = vsub.f32 0.0, %v333_v19 }
 0x22e   :  { %v348_v26 = vadd.f32 1.0, %v344_v23  ;;  %v334_v54 = vsub.f32 1.0, %v330_v21  ;;  %v351_v28 = vmul.f32 %v347_v20, %v247_v22 }
 0x22f   :  { %v345_v27 = vsel %vm337_vm2, %v333_v19, %v341_v24 }
 0x230   :  { %v352_v29 = vmul.f32 %v348_v26, %v248_v25  ;;  %v342_v30 = vsub.f32 0.0, %v334_v54  ;;  %v349_v31 = vadd.f32 1.0, %v345_v27 }
 0x232   :  { %v393_v32 = vpack.c.bf16 %v352_v29, %v351_v28  ;;  %v346_v58 = vsel %vm338_vm3, %v334_v54, %v342_v30  ;;  %v353_v55 = vmul.f32 %v349_v31, %v249_v33 }
 0x233   :  { %v350_v34 = vadd.f32 1.0, %v346_v58 }
 0x234   :  { %367 = vst [vmem:[%s577_s5] sm:$0xff] %v393_v32 }
 0x235   :  { %v354_v63 = vmul.f32 %v350_v34, %v250_v52 }
 0x237   :  { %v394_v35 = vpack.c.bf16 %v354_v63, %v353_v55 }
 0x239   :  { %368 = vst [vmem:[%s577_s5 + $0x8] sm:$0xff] %v394_v35 }

// kernel: _lambda_.25
= control target key start
LH: loop header
LB: loop body
LE: loop exit
PB: predicated region body
PF: predicated region fallthrough
CT: control target
= control target key end

     0   :  { %s1207_s18 = smov 0   ;;  %s1209_s19 = smov 0   ;;  %s1429_s0 = inlined_call_operand.vmem [shape: f32[16,128], index: 0, kind: input, shape index: {}]   ;;  %s1430_s1 = inlined_call_operand.vmem [shape: f32[1,128], index: 1, kind: input, shape index: {}]   ;;  %s1431_s2 = inlined_call_operand.vmem [shape: f32[1,128], index: 2, kind: input, shape index: {}]   ;;  %s1432_s3 = inlined_call_operand.vmem [shape: bf16[128,1024], index: 3, kind: input, shape index: {}]   ;;  %s1433_s4 = inlined_call_operand.vmem [shape: f32[1,1024], index: 4, kind: input, shape index: {}]   ;;  %s1434_s5 = inlined_call_operand.vmem [shape: f32[16,1024], index: 5, kind: output, shape index: {}]  }
   0x1   :  { %s1211_s20 = smov 0   ;;  %s1213_s21 = smov 0  }
   0x2   :  { %s1215_s22 = smov 0  }
   0x3 LB: > { %s30_s23 = sadd.s32 1, %s1170_s21  ;;  %s988_s24 = sadd.s32 4294967295, %s1174_s22   ;;  %s1174_s22 = sphi %s1215_s22, %s15_s22   ;;  %s1170_s21 = sphi %s1213_s21, %s1439_s21   ;;  %s1166_s20 = sphi %s1211_s20, %s1438_s20   ;;  %s1162_s19 = sphi %s1209_s19, %s1437_s19   ;;  %s1158_s18 = sphi %s1207_s18, %s1436_s18  }
   0x4   : > { %p32_p0 = scmp.ge.s32.totalorder %s30_s23, 2  ;;  %p130_p1 = scmp.ne.s32.totalorder %s1162_s19, %s1158_s18 }
   0x5   : > { %p131_p2 = scmp.eq.s32.totalorder %s1174_s22, 0  ;;  %p188_p4 = scmp.eq.s32.totalorder %s988_s24, 1 }
   0x6   : > { %s1441_s23 = smov (%p32_p0, %s30_s23), 0  ;;  %s123_s26 = sadd.s32 1, %s1162_s19 }
   0x7   : > { %p132_p3 = por %p131_p2, %p130_p1  ;;  %s119_s25 = ssub.s32 %s1170_s21, %s1441_s23 }
   0x8   : > { %p121_p5 = scmp.eq.s32.totalorder %s119_s25, 0  ;;  %p1242_p6 = por %p188_p4, %p130_p1 }
   0x9   : > { %p994_p7 = scmp.ge.s32.totalorder %s1174_s22, 2 }
   0xa   : > { %s1247_s28 = scalar_select %p121_p5, %s1162_s19, %s123_s26  }
   0xb   : > { %234 = sbr.rel (%p994_p7) target bundleno = 36 (0x24), region = 28 }
  0x10   : > { %237 = sbr.rel (!%p132_p3) target bundleno = 36 (0x24), region = 32  ;;  %s239_s29 = sand.u32 (%p132_p3), 1, %s1162_s19  }
  0x11   : > { %s1041_s30 = sshll.u32 (%p132_p3), %s1170_s21, 4  ;;  %s995_s6 = sshll.u32 (%p132_p3), %s239_s29, 8 }
  0x12   : > { %s1255_s9 = scalar_lea.vmem (%p132_p3), %s1432_s3, %s1041_s30  ;;  %s1260_s10 = scalar_lea.vmem (%p132_p3), [#allocation3], %s995_s6 }
  0x13   : > { %v260_v0 = vld [vmem:[%s1255_s9] sm:$0xff] (%p132_p3)  ;;  %v262_v1 = vld [vmem:[%s1255_s9 + $0x8] sm:$0xff] (%p132_p3) }
  0x14   : > { %v264_v2 = vld [vmem:[%s1255_s9 + $0x20] sm:$0xff] (%p132_p3)  ;;  %261 = vst [vmem:[%s1260_s10] sm:$0xff] (%p132_p3), %v260_v0  ;;  %263 = vst [vmem:[%s1260_s10 + $0x8] sm:$0xff] (%p132_p3), %v262_v1  ;;  %v266_v3 = vld [vmem:[%s1255_s9 + $0x28] sm:$0xff] (%p132_p3) }
  0x15   : > { %265 = vst [vmem:[%s1260_s10 + $0x10] sm:$0xff] %v264_v2  ;;  %v268_v4 = vld [vmem:[%s1255_s9 + $0x40] sm:$0xff]  ;;  %v270_v5 = vld [vmem:[%s1255_s9 + $0x48] sm:$0xff]  ;;  %267 = vst [vmem:[%s1260_s10 + $0x18] sm:$0xff] %v266_v3 }
  0x16   : > { %269 = vst [vmem:[%s1260_s10 + $0x20] sm:$0xff] %v268_v4  ;;  %271 = vst [vmem:[%s1260_s10 + $0x28] sm:$0xff] %v270_v5  ;;  %v272_v6 = vld [vmem:[%s1255_s9 + $0x60] sm:$0xff]  ;;  %v274_v7 = vld [vmem:[%s1255_s9 + $0x68] sm:$0xff] }
  0x17   : > { %v276_v8 = vld [vmem:[%s1255_s9 + $0x80] sm:$0xff]  ;;  %273 = vst [vmem:[%s1260_s10 + $0x30] sm:$0xff] %v272_v6  ;;  %275 = vst [vmem:[%s1260_s10 + $0x38] sm:$0xff] %v274_v7  ;;  %v278_v9 = vld [vmem:[%s1255_s9 + $0x88] sm:$0xff] }
  0x18   : > { %277 = vst [vmem:[%s1260_s10 + $0x40] sm:$0xff] %v276_v8  ;;  %v280_v10 = vld [vmem:[%s1255_s9 + $0xa0] sm:$0xff]  ;;  %v282_v11 = vld [vmem:[%s1255_s9 + $0xa8] sm:$0xff]  ;;  %279 = vst [vmem:[%s1260_s10 + $0x48] sm:$0xff] %v278_v9 }
  0x19   : > { %281 = vst [vmem:[%s1260_s10 + $0x50] sm:$0xff] %v280_v10  ;;  %283 = vst [vmem:[%s1260_s10 + $0x58] sm:$0xff] %v282_v11  ;;  %v284_v12 = vld [vmem:[%s1255_s9 + $0xc0] sm:$0xff]  ;;  %v286_v13 = vld [vmem:[%s1255_s9 + $0xc8] sm:$0xff] }
  0x1a   : > { %v288_v14 = vld [vmem:[%s1255_s9 + $0xe0] sm:$0xff]  ;;  %285 = vst [vmem:[%s1260_s10 + $0x60] sm:$0xff] %v284_v12  ;;  %287 = vst [vmem:[%s1260_s10 + $0x68] sm:$0xff] %v286_v13  ;;  %v290_v15 = vld [vmem:[%s1255_s9 + $0xe8] sm:$0xff] }
  0x1b   : > { %289 = vst [vmem:[%s1260_s10 + $0x70] sm:$0xff] %v288_v14  ;;  %v292_v16 = vld [vmem:[%s1255_s9 + $0x100] sm:$0xff]  ;;  %v294_v17 = vld [vmem:[%s1255_s9 + $0x108] sm:$0xff]  ;;  %291 = vst [vmem:[%s1260_s10 + $0x78] sm:$0xff] %v290_v15 }
  0x1c   : > { %293 = vst [vmem:[%s1260_s10 + $0x80] sm:$0xff] %v292_v16  ;;  %295 = vst [vmem:[%s1260_s10 + $0x88] sm:$0xff] %v294_v17  ;;  %v296_v18 = vld [vmem:[%s1255_s9 + $0x120] sm:$0xff]  ;;  %v298_v19 = vld [vmem:[%s1255_s9 + $0x128] sm:$0xff] }
  0x1d   : > { %v300_v20 = vld [vmem:[%s1255_s9 + $0x140] sm:$0xff]  ;;  %297 = vst [vmem:[%s1260_s10 + $0x90] sm:$0xff] %v296_v18  ;;  %299 = vst [vmem:[%s1260_s10 + $0x98] sm:$0xff] %v298_v19  ;;  %v302_v21 = vld [vmem:[%s1255_s9 + $0x148] sm:$0xff] }
  0x1e   : > { %301 = vst [vmem:[%s1260_s10 + $0xa0] sm:$0xff] %v300_v20  ;;  %v304_v22 = vld [vmem:[%s1255_s9 + $0x160] sm:$0xff]  ;;  %v306_v23 = vld [vmem:[%s1255_s9 + $0x168] sm:$0xff]  ;;  %303 = vst [vmem:[%s1260_s10 + $0xa8] sm:$0xff] %v302_v21 }
  0x1f   : > { %305 = vst [vmem:[%s1260_s10 + $0xb0] sm:$0xff] %v304_v22  ;;  %307 = vst [vmem:[%s1260_s10 + $0xb8] sm:$0xff] %v306_v23  ;;  %v308_v24 = vld [vmem:[%s1255_s9 + $0x180] sm:$0xff]  ;;  %v310_v25 = vld [vmem:[%s1255_s9 + $0x188] sm:$0xff] }
  0x20   : > { %v312_v26 = vld [vmem:[%s1255_s9 + $0x1a0] sm:$0xff]  ;;  %309 = vst [vmem:[%s1260_s10 + $0xc0] sm:$0xff] %v308_v24  ;;  %311 = vst [vmem:[%s1260_s10 + $0xc8] sm:$0xff] %v310_v25  ;;  %v314_v27 = vld [vmem:[%s1255_s9 + $0x1a8] sm:$0xff] }
  0x21   : > { %313 = vst [vmem:[%s1260_s10 + $0xd0] sm:$0xff] %v312_v26  ;;  %v316_v28 = vld [vmem:[%s1255_s9 + $0x1c0] sm:$0xff]  ;;  %v318_v29 = vld [vmem:[%s1255_s9 + $0x1c8] sm:$0xff]  ;;  %315 = vst [vmem:[%s1260_s10 + $0xd8] sm:$0xff] %v314_v27 }
  0x22   : > { %317 = vst [vmem:[%s1260_s10 + $0xe0] sm:$0xff] %v316_v28  ;;  %319 = vst [vmem:[%s1260_s10 + $0xe8] sm:$0xff] %v318_v29  ;;  %v320_v30 = vld [vmem:[%s1255_s9 + $0x1e0] sm:$0xff]  ;;  %v322_v31 = vld [vmem:[%s1255_s9 + $0x1e8] sm:$0xff] }
  0x23   : > { %321 = vst [vmem:[%s1260_s10 + $0xf0] sm:$0xff] %v320_v30  ;;  %323 = vst [vmem:[%s1260_s10 + $0xf8] sm:$0xff] %v322_v31 }
  0x24 PF: > { %p998_p8 = scmp.ge.s32.totalorder %s1174_s22, 1  ;;  %p336_p9 = scmp.lt.s32.totalorder %s1174_s22, 3 }
  0x26   : > { %p337_p10 = pnand %p998_p8, %p336_p9 }
  0x27   : > { %s343_s15 = sand.u32 (!%p337_p10), 1, %s1158_s18   ;;  %s1001_s30 = sshll.u32 (!%p337_p10), %s1166_s20, 2 }
  0x28   : > { %340 = sbr.rel (%p337_p10) target bundleno = 568 (0x238), region = 59  ;;  %s999_s16 = sshll.u32 (!%p337_p10), %s343_s15, 8 }
  0x29   : > { %s1334_s17 = scalar_lea.vmem (!%p337_p10), [#allocation3], %s999_s16  ;;  %p405_p11 = scmp.lt.s32.totalorder (!%p337_p10), %s1001_s30, 7 }
  0x2a   : > { %s1000_s9 = sshll.u32 (!%p337_p10), %s343_s15, 6 }
  0x2b   : > { %s1390_s10 = scalar_lea.vmem (!%p337_p10), [#allocation4], %s1000_s9 }
  0x2d   : > { %v424_v32 = vld [vmem:[%s1429_s0] sm:$0xff]  ;;  %v425_v33 = vld [vmem:[%s1429_s0 + $0x8] sm:$0xff]  ;;  %v1176_v4 = vmov 0   ;;  %v783_v28 = vlaneseq  ;;  %s1443_s30 = smov (!%p405_p11, %s1001_s30), 7  ;;  %s1042_s18 = sshll.u32 (%p1242_p6), %s1166_s20, 5 }
  0x2e   : > { %426 = vadd.xlane.f32.xlu0 %v424_v32  ;;  %v1084_v34 = vld [vmem:[%s1334_s17 + $0xe4] ss:$16 sps:$4 sm:$0xff]   ;;  %v1086_v35 = vld [vmem:[%s1334_s17 + $0xec] ss:$16 sps:$4 sm:$0xff]   ;;  %v1088_v44 = vld [vmem:[%s1334_s17 + $0xe0] ss:$16 sps:$4 sm:$0xff]   ;;  %700 = vmatprep.mubr.bf16.mxu0 %v1176_v4  ;;  %s407_s8 = scalar_lea.vmem %s1433_s4, %s1443_s30  ;;  %s831_s13 = scalar_lea.vmem (%p1242_p6), %s1434_s5, %s1042_s18 }
  0x2f   : > { %668 = vmatprep.subr.bf16.mxu0 %v1084_v34  ;;  %711 = vmatprep.subr.bf16.mxu1 %v1086_v35  ;;  %v1089_v45 = vld [vmem:[%s1334_s17 + $0xe8] ss:$16 sps:$4 sm:$0xff]   ;;  %v1090_v46 = vld [vmem:[%s1334_s17 + $0xc4] ss:$16 sps:$4 sm:$0xff]   ;;  %v1092_v47 = vld [vmem:[%s1334_s17 + $0xcc] ss:$16 sps:$4 sm:$0xff]  }
  0x30   : > { %669 = vmatpush1.bf16.msra.mxu0 %v1088_v44  ;;  %712 = vmatpush1.bf16.msra.mxu1 %v1089_v45  ;;  %v1094_v48 = vld [vmem:[%s1334_s17 + $0xc0] ss:$16 sps:$4 sm:$0xff]   ;;  %v1095_v49 = vld [vmem:[%s1334_s17 + $0xc8] ss:$16 sps:$4 sm:$0xff]   ;;  %v1096_v50 = vld [vmem:[%s1334_s17 + $0xa4] ss:$16 sps:$4 sm:$0xff]  }
  0x31   : > { %670 = vmatprep.subr.bf16.mxu0 %v1090_v46  ;;  %713 = vmatprep.subr.bf16.mxu1 %v1092_v47  ;;  %v1098_v51 = vld [vmem:[%s1334_s17 + $0xac] ss:$16 sps:$4 sm:$0xff]   ;;  %v1100_v52 = vld [vmem:[%s1334_s17 + $0xa0] ss:$16 sps:$4 sm:$0xff]   ;;  %v1101_v53 = vld [vmem:[%s1334_s17 + $0xa8] ss:$16 sps:$4 sm:$0xff]  }
  0x32   : > { %428 = vadd.xlane.f32.xlu0 %v425_v33  ;;  %v1102_v54 = vld [vmem:[%s1334_s17 + $0x84] ss:$16 sps:$4 sm:$0xff]   ;;  %v1104_v55 = vld [vmem:[%s1334_s17 + $0x8c] ss:$16 sps:$4 sm:$0xff]   ;;  %v1106_v56 = vld [vmem:[%s1334_s17 + $0x80] ss:$16 sps:$4 sm:$0xff]   ;;  %743 = vmatprep.mubr.bf16.mxu1 %v1176_v4 }
  0x33   : > { %v1107_v57 = vld [vmem:[%s1334_s17 + $0x88] ss:$16 sps:$4 sm:$0xff]   ;;  %v1108_v58 = vld [vmem:[%s1334_s17 + $0x64] ss:$16 sps:$4 sm:$0xff]   ;;  %v1110_v59 = vld [vmem:[%s1334_s17 + $0x6c] ss:$16 sps:$4 sm:$0xff]  }
  0x34   : > { %671 = vmatpush1.bf16.msra.mxu0 %v1094_v48  ;;  %714 = vmatpush1.bf16.msra.mxu1 %v1095_v49  ;;  %v1112_v60 = vld [vmem:[%s1334_s17 + $0x60] ss:$16 sps:$4 sm:$0xff]   ;;  %v1113_v61 = vld [vmem:[%s1334_s17 + $0x68] ss:$16 sps:$4 sm:$0xff]   ;;  %v1114_v62 = vld [vmem:[%s1334_s17 + $0x44] ss:$16 sps:$4 sm:$0xff]  }
  0x35   : > { %672 = vmatprep.subr.bf16.mxu0 %v1096_v50  ;;  %715 = vmatprep.subr.bf16.mxu1 %v1098_v51  ;;  %v1116_v63 = vld [vmem:[%s1334_s17 + $0x4c] ss:$16 sps:$4 sm:$0xff]   ;;  %v1118_v0 = vld [vmem:[%s1334_s17 + $0x40] ss:$16 sps:$4 sm:$0xff]   ;;  %v1119_v1 = vld [vmem:[%s1334_s17 + $0x48] ss:$16 sps:$4 sm:$0xff]  }
  0x36   : > { %v1120_v2 = vld [vmem:[%s1334_s17 + $0x24] ss:$16 sps:$4 sm:$0xff]   ;;  %v1122_v3 = vld [vmem:[%s1334_s17 + $0x2c] ss:$16 sps:$4 sm:$0xff]   ;;  %v1124_v5 = vld [vmem:[%s1334_s17 + $0x20] ss:$16 sps:$4 sm:$0xff]  }
  0x37   : > { %v1125_v6 = vld [vmem:[%s1334_s17 + $0x28] ss:$16 sps:$4 sm:$0xff]   ;;  %v1126_v7 = vld [vmem:[%s1334_s17 + $0x4] ss:$16 sps:$4 sm:$0xff]   ;;  %v1128_v8 = vld [vmem:[%s1334_s17 + $0xc] ss:$16 sps:$4 sm:$0xff]  }
  0x38   : > { %673 = vmatpush1.bf16.msra.mxu0 %v1100_v52  ;;  %716 = vmatpush1.bf16.msra.mxu1 %v1101_v53  ;;  %v1130_v9 = vld [vmem:[%s1334_s17] ss:$16 sps:$4 sm:$0xff]   ;;  %v1131_v10 = vld [vmem:[%s1334_s17 + $0x8] ss:$16 sps:$4 sm:$0xff]   ;;  %v784_v29 = vshrl.u32 %v783_v28, 7 }
  0x39   : > { %674 = vmatprep.subr.bf16.mxu0 %v1102_v54  ;;  %717 = vmatprep.subr.bf16.mxu1 %v1104_v55  ;;  %v1002_v19 = vld [vmem:[%s1430_s1] ss:$0 sm:$0xff] }
  0x3a   : > { %v1003_v23 = vld [vmem:[%s1431_s2] ss:$0 sm:$0xff]  ;;  %v785_v30 = vsub.s32 0, %v784_v29  ;;  %v793_v31 = vsub.s32 2, %v784_v29  ;;  %v797_v34 = vsub.s32 3, %v784_v29 }
  0x3c   : > { %675 = vmatpush1.bf16.msra.mxu0 %v1106_v56  ;;  %718 = vmatpush1.bf16.msra.mxu1 %v1107_v57 }
  0x3d   : > { %676 = vmatprep.subr.bf16.mxu0 %v1108_v58  ;;  %719 = vmatprep.subr.bf16.mxu1 %v1110_v59 }
  0x40   : > { %677 = vmatpush1.bf16.msra.mxu0 %v1112_v60  ;;  %720 = vmatpush1.bf16.msra.mxu1 %v1113_v61 }
  0x41   : > { %678 = vmatprep.subr.bf16.mxu0 %v1114_v62  ;;  %721 = vmatprep.subr.bf16.mxu1 %v1116_v63 }
  0x44   : > { %679 = vmatpush1.bf16.msra.mxu0 %v1118_v0  ;;  %722 = vmatpush1.bf16.msra.mxu1 %v1119_v1 }
  0x45   : > { %680 = vmatprep.subr.bf16.mxu0 %v1120_v2  ;;  %723 = vmatprep.subr.bf16.mxu1 %v1122_v3 }
  0x48   : > { %681 = vmatpush1.bf16.msra.mxu0 %v1124_v5  ;;  %724 = vmatpush1.bf16.msra.mxu1 %v1125_v6 }
  0x49   : > { %682 = vmatprep.subr.bf16.mxu0 %v1126_v7  ;;  %725 = vmatprep.subr.bf16.mxu1 %v1128_v8 }
  0x4c   : > { %683 = vmatpush1.bf16.msra.mxu0 %v1130_v9  ;;  %726 = vmatpush1.bf16.msra.mxu1 %v1131_v10 }
  0xb7   : > { %v427_v36 = vpop.xlane.xlu0 %426 }
  0xb8   : > { %v431_v37 = vmul.f32 0.0078125, %v427_v36 }
  0xba   : > { %v1338_v38 = vsub.f32 %v424_v32, %v431_v37  ;;  %v781_v32 = vld [vmem:[%s407_s8] sm:$0xf] }
  0xbb   : > { %v429_v39 = vpop.xlane.xlu0 %428  ;;  %v786_v35 = vrot.slane %v781_v32, %v785_v30  ;;  %v794_v36 = vrot.slane %v781_v32, %v793_v31 }
  0xbc   : > { %v432_v40 = vmul.f32 0.0078125, %v429_v39  ;;  %v435_v41 = vmul.f32 %v1338_v38, %v1338_v38 }
  0xbe   : > { %v1342_v42 = vsub.f32 %v425_v33, %v432_v40  ;;  %437 = vadd.xlane.f32.xlu1 %v435_v41  ;;  %v789_v33 = vsub.s32 1, %v784_v29 }
  0xc0   : > { %v436_v43 = vmul.f32 %v1342_v42, %v1342_v42  ;;  %v790_v37 = vrot.slane %v781_v32, %v789_v33 }
  0xc2   : > { %439 = vadd.xlane.f32.xlu1 %v436_v43 }
 0x147   : > { %v438_v11 = vpop.xlane.xlu1 %437 }
 0x148   : > { %v441_v12 = vmul.f32 0.0078125, %v438_v11 }
 0x14a   : > { %v443_v13 = vadd.f32 1e-05, %v441_v12 }
 0x14b   : > { %v440_v14 = vpop.xlane.xlu1 %439 }
 0x14c   : > { %1132 = vrsqrt.f32 %v443_v13  ;;  %v442_v15 = vmul.f32 0.0078125, %v440_v14 }
 0x14e   : > { %v444_v16 = vadd.f32 1e-05, %v442_v15 }
 0x150   : > { %1134 = vrsqrt.f32 %v444_v16 }
 0x159   : > { %v1133_v17 = vpop.eup %1132 }
 0x15a   : > { %v447_v18 = vmul.f32 %v1133_v17, %v1338_v38  ;;  %v798_v38 = vrot.slane %v781_v32, %v797_v34 }
 0x15c   : > { %v456_v22 = vmul.f32 %v1002_v19, %v447_v18 }
 0x15d   : > { %v1135_v20 = vpop.eup %1134 }
 0x15e   : > { %v448_v21 = vmul.f32 %v1135_v20, %v1342_v42  ;;  %v465_v25 = vadd.f32 %v1003_v23, %v456_v22 }
 0x160   : > { %v457_v24 = vmul.f32 %v1002_v19, %v448_v21 }
 0x162   : > { %v466_v26 = vadd.f32 %v1003_v23, %v457_v24 }
 0x164   : > { %v467_v27 = vpack.c.bf16 %v466_v26, %v465_v25 }
 0x166   : > { %701 = vmatmul.mubr.bf16.vlgmr.msra.gmra.mxu0 %v467_v27  ;;  %744 = vmatmul.mubr.bf16.vlgmr.msra.gmra.mxu1 %v467_v27 }
 0x226   : > { %v702_v39 = vpop.f32.mrf.mxu0  ;;  %v745_v40 = vpop.f32.mrf.mxu1 }
 0x227   : > { %v803_v41 = vadd.f32 %v786_v35, %v702_v39  ;;  %v805_v42 = vadd.f32 %v794_v36, %v745_v40 }
 0x228   : > { %v704_v43 = vpop.f32.mrf.mxu0  ;;  %v747_v44 = vpop.f32.mrf.mxu1 }
 0x229   : > { %811 = vst [vmem:[%s1390_s10] sm:$0xff] %v803_v41  ;;  %813 = vst [vmem:[%s1390_s10 + $0x10] sm:$0xff] %v805_v42  ;;  %v804_v45 = vadd.f32 %v790_v37, %v704_v43  ;;  %v806_v46 = vadd.f32 %v798_v38, %v747_v44 }
 0x22a   : > { %v706_v47 = vpop.f32.mrf.mxu0  ;;  %v749_v48 = vpop.f32.mrf.mxu1 }
 0x22b   : > { %812 = vst [vmem:[%s1390_s10 + $0x8] sm:$0xff] %v804_v45  ;;  %814 = vst [vmem:[%s1390_s10 + $0x18] sm:$0xff] %v806_v46  ;;  %v807_v49 = vadd.f32 %v786_v35, %v706_v47  ;;  %v809_v50 = vadd.f32 %v794_v36, %v749_v48  ;;  %825 = sbr.rel (!%p1242_p6) target bundleno = 568 (0x238), region = 75 }
 0x22c   : > { %v708_v51 = vpop.f32.mrf.mxu0  ;;  %v751_v52 = vpop.f32.mrf.mxu1 }
 0x22d   : > { %815 = vst [vmem:[%s1390_s10 + $0x20] sm:$0xff] %v807_v49  ;;  %817 = vst [vmem:[%s1390_s10 + $0x30] sm:$0xff] %v809_v50  ;;  %v808_v53 = vadd.f32 %v790_v37, %v708_v51  ;;  %v810_v54 = vadd.f32 %v798_v38, %v751_v52 }
 0x22f   : > { %816 = vst [vmem:[%s1390_s10 + $0x28] sm:$0xff] %v808_v53  ;;  %818 = vst [vmem:[%s1390_s10 + $0x38] sm:$0xff] %v810_v54 }
 0x230   : > { %v844_v55 = vld [vmem:[%s1390_s10] sm:$0xff]  ;;  %v848_v57 = vld [vmem:[%s1390_s10 + $0x10] sm:$0xff] }
 0x231   : > { %845 = vst [vmem:[%s831_s13] sm:$0xff] %v844_v55  ;;  %849 = vst [vmem:[%s831_s13 + $0x10] sm:$0xff] %v848_v57 }
 0x232   : > { %v846_v56 = vld [vmem:[%s1390_s10 + $0x8] sm:$0xff]  ;;  %v850_v58 = vld [vmem:[%s1390_s10 + $0x18] sm:$0xff] }
 0x233   : > { %847 = vst [vmem:[%s831_s13 + $0x8] sm:$0xff] %v846_v56  ;;  %851 = vst [vmem:[%s831_s13 + $0x18] sm:$0xff] %v850_v58 }
 0x234   : > { %v852_v59 = vld [vmem:[%s1390_s10 + $0x20] sm:$0xff]  ;;  %v856_v61 = vld [vmem:[%s1390_s10 + $0x30] sm:$0xff] }
 0x235   : > { %853 = vst [vmem:[%s831_s13 + $0x40] sm:$0xff] %v852_v59  ;;  %857 = vst [vmem:[%s831_s13 + $0x50] sm:$0xff] %v856_v61 }
 0x236   : > { %v854_v60 = vld [vmem:[%s1390_s10 + $0x28] sm:$0xff]  ;;  %v858_v62 = vld [vmem:[%s1390_s10 + $0x38] sm:$0xff] }
 0x237   : > { %855 = vst [vmem:[%s831_s13 + $0x48] sm:$0xff] %v854_v60  ;;  %859 = vst [vmem:[%s831_s13 + $0x58] sm:$0xff] %v858_v62 }
 0x238 PF: > { %s15_s22 = sadd.s32 1, %s1174_s22   ;;  %s1436_s18 = smov %s1162_s19 }
 0x239   : > { %p12_p12 = scmp.ge.s32.totalorder %s15_s22, 4   ;;  %s1437_s19 = smov %s1247_s28 }
 0x23a   : > { %s1438_s20 = smov %s1170_s21  ;;  %s1439_s21 = smov %s1441_s23 }
 0x23b   :  { %14 = sbr.rel (!%p12_p12) target bundleno = 3 (0x3), region = 141 }

</bundles_post_ra>
